<compile_context>
chip_gen: v7x
topology: tpu7x:2x2x1
jax: 0.10.0
libtpu: 0.0.40
codegen_flags: <defaults>
</compile_context>

<pallas_src>
import jax
import jax.numpy as jnp
from jax.experimental import pallas as pl
from jax.experimental.pallas import tpu as pltpu

LANES = 128      # vreg lane width
SUBLANES = 8     # vreg sublane count (f32)

# (fan_in, fan_out) per nn.Linear, in order, and the activation that follows it.
LAYER_DIMS = ((2, 3), (3, 5), (5, 3), (3, 1))
ACTIVATIONS = ("relu", "sigmoid", "sigmoid", "none")
NUM_PARAMS = sum(fi * fo + fo for fi, fo in LAYER_DIMS)  # 51 floats total


def _round_up(x, m):
    return (x + m - 1) // m * m


def _cdiv(a, b):
    return (a + b - 1) // b


def mlp_kernel(params_ref, x_ref, m_ref, o_ref):
    """One batch tile.

    x_ref : (TBR, 256) f32 -- TBR*128 samples; lanes 2p / 2p+1 of each row hold
            features 0 / 1 of sample p (natural row-major order of the (B, 2) input).
    m_ref : (256, 384) f32 -- de-interleave matrix fused with the layer-1 weights
            (M[2p+f, 128j+p] = W1[f, j]); VMEM-resident across the whole grid.
    params_ref : (51,) f32 in SMEM -- all weights/biases (the layer-1 weights are
            unused here since they are baked into m_ref).
    o_ref : (TBR, 128) f32 -- logits; sample a*128+p lands at [a, p].
    """
    # Layer 1 (+ feature de-interleave) on the otherwise-idle MXU.  Output column
    # block [128j, 128(j+1)) is the lane-dense (TBR, 128) slab of hidden unit j.
    z1 = jnp.dot(x_ref[...], m_ref[...],
                 preferred_element_type=jnp.float32,
                 precision=jax.lax.Precision.HIGHEST)           # (TBR, 3*128)

    b1_off = LAYER_DIMS[0][0] * LAYER_DIMS[0][1]                # layer-1 bias offset
    h = [jnp.maximum(z1[:, LANES * j:LANES * (j + 1)] + params_ref[b1_off + j], 0.0)
         for j in range(LAYER_DIMS[0][1])]

    # Layers 2..4: unrolled scalar-broadcast FMAs on the VPU; sigmoid via EUP tanh.
    # TODO(synk): optional bf16 interior for v6e/v7x (2x VALU) -- kept f32 so the
    # kernel matches the f32 reference to 1e-5 on every TPU generation.
    off = b1_off + LAYER_DIMS[0][1]
    for layer_idx in range(1, len(LAYER_DIMS)):
        fin, fout = LAYER_DIMS[layer_idx]
        act = ACTIVATIONS[layer_idx]
        w_off = off                      # weights stored row-major as (fin, fout)
        b_off = off + fin * fout
        off = b_off + fout

        new_h = []
        for j in range(fout):
            acc = h[0] * params_ref[w_off + j]
            for i in range(1, fin):
                acc = acc + h[i] * params_ref[w_off + i * fout + j]
            acc = acc + params_ref[b_off + j]
            if act == "relu":
                acc = jnp.maximum(acc, 0.0)
            elif act == "sigmoid":
                # sigmoid(x) = 0.5*tanh(0.5*x) + 0.5 : tanh runs on the EUP slot.
                acc = 0.5 * jnp.tanh(0.5 * acc) + 0.5
            new_h.append(acc)
        h = new_h

    o_ref[...] = h[0]                    # (TBR, 128) unmasked, lane+sublane dense


def pack_params(params):
    """Flatten all weights (stored (in,out)) and biases into one (51,) f32 array."""
    parts = []
    for i in range(1, len(LAYER_DIMS) + 1):
        parts.append(params[f"w{i}"].reshape(-1))
        parts.append(params[f"b{i}"].reshape(-1))
    packed = jnp.concatenate(parts).astype(jnp.float32)
    assert packed.shape == (NUM_PARAMS,)
    return packed


def build_layer1_matrix(w1):
    """(256, 384) matrix fusing the lane de-interleave with the first Linear.

    The kernel's input rows hold 128 samples with their 2 features adjacent
    (lane 2p+f = feature f of sample p), so
        (x_row @ M)[128*j + p] = sum_f x[p, f] * W1[f, j]
    i.e. one MXU pass both de-interleaves the features and applies layer 1,
    producing a lane-dense 128-wide slab per hidden unit j.
    """
    fin, fout = LAYER_DIMS[0]
    p = jnp.arange(LANES)
    m = jnp.zeros((fin * LANES, fout * LANES), jnp.float32)
    for f in range(fin):
        for j in range(fout):
            m = m.at[fin * p + f, LANES * j + p].set(w1[f, j])
    return m


def _forward_ref(x2, params):
    """Pure-JAX reference (also the small-batch fast path)."""
    h = jnp.maximum(x2 @ params["w1"] + params["b1"], 0.0)
    h = jax.nn.sigmoid(h @ params["w2"] + params["b2"])
    h = jax.nn.sigmoid(h @ params["w3"] + params["b3"])
    return h @ params["w4"] + params["b4"]


def neural_network_forward(x, params, *, max_block_rows=1024, min_kernel_batch=4096):
    """x: (B, ...) with prod(...) == 2 after flatten.  Returns (B, 1) logits."""
    B = x.shape[0]
    x2 = x.reshape(B, -1).astype(jnp.float32)             # nn.Flatten(start_dim=1)
    assert x2.shape[1] == LAYER_DIMS[0][0], "Linear(2, 3) expects 2 input features"

    # pallas_call fixed cost dwarfs ~200 FLOPs/sample at small B; plain XLA wins.
    if B < max(min_kernel_batch, 2 * SUBLANES * LANES):
        return _forward_ref(x2, params)

    Bp = _round_up(B, LANES)
    if Bp != B:                                            # rare; demo stays aligned
        x2 = jnp.pad(x2, ((0, Bp - B), (0, 0)))
    rows = Bp // LANES
    # Free row-major reshape: (Bp, 2) -> (rows, 256).  No transpose, no extra HBM pass.
    x_rows = x2.reshape(rows, 2 * LANES)

    # Tile the batch: >= 2 grid steps and even (v7x megacore), each step up to
    # max_block_rows rows (= 128 * max_block_rows samples), rows-per-step a multiple
    # of 8 so vregs stay sublane-dense.  At 1024 rows a step moves ~1.5 MB
    # (~3 MB double-buffered + 0.4 MB for M) -- well under v5e's 16 MiB scoped VMEM.
    n_steps = max(2, _cdiv(rows, max_block_rows))
    n_steps += n_steps % 2
    tbr = max(SUBLANES, _round_up(_cdiv(rows, n_steps), SUBLANES))
    grid = (_cdiv(rows, tbr),)

    packed = pack_params(params)
    m = build_layer1_matrix(params["w1"])

    out_rows = pl.pallas_call(
        mlp_kernel,
        out_shape=jax.ShapeDtypeStruct((rows, LANES), jnp.float32),
        grid=grid,
        in_specs=[
            # All 51 params resident in SMEM for the whole call (one tiny DMA;
            # constant index -> never re-fetched across grid steps).
            pl.BlockSpec(memory_space=pltpu.MemorySpace.SMEM),
            # Batch-tiled input rows: (tbr, 256), lane- and sublane-dense.
            pl.BlockSpec((tbr, 2 * LANES), lambda i: (i, 0)),
            # Fused de-interleave / layer-1 matrix: single block, VMEM-resident.
            pl.BlockSpec((2 * LANES, LAYER_DIMS[0][1] * LANES), lambda i: (0, 0)),
        ],
        out_specs=pl.BlockSpec((tbr, LANES), lambda i: (i, 0)),
        compiler_params=pltpu.CompilerParams(
            dimension_semantics=("parallel",),    # megacore sharding on v7x
        ),
    )(packed, x_rows, m)

    # (rows, 128) row-major == flat sample order -> free reshape back to (B, 1).
    return out_rows.reshape(Bp, 1)[:B]


def init_params(key):
    """Deterministic init matching nn.Linear shapes; weights kept as (in, out)."""
    params = {}
    for i, (fan_in, fan_out) in enumerate(LAYER_DIMS, start=1):
        key, kw, kb = jax.random.split(key, 3)
        bound = 1.0 / jnp.sqrt(fan_in)  # PyTorch default Linear init range
        params[f"w{i}"] = jax.random.uniform(kw, (fan_in, fan_out), jnp.float32,
                                             minval=-bound, maxval=bound)
        params[f"b{i}"] = jax.random.uniform(kb, (fan_out,), jnp.float32,
                                             minval=-bound, maxval=bound)
    return params


if __name__ == "__main__":
    key = jax.random.PRNGKey(0)
    key_x, key_p = jax.random.split(key)

    # Batch large enough to take the tiled kernel path (2 grid steps of 16 rows).
    B = 4096
    x = jax.random.normal(key_x, (B, 2, 1), jnp.float32)  # flattens to (B, 2)
    params = init_params(key_p)

    logits = neural_network_forward(x, params)
    jax.block_until_ready(logits)

    # Pure-JAX reference check of the same math.
    ref = _forward_ref(x.reshape(B, -1), params)
    assert logits.shape == (B, 1)
    assert jnp.allclose(logits, ref, atol=1e-5, rtol=1e-5), "mismatch vs reference"

    print("KERNEL_OK")
</pallas_src>

<mosaic_0001>
module attributes {stable_mosaic.version = 11 : i64} {
  func.func @mlp_kernel(%arg0: i32, %arg1: memref<51xf32, #tpu.memory_space<smem>>, %arg2: memref<16x256xf32, #tpu.memory_space<vmem>>, %arg3: memref<256x384xf32, #tpu.memory_space<vmem>>, %arg4: memref<16x128xf32, #tpu.memory_space<vmem>>) attributes {dimension_semantics = [#tpu.dimension_semantics<parallel>], iteration_bounds = array<i64: 2>, scalar_prefetch = 0 : i64, scratch_operands = 0 : i64, tpu.core_type = #tpu.core_type<tc>, window_params = [{transform_indices = @transform_0, window_bounds = array<i64: 51>}, {transform_indices = @transform_1, window_bounds = array<i64: 16, 256>}, {pipeline_mode = #tpu.pipeline_mode<synchronous>, transform_indices = @transform_2, window_bounds = array<i64: 256, 384>}, {transform_indices = @transform_3, window_bounds = array<i64: 16, 128>}]} {
    %c0 = arith.constant 0 : index
    %c0_0 = arith.constant 0 : index
    %0 = vector.load %arg2[%c0, %c0_0] : memref<16x256xf32, #tpu.memory_space<vmem>>, vector<16x256xf32>
    %c0_1 = arith.constant 0 : index
    %c0_2 = arith.constant 0 : index
    %1 = vector.load %arg3[%c0_1, %c0_2] : memref<256x384xf32, #tpu.memory_space<vmem>>, vector<256x384xf32>
    %cst = arith.constant dense<0.000000e+00> : vector<16x384xf32>
    %2 = tpu.matmul %0, %1, %cst {dimension_numbers = #tpu.dot_dimension_numbers<[1], [0], [0], [1], [0, 0, 1, 1], [], []>, precision = #tpu.contract_precision<fp32>} : vector<16x256xf32>, vector<256x384xf32>, vector<16x384xf32> -> vector<16x384xf32>
    %3 = vector.extract_strided_slice %2 {offsets = [0, 0], sizes = [16, 128], strides = [1, 1]} : vector<16x384xf32> to vector<16x128xf32>
    %c6 = arith.constant 6 : index
    %4 = memref.load %arg1[%c6] : memref<51xf32, #tpu.memory_space<smem>>
    %5 = vector.broadcast %4 : f32 to vector<16x128xf32>
    %6 = arith.addf %3, %5 : vector<16x128xf32>
    %cst_3 = arith.constant 0.000000e+00 : f32
    %7 = vector.broadcast %cst_3 : f32 to vector<16x128xf32>
    %8 = arith.maximumf %6, %7 : vector<16x128xf32>
    %9 = vector.extract_strided_slice %2 {offsets = [0, 128], sizes = [16, 128], strides = [1, 1]} : vector<16x384xf32> to vector<16x128xf32>
    %c7 = arith.constant 7 : index
    %10 = memref.load %arg1[%c7] : memref<51xf32, #tpu.memory_space<smem>>
    %11 = vector.broadcast %10 : f32 to vector<16x128xf32>
    %12 = arith.addf %9, %11 : vector<16x128xf32>
    %cst_4 = arith.constant 0.000000e+00 : f32
    %13 = vector.broadcast %cst_4 : f32 to vector<16x128xf32>
    %14 = arith.maximumf %12, %13 : vector<16x128xf32>
    %15 = vector.extract_strided_slice %2 {offsets = [0, 256], sizes = [16, 128], strides = [1, 1]} : vector<16x384xf32> to vector<16x128xf32>
    %c8 = arith.constant 8 : index
    %16 = memref.load %arg1[%c8] : memref<51xf32, #tpu.memory_space<smem>>
    %17 = vector.broadcast %16 : f32 to vector<16x128xf32>
    %18 = arith.addf %15, %17 : vector<16x128xf32>
    %cst_5 = arith.constant 0.000000e+00 : f32
    %19 = vector.broadcast %cst_5 : f32 to vector<16x128xf32>
    %20 = arith.maximumf %18, %19 : vector<16x128xf32>
    %c9 = arith.constant 9 : index
    %21 = memref.load %arg1[%c9] : memref<51xf32, #tpu.memory_space<smem>>
    %22 = vector.broadcast %21 : f32 to vector<16x128xf32>
    %23 = arith.mulf %8, %22 : vector<16x128xf32>
    %c14 = arith.constant 14 : index
    %24 = memref.load %arg1[%c14] : memref<51xf32, #tpu.memory_space<smem>>
    %25 = vector.broadcast %24 : f32 to vector<16x128xf32>
    %26 = arith.mulf %14, %25 : vector<16x128xf32>
    %27 = arith.addf %23, %26 : vector<16x128xf32>
    %c19 = arith.constant 19 : index
    %28 = memref.load %arg1[%c19] : memref<51xf32, #tpu.memory_space<smem>>
    %29 = vector.broadcast %28 : f32 to vector<16x128xf32>
    %30 = arith.mulf %20, %29 : vector<16x128xf32>
    %31 = arith.addf %27, %30 : vector<16x128xf32>
    %c24 = arith.constant 24 : index
    %32 = memref.load %arg1[%c24] : memref<51xf32, #tpu.memory_space<smem>>
    %33 = vector.broadcast %32 : f32 to vector<16x128xf32>
    %34 = arith.addf %31, %33 : vector<16x128xf32>
    %cst_6 = arith.constant 5.000000e-01 : f32
    %35 = vector.broadcast %cst_6 : f32 to vector<16x128xf32>
    %36 = arith.mulf %35, %34 : vector<16x128xf32>
    %37 = math.tanh %36 : vector<16x128xf32>
    %cst_7 = arith.constant 5.000000e-01 : f32
    %38 = vector.broadcast %cst_7 : f32 to vector<16x128xf32>
    %39 = arith.mulf %38, %37 : vector<16x128xf32>
    %cst_8 = arith.constant 5.000000e-01 : f32
    %40 = vector.broadcast %cst_8 : f32 to vector<16x128xf32>
    %41 = arith.addf %39, %40 : vector<16x128xf32>
    %c10 = arith.constant 10 : index
    %42 = memref.load %arg1[%c10] : memref<51xf32, #tpu.memory_space<smem>>
    %43 = vector.broadcast %42 : f32 to vector<16x128xf32>
    %44 = arith.mulf %8, %43 : vector<16x128xf32>
    %c15 = arith.constant 15 : index
    %45 = memref.load %arg1[%c15] : memref<51xf32, #tpu.memory_space<smem>>
    %46 = vector.broadcast %45 : f32 to vector<16x128xf32>
    %47 = arith.mulf %14, %46 : vector<16x128xf32>
    %48 = arith.addf %44, %47 : vector<16x128xf32>
    %c20 = arith.constant 20 : index
    %49 = memref.load %arg1[%c20] : memref<51xf32, #tpu.memory_space<smem>>
    %50 = vector.broadcast %49 : f32 to vector<16x128xf32>
    %51 = arith.mulf %20, %50 : vector<16x128xf32>
    %52 = arith.addf %48, %51 : vector<16x128xf32>
    %c25 = arith.constant 25 : index
    %53 = memref.load %arg1[%c25] : memref<51xf32, #tpu.memory_space<smem>>
    %54 = vector.broadcast %53 : f32 to vector<16x128xf32>
    %55 = arith.addf %52, %54 : vector<16x128xf32>
    %cst_9 = arith.constant 5.000000e-01 : f32
    %56 = vector.broadcast %cst_9 : f32 to vector<16x128xf32>
    %57 = arith.mulf %56, %55 : vector<16x128xf32>
    %58 = math.tanh %57 : vector<16x128xf32>
    %cst_10 = arith.constant 5.000000e-01 : f32
    %59 = vector.broadcast %cst_10 : f32 to vector<16x128xf32>
    %60 = arith.mulf %59, %58 : vector<16x128xf32>
    %cst_11 = arith.constant 5.000000e-01 : f32
    %61 = vector.broadcast %cst_11 : f32 to vector<16x128xf32>
    %62 = arith.addf %60, %61 : vector<16x128xf32>
    %c11 = arith.constant 11 : index
    %63 = memref.load %arg1[%c11] : memref<51xf32, #tpu.memory_space<smem>>
    %64 = vector.broadcast %63 : f32 to vector<16x128xf32>
    %65 = arith.mulf %8, %64 : vector<16x128xf32>
    %c16 = arith.constant 16 : index
    %66 = memref.load %arg1[%c16] : memref<51xf32, #tpu.memory_space<smem>>
    %67 = vector.broadcast %66 : f32 to vector<16x128xf32>
    %68 = arith.mulf %14, %67 : vector<16x128xf32>
    %69 = arith.addf %65, %68 : vector<16x128xf32>
    %c21 = arith.constant 21 : index
    %70 = memref.load %arg1[%c21] : memref<51xf32, #tpu.memory_space<smem>>
    %71 = vector.broadcast %70 : f32 to vector<16x128xf32>
    %72 = arith.mulf %20, %71 : vector<16x128xf32>
    %73 = arith.addf %69, %72 : vector<16x128xf32>
    %c26 = arith.constant 26 : index
    %74 = memref.load %arg1[%c26] : memref<51xf32, #tpu.memory_space<smem>>
    %75 = vector.broadcast %74 : f32 to vector<16x128xf32>
    %76 = arith.addf %73, %75 : vector<16x128xf32>
    %cst_12 = arith.constant 5.000000e-01 : f32
    %77 = vector.broadcast %cst_12 : f32 to vector<16x128xf32>
    %78 = arith.mulf %77, %76 : vector<16x128xf32>
    %79 = math.tanh %78 : vector<16x128xf32>
    %cst_13 = arith.constant 5.000000e-01 : f32
    %80 = vector.broadcast %cst_13 : f32 to vector<16x128xf32>
    %81 = arith.mulf %80, %79 : vector<16x128xf32>
    %cst_14 = arith.constant 5.000000e-01 : f32
    %82 = vector.broadcast %cst_14 : f32 to vector<16x128xf32>
    %83 = arith.addf %81, %82 : vector<16x128xf32>
    %c12 = arith.constant 12 : index
    %84 = memref.load %arg1[%c12] : memref<51xf32, #tpu.memory_space<smem>>
    %85 = vector.broadcast %84 : f32 to vector<16x128xf32>
    %86 = arith.mulf %8, %85 : vector<16x128xf32>
    %c17 = arith.constant 17 : index
    %87 = memref.load %arg1[%c17] : memref<51xf32, #tpu.memory_space<smem>>
    %88 = vector.broadcast %87 : f32 to vector<16x128xf32>
    %89 = arith.mulf %14, %88 : vector<16x128xf32>
    %90 = arith.addf %86, %89 : vector<16x128xf32>
    %c22 = arith.constant 22 : index
    %91 = memref.load %arg1[%c22] : memref<51xf32, #tpu.memory_space<smem>>
    %92 = vector.broadcast %91 : f32 to vector<16x128xf32>
    %93 = arith.mulf %20, %92 : vector<16x128xf32>
    %94 = arith.addf %90, %93 : vector<16x128xf32>
    %c27 = arith.constant 27 : index
    %95 = memref.load %arg1[%c27] : memref<51xf32, #tpu.memory_space<smem>>
    %96 = vector.broadcast %95 : f32 to vector<16x128xf32>
    %97 = arith.addf %94, %96 : vector<16x128xf32>
    %cst_15 = arith.constant 5.000000e-01 : f32
    %98 = vector.broadcast %cst_15 : f32 to vector<16x128xf32>
    %99 = arith.mulf %98, %97 : vector<16x128xf32>
    %100 = math.tanh %99 : vector<16x128xf32>
    %cst_16 = arith.constant 5.000000e-01 : f32
    %101 = vector.broadcast %cst_16 : f32 to vector<16x128xf32>
    %102 = arith.mulf %101, %100 : vector<16x128xf32>
    %cst_17 = arith.constant 5.000000e-01 : f32
    %103 = vector.broadcast %cst_17 : f32 to vector<16x128xf32>
    %104 = arith.addf %102, %103 : vector<16x128xf32>
    %c13 = arith.constant 13 : index
    %105 = memref.load %arg1[%c13] : memref<51xf32, #tpu.memory_space<smem>>
    %106 = vector.broadcast %105 : f32 to vector<16x128xf32>
    %107 = arith.mulf %8, %106 : vector<16x128xf32>
    %c18 = arith.constant 18 : index
    %108 = memref.load %arg1[%c18] : memref<51xf32, #tpu.memory_space<smem>>
    %109 = vector.broadcast %108 : f32 to vector<16x128xf32>
    %110 = arith.mulf %14, %109 : vector<16x128xf32>
    %111 = arith.addf %107, %110 : vector<16x128xf32>
    %c23 = arith.constant 23 : index
    %112 = memref.load %arg1[%c23] : memref<51xf32, #tpu.memory_space<smem>>
    %113 = vector.broadcast %112 : f32 to vector<16x128xf32>
    %114 = arith.mulf %20, %113 : vector<16x128xf32>
    %115 = arith.addf %111, %114 : vector<16x128xf32>
    %c28 = arith.constant 28 : index
    %116 = memref.load %arg1[%c28] : memref<51xf32, #tpu.memory_space<smem>>
    %117 = vector.broadcast %116 : f32 to vector<16x128xf32>
    %118 = arith.addf %115, %117 : vector<16x128xf32>
    %cst_18 = arith.constant 5.000000e-01 : f32
    %119 = vector.broadcast %cst_18 : f32 to vector<16x128xf32>
    %120 = arith.mulf %119, %118 : vector<16x128xf32>
    %121 = math.tanh %120 : vector<16x128xf32>
    %cst_19 = arith.constant 5.000000e-01 : f32
    %122 = vector.broadcast %cst_19 : f32 to vector<16x128xf32>
    %123 = arith.mulf %122, %121 : vector<16x128xf32>
    %cst_20 = arith.constant 5.000000e-01 : f32
    %124 = vector.broadcast %cst_20 : f32 to vector<16x128xf32>
    %125 = arith.addf %123, %124 : vector<16x128xf32>
    %c29 = arith.constant 29 : index
    %126 = memref.load %arg1[%c29] : memref<51xf32, #tpu.memory_space<smem>>
    %127 = vector.broadcast %126 : f32 to vector<16x128xf32>
    %128 = arith.mulf %41, %127 : vector<16x128xf32>
    %c32 = arith.constant 32 : index
    %129 = memref.load %arg1[%c32] : memref<51xf32, #tpu.memory_space<smem>>
    %130 = vector.broadcast %129 : f32 to vector<16x128xf32>
    %131 = arith.mulf %62, %130 : vector<16x128xf32>
    %132 = arith.addf %128, %131 : vector<16x128xf32>
    %c35 = arith.constant 35 : index
    %133 = memref.load %arg1[%c35] : memref<51xf32, #tpu.memory_space<smem>>
    %134 = vector.broadcast %133 : f32 to vector<16x128xf32>
    %135 = arith.mulf %83, %134 : vector<16x128xf32>
    %136 = arith.addf %132, %135 : vector<16x128xf32>
    %c38 = arith.constant 38 : index
    %137 = memref.load %arg1[%c38] : memref<51xf32, #tpu.memory_space<smem>>
    %138 = vector.broadcast %137 : f32 to vector<16x128xf32>
    %139 = arith.mulf %104, %138 : vector<16x128xf32>
    %140 = arith.addf %136, %139 : vector<16x128xf32>
    %c41 = arith.constant 41 : index
    %141 = memref.load %arg1[%c41] : memref<51xf32, #tpu.memory_space<smem>>
    %142 = vector.broadcast %141 : f32 to vector<16x128xf32>
    %143 = arith.mulf %125, %142 : vector<16x128xf32>
    %144 = arith.addf %140, %143 : vector<16x128xf32>
    %c44 = arith.constant 44 : index
    %145 = memref.load %arg1[%c44] : memref<51xf32, #tpu.memory_space<smem>>
    %146 = vector.broadcast %145 : f32 to vector<16x128xf32>
    %147 = arith.addf %144, %146 : vector<16x128xf32>
    %cst_21 = arith.constant 5.000000e-01 : f32
    %148 = vector.broadcast %cst_21 : f32 to vector<16x128xf32>
    %149 = arith.mulf %148, %147 : vector<16x128xf32>
    %150 = math.tanh %149 : vector<16x128xf32>
    %cst_22 = arith.constant 5.000000e-01 : f32
    %151 = vector.broadcast %cst_22 : f32 to vector<16x128xf32>
    %152 = arith.mulf %151, %150 : vector<16x128xf32>
    %cst_23 = arith.constant 5.000000e-01 : f32
    %153 = vector.broadcast %cst_23 : f32 to vector<16x128xf32>
    %154 = arith.addf %152, %153 : vector<16x128xf32>
    %c30 = arith.constant 30 : index
    %155 = memref.load %arg1[%c30] : memref<51xf32, #tpu.memory_space<smem>>
    %156 = vector.broadcast %155 : f32 to vector<16x128xf32>
    %157 = arith.mulf %41, %156 : vector<16x128xf32>
    %c33 = arith.constant 33 : index
    %158 = memref.load %arg1[%c33] : memref<51xf32, #tpu.memory_space<smem>>
    %159 = vector.broadcast %158 : f32 to vector<16x128xf32>
    %160 = arith.mulf %62, %159 : vector<16x128xf32>
    %161 = arith.addf %157, %160 : vector<16x128xf32>
    %c36 = arith.constant 36 : index
    %162 = memref.load %arg1[%c36] : memref<51xf32, #tpu.memory_space<smem>>
    %163 = vector.broadcast %162 : f32 to vector<16x128xf32>
    %164 = arith.mulf %83, %163 : vector<16x128xf32>
    %165 = arith.addf %161, %164 : vector<16x128xf32>
    %c39 = arith.constant 39 : index
    %166 = memref.load %arg1[%c39] : memref<51xf32, #tpu.memory_space<smem>>
    %167 = vector.broadcast %166 : f32 to vector<16x128xf32>
    %168 = arith.mulf %104, %167 : vector<16x128xf32>
    %169 = arith.addf %165, %168 : vector<16x128xf32>
    %c42 = arith.constant 42 : index
    %170 = memref.load %arg1[%c42] : memref<51xf32, #tpu.memory_space<smem>>
    %171 = vector.broadcast %170 : f32 to vector<16x128xf32>
    %172 = arith.mulf %125, %171 : vector<16x128xf32>
    %173 = arith.addf %169, %172 : vector<16x128xf32>
    %c45 = arith.constant 45 : index
    %174 = memref.load %arg1[%c45] : memref<51xf32, #tpu.memory_space<smem>>
    %175 = vector.broadcast %174 : f32 to vector<16x128xf32>
    %176 = arith.addf %173, %175 : vector<16x128xf32>
    %cst_24 = arith.constant 5.000000e-01 : f32
    %177 = vector.broadcast %cst_24 : f32 to vector<16x128xf32>
    %178 = arith.mulf %177, %176 : vector<16x128xf32>
    %179 = math.tanh %178 : vector<16x128xf32>
    %cst_25 = arith.constant 5.000000e-01 : f32
    %180 = vector.broadcast %cst_25 : f32 to vector<16x128xf32>
    %181 = arith.mulf %180, %179 : vector<16x128xf32>
    %cst_26 = arith.constant 5.000000e-01 : f32
    %182 = vector.broadcast %cst_26 : f32 to vector<16x128xf32>
    %183 = arith.addf %181, %182 : vector<16x128xf32>
    %c31 = arith.constant 31 : index
    %184 = memref.load %arg1[%c31] : memref<51xf32, #tpu.memory_space<smem>>
    %185 = vector.broadcast %184 : f32 to vector<16x128xf32>
    %186 = arith.mulf %41, %185 : vector<16x128xf32>
    %c34 = arith.constant 34 : index
    %187 = memref.load %arg1[%c34] : memref<51xf32, #tpu.memory_space<smem>>
    %188 = vector.broadcast %187 : f32 to vector<16x128xf32>
    %189 = arith.mulf %62, %188 : vector<16x128xf32>
    %190 = arith.addf %186, %189 : vector<16x128xf32>
    %c37 = arith.constant 37 : index
    %191 = memref.load %arg1[%c37] : memref<51xf32, #tpu.memory_space<smem>>
    %192 = vector.broadcast %191 : f32 to vector<16x128xf32>
    %193 = arith.mulf %83, %192 : vector<16x128xf32>
    %194 = arith.addf %190, %193 : vector<16x128xf32>
    %c40 = arith.constant 40 : index
    %195 = memref.load %arg1[%c40] : memref<51xf32, #tpu.memory_space<smem>>
    %196 = vector.broadcast %195 : f32 to vector<16x128xf32>
    %197 = arith.mulf %104, %196 : vector<16x128xf32>
    %198 = arith.addf %194, %197 : vector<16x128xf32>
    %c43 = arith.constant 43 : index
    %199 = memref.load %arg1[%c43] : memref<51xf32, #tpu.memory_space<smem>>
    %200 = vector.broadcast %199 : f32 to vector<16x128xf32>
    %201 = arith.mulf %125, %200 : vector<16x128xf32>
    %202 = arith.addf %198, %201 : vector<16x128xf32>
    %c46 = arith.constant 46 : index
    %203 = memref.load %arg1[%c46] : memref<51xf32, #tpu.memory_space<smem>>
    %204 = vector.broadcast %203 : f32 to vector<16x128xf32>
    %205 = arith.addf %202, %204 : vector<16x128xf32>
    %cst_27 = arith.constant 5.000000e-01 : f32
    %206 = vector.broadcast %cst_27 : f32 to vector<16x128xf32>
    %207 = arith.mulf %206, %205 : vector<16x128xf32>
    %208 = math.tanh %207 : vector<16x128xf32>
    %cst_28 = arith.constant 5.000000e-01 : f32
    %209 = vector.broadcast %cst_28 : f32 to vector<16x128xf32>
    %210 = arith.mulf %209, %208 : vector<16x128xf32>
    %cst_29 = arith.constant 5.000000e-01 : f32
    %211 = vector.broadcast %cst_29 : f32 to vector<16x128xf32>
    %212 = arith.addf %210, %211 : vector<16x128xf32>
    %c47 = arith.constant 47 : index
    %213 = memref.load %arg1[%c47] : memref<51xf32, #tpu.memory_space<smem>>
    %214 = vector.broadcast %213 : f32 to vector<16x128xf32>
    %215 = arith.mulf %154, %214 : vector<16x128xf32>
    %c48 = arith.constant 48 : index
    %216 = memref.load %arg1[%c48] : memref<51xf32, #tpu.memory_space<smem>>
    %217 = vector.broadcast %216 : f32 to vector<16x128xf32>
    %218 = arith.mulf %183, %217 : vector<16x128xf32>
    %219 = arith.addf %215, %218 : vector<16x128xf32>
    %c49 = arith.constant 49 : index
    %220 = memref.load %arg1[%c49] : memref<51xf32, #tpu.memory_space<smem>>
    %221 = vector.broadcast %220 : f32 to vector<16x128xf32>
    %222 = arith.mulf %212, %221 : vector<16x128xf32>
    %223 = arith.addf %219, %222 : vector<16x128xf32>
    %c50 = arith.constant 50 : index
    %224 = memref.load %arg1[%c50] : memref<51xf32, #tpu.memory_space<smem>>
    %225 = vector.broadcast %224 : f32 to vector<16x128xf32>
    %226 = arith.addf %223, %225 : vector<16x128xf32>
    %c0_30 = arith.constant 0 : index
    %c0_31 = arith.constant 0 : index
    %227 = vector.load %arg4[%c0_30, %c0_31] : memref<16x128xf32, #tpu.memory_space<vmem>>, vector<16x128xf32>
    tpu.vector_store %arg4[%c0_30, %c0_31], %226 {strides = array<i32>} : memref<16x128xf32, #tpu.memory_space<vmem>>, vector<16x128xf32>,
    return
  }
  func.func @transform_0(%arg0: i32) -> i32 {
    %c0_i32 = arith.constant 0 : i32
    %c0_i32_0 = arith.constant 0 : i32
    return %c0_i32 : i32
  }
  func.func @transform_1(%arg0: i32) -> (i32, i32) {
    %c0_i32 = arith.constant 0 : i32
    %c0_i32_0 = arith.constant 0 : i32
    return %arg0, %c0_i32 : i32, i32
  }
  func.func @transform_2(%arg0: i32) -> (i32, i32) {
    %c0_i32 = arith.constant 0 : i32
    %c0_i32_0 = arith.constant 0 : i32
    %c0_i32_1 = arith.constant 0 : i32
    return %c0_i32, %c0_i32_0 : i32, i32
  }
  func.func @transform_3(%arg0: i32) -> (i32, i32) {
    %c0_i32 = arith.constant 0 : i32
    %c0_i32_0 = arith.constant 0 : i32
    return %arg0, %c0_i32 : i32, i32
  }
}

</mosaic_0001>

<bundles_post_ra>
// kernel: tpu_custom_call.1
= control target key start
LH: loop header
LB: loop body
LE: loop exit
PB: predicated region body
PF: predicated region fallthrough
CT: control target
= control target key end

     0   :  { %s5923_s0 = inlined_call_operand.hbm [shape: f32[51], index: 0, kind: input, shape index: {}]   ;;  %s5924_s1 = inlined_call_operand.hbm [shape: f32[32,256], index: 1, kind: input, shape index: {}]   ;;  %s5925_s2 = inlined_call_operand.hbm [shape: f32[256,384], index: 2, kind: input, shape index: {}]   ;;  %s5926_s3 = inlined_call_operand.hbm [shape: f32[32,128], index: 3, kind: output, shape index: {}]  }
   0x1   :  { %6239 = sst [smem:[#allocation140_spill]] %s5923_s0 }
   0x2   :  { %6240 = sst [smem:[#allocation141_spill]] %s5924_s1 }
   0x3   :  { %6241 = sst [smem:[#allocation142_spill]] %s5925_s2 }
   0x4   :  { %8 = vsyncpa [#allocation5], 0 }
   0x5   :  { %9 = vsyncpa [#allocation3], 0 }
   0x6   :  { %11 = vsyncpa [#allocation3 + $0x1], 0 }
   0x7   :  { %12 = vsyncpa [#allocation8], 0 }
   0x8   :  { %13 = vsyncpa [#allocation4], 0 }
   0x9   :  { %15 = vsyncpa [#allocation4 + $0x1], 0  ;;  %s4165_s12 = smov 0   ;;  %s4167_s13 = smov 0  }
   0xa   :  { %s4169_s14 = smov 0   ;;  %s4171_s15 = smov 0  }
   0xb LB: > { %6242 = sst [smem:[#allocation14_spill]] %s4125_s13  ;;  %s4186_s16 = sadd.s32 4294967295, %s4133_s15   ;;  %s4133_s15 = sphi %s4171_s15, %s6668_s15   ;;  %s4129_s14 = sphi %s4169_s14, %s6667_s14   ;;  %s4125_s13 = sphi %s4167_s13, %s6666_s13   ;;  %s4121_s12 = sphi %s4165_s12, %s6665_s12  }
   0xc   : > { %6243 = sst [smem:[#allocation15_spill]] %s4129_s14  ;;  %s2992_s17 = sadd.s32 4294967294, %s4133_s15  }
   0xd   : > { %s4190_s18 = sadd.s32 1, %s4133_s15   ;;  %s49_s19 = sadd.s32 1, %s4129_s14 }
   0xe   : > { %s46_s20 = ssub.s32 %s4133_s15, %s4190_s18  ;;  %p56_p0 = scmp.ne.s32.totalorder %s4129_s14, %s4125_s13 }
   0xf   : > { %p47_p1 = scmp.eq.s32.totalorder %s46_s20, 0  ;;  %p57_p2 = scmp.eq.s32.totalorder %s4133_s15, 0 }
  0x10   : > { %p62_p3 = scmp.ne.s32.totalorder %s4125_s13, %s4121_s12  ;;  %p5927_p4 = scmp.eq.s32.totalorder %s4186_s16, 0 }
  0x11   : > { %s4202_s21 = scalar_select %p47_p1, %s4129_s14, %s49_s19  }
  0x12   : > { %p4204_p5 = por %p57_p2, %p56_p0  ;;  %p4210_p6 = por %p5927_p4, %p62_p3 }
  0x13   : > { %6244 = sst [smem:[#allocation16_spill]] %s4202_s21  ;;  %p107_p7 = scmp.eq.s32.totalorder %s4186_s16, 1 }
  0x14   : > { %s6245_s22 = scalar_select %p4204_p5, 1, 0 }
  0x15   : > { %s6246_s23 = scalar_select %p4210_p6, 1, 0 }
  0x16   : > { %p113_p8 = scmp.eq.s32.totalorder %s2992_s17, 1  ;;  %p2993_p9 = scmp.ge.s32.totalorder %s4133_s15, 1 }
  0x17   : > { %p120_p10 = scmp.lt.s32.totalorder %s4133_s15, 3  ;;  %p4217_p11 = por %p107_p7, %p56_p0 }
  0x18   : > { %p4221_p12 = por %p113_p8, %p62_p3  ;;  %p3912_p4 = scmp.lt.s32.totalorder %s4133_s15, 2 }
  0x19   : > { %s6247_s24 = scalar_select %p4217_p11, 1, 0 }
  0x1a   : > { %s6248_s25 = scalar_select %p4221_p12, 1, 0 }
  0x1b   : > { %p4225_p13 = pnand %p2993_p9, %p120_p10  ;;  %p6250_p6 = scmp.eq.s32.totalorder %s4186_s16, 0 }
  0x1c   : > { %p6252_p0 = scmp.ne.s32.totalorder %s6245_s22, 0  ;;  %s4135_s29 = smov [#allocation7]  }
  0x1d   : > { %s6249_s26 = scalar_select %p4225_p13, 1, 0 }
  0x1e   : > { %p3895_p2 = pneg %p4225_p13  ;;  %p4241_p3 = pnand %p3912_p4, %p6252_p0 }
  0x1f   : > { %s141_s30 = sshll.u32 %s4135_s29, 4  ;;  %s6254_s0 = sld [smem:[#allocation140_spill]]  ;;  %s142_s30 = int_to_ptr.vmem [resolvable:$true] %s141_s30 }
  0x20   : > { %p4235_p5 = pnand %p3895_p2, %p6250_p6 }
  0x21   : > { %s6253_s28 = scalar_select %p4241_p3, 1, 0 }
  0x22   : > { %p3990_p7 = pneg %p4235_p5 }
  0x25   : > { %s3988_s6 = scalar_lea.hbm %s6254_s0, 16 }
  0x26   : > { %p3989_p6 = scmp.ne.s32.totalorder %s6254_s0, %s3988_s6  ;;  %p3995_p4 = scmp.lt.u32.totalorder %s3988_s6, %s6254_s0 }
  0x28   : > { %p3991_p8 = pnand %p3990_p7, %p3989_p6 }
  0x2a   : > { %p3992_p9 = pneg %p3991_p8 }
  0x2c   : > { %p3997_p10 = pnand %p3995_p4, %p3992_p9 }
  0x2e   : > { %4000 = shalt.err (!%p3997_p10)
}
  0x2f   : > { %s4136_s11 = smov [#allocation2]   ;;  %s155_s20 = sand.u32 1, %s4129_s14  }
  0x30   : > { %3898 = dma.hbm_to_smem (!%p4235_p5), %s6254_s0, 16, %s4136_s11, [#allocation5]  }
  0x31   : > { %s6255_s2 = sld [smem:[#allocation142_spill]] }
  0x37   : > { %s4001_s4 = scalar_lea.hbm %s6255_s2, 12288 }
  0x38   : > { %p4002_p2 = scmp.ne.s32.totalorder %s6255_s2, %s4001_s4  ;;  %p4008_p8 = scmp.lt.u32.totalorder %s4001_s4, %s6255_s2 }
  0x3a   : > { %p4004_p0 = pnand %p4002_p2, %p3990_p7 }
  0x3c   : > { %p4005_p6 = pneg %p4004_p0 }
  0x3e   : > { %p4010_p9 = pnand %p4008_p8, %p4005_p6 }
  0x40   : > { %4013 = shalt.err (!%p4010_p9)
}
  0x41   : > { %s4014_s9 = scalar_lea.vmem %s142_s30, 12288  ;;  %p4022_p12 = scmp.lt.s32.totalorder %s142_s30, %s142_s30 }
  0x42   : > { %p4015_p4 = scmp.ne.s32.totalorder %s142_s30, %s4014_s9  ;;  %p4023_p11 = scmp.lt.s32.totalorder %s4014_s9, %s4014_s9 }
  0x44   : > { %p4017_p10 = pnand %p4015_p4, %p3990_p7  ;;  %p4024_p13 = por %p4023_p11, %p4022_p12 }
  0x46   : > { %p4018_p1 = pneg %p4017_p10 }
  0x48   : > { %p4025_p3 = pnand %p4024_p13, %p4018_p1 }
  0x4a   : > { %4028 = shalt.err (!%p4025_p3)
}
  0x4b   : > { %s4137_s10 = smov 384   ;;  %s4138_s11 = smov 24  }
  0x4c   : > { %3901 = dma.hbm_to_vmem [thread:$0]  (!%p4235_p5), %s6255_s2, 12288, %s142_s30, [#allocation8], %s4137_s10, %s4137_s10, %s4138_s11  }
  0x4d   : > { %s2997_s22 = sshll.u32 %s155_s20, 5  ;;  %s3057_s29 = sshll.u32 %s4133_s15, 9 }
  0x4e   : > { %s6256_s1 = sld [smem:[#allocation141_spill]]  ;;  %s159_s6 = scalar_lea.vmem [#allocation6], %s2997_s22 }
  0x4f   : > { %s167_s8 = sshll.u32 %s159_s6, 4  ;;  %s4293_s27 = scalar_lea.sflag [#allocation3], %s155_s20  ;;  %s4291_s8 = int_to_ptr.vmem [resolvable:$true] %s167_s8 }
  0x50   : > { %p6257_p5 = scmp.ne.s32.totalorder %s6253_s28, 0 }
  0x52   : > { %p4031_p12 = pneg %p6257_p5 }
  0x54   : > { %s4289_s7 = scalar_lea.hbm %s6256_s1, %s3057_s29  ;;  %s4034_s11 = scalar_lea.hbm %s6256_s1, 1024 }
  0x55   : > { %s4029_s9 = scalar_lea.hbm %s4289_s7, 512  ;;  %p4035_p3 = scmp.lt.u32.totalorder %s4289_s7, %s6256_s1 }
  0x56   : > { %p4030_p11 = scmp.ne.s32.totalorder %s4289_s7, %s4029_s9  ;;  %p4036_p7 = scmp.lt.u32.totalorder %s4034_s11, %s4029_s9 }
  0x57   : > { %p4038_p0 = scmp.lt.u32.totalorder %s4029_s9, %s4289_s7 }
  0x58   : > { %p4032_p13 = pnand %p4031_p12, %p4030_p11  ;;  %p4037_p2 = por %p4036_p7, %p4035_p3 }
  0x5a   : > { %p4033_p1 = pneg %p4032_p13  ;;  %p4039_p6 = por %p4038_p0, %p4037_p2 }
  0x5c   : > { %p4040_p8 = pnand %p4039_p6, %p4033_p1 }
  0x5e   : > { %4043 = shalt.err (!%p4040_p8)
}
  0x5f   : > { %s4044_s20 = scalar_lea.vmem %s4291_s8, 512  ;;  %s4139_s22 = smov [#allocation6]  }
  0x60   : > { %p4045_p9 = scmp.ne.s32.totalorder %s4291_s8, %s4044_s20  ;;  %s4049_s29 = sshll.u32 %s4139_s22, 4  ;;  %s4050_s29 = int_to_ptr.vmem [resolvable:$false] %s4049_s29 }
  0x61   : > { %s4051_s4 = scalar_lea.vmem %s4050_s29, 1024  ;;  %p4052_p11 = scmp.lt.s32.totalorder %s4291_s8, %s4050_s29 }
  0x62   : > { %p4047_p4 = pnand %p4045_p9, %p4031_p12  ;;  %p4053_p13 = scmp.lt.s32.totalorder %s4051_s4, %s4044_s20 }
  0x64   : > { %p4048_p10 = pneg %p4047_p4  ;;  %p4054_p3 = por %p4053_p13, %p4052_p11 }
  0x66   : > { %p4055_p7 = pnand %p4054_p3, %p4048_p10 }
  0x68   : > { %4058 = shalt.err (!%p4055_p7)
}
  0x69   : > { %s4140_s5 = smov 256   ;;  %s4141_s6 = smov 16  }
  0x6a   : > { %3905 = dma.hbm_to_vmem [thread:$0]  (!%p6257_p5), %s4289_s7, 512, %s4291_s8, %s4293_s27, %s4140_s5, %s4140_s5, %s4141_s6  }
  0x6b   : > { %p6258_p12 = scmp.ne.s32.totalorder %s6249_s26, 0 }
  0x6d   : > { %179 = sbr.rel (%p6258_p12) target bundleno = 803 (0x323), region = 32 }
  0x74   : > { %p6259_p1 = scmp.eq.s32.totalorder %s4186_s16, 0 }
  0x76   : > { %4104 = dma.done.wait (%p6259_p1), [#allocation5], 16   ;;  %p6260_p2 = pmov %p6259_p1 }
  0x77   : > { %s4328_s9 = sand.u32 1, %s4125_s13   ;;  %p6261_p5 = scmp.ne.s32.totalorder %s6246_s23, 0 }
  0x78   : > { %4106 = vsyncadd (%p6260_p2), [#allocation5], 4294967280  ;;  %s3003_s30 = sshll.u32 %s4328_s9, 5  ;;  %s186_s10 = scalar_lea.sflag [#allocation3], %s4328_s9 }
  0x79   : > { %s4332_s11 = scalar_lea.vmem [#allocation6], %s3003_s30 }
  0x7a   : > { %4108 = dma.done.wait (%p6261_p5), %s186_s10, 512  }
  0x7b   : > { %4110 = vsyncadd (%p6261_p5), %s186_s10, 4294966784  ;;  %p6262_p0 = pmov %p6259_p1 }
  0x7d   : > { %4112 = dma.done.wait (%p6262_p0), [#allocation8], 12288   ;;  %p6263_p6 = pmov %p6262_p0 }
  0x7f   : > { %4114 = vsyncadd (%p6263_p6), [#allocation8], 4294955008 }
  0x80   : > { %198 = sfence }
  0x81   : > { %v224_v0 = vld [vmem:[#allocation7 + $0x8] sm:$0xff]  ;;  %v227_v1 = vld [vmem:[#allocation7 + $0x20] sm:$0xff]  ;;  %v226_v5 = vld [vmem:[#allocation7 + $0x18] sm:$0xff]  ;;  %s5594_s23 = sld [smem:[#allocation2 + $0x8]]  ;;  %s5596_s26 = sld [smem:[#allocation2 + $0x13]] }
  0x82   : > { %v223_v2 = vld [vmem:[#allocation7] sm:$0xff]  ;;  %v319_v3 = vand.u32 4294901760, %v224_v0  ;;  %v323_v4 = vand.u32 4294901760, %v227_v1  ;;  %v230_v7 = vld [vmem:[#allocation7 + $0x38] sm:$0xff]  ;;  %v233_v8 = vld [vmem:[#allocation7 + $0x50] sm:$0xff]  ;;  %v325_v9 = vand.u32 4294901760, %v226_v5 }
  0x83   : > { %v321_v6 = vand.u32 4294901760, %v223_v2  ;;  %v327_v10 = vand.u32 4294901760, %v230_v7  ;;  %v331_v11 = vand.u32 4294901760, %v233_v8  ;;  %v229_v12 = vld [vmem:[#allocation7 + $0x30] sm:$0xff]  ;;  %v232_v13 = vld [vmem:[#allocation7 + $0x48] sm:$0xff]  ;;  %v239_v19 = vld [vmem:[#allocation7 + $0x80] sm:$0xff] }
  0x84   : > { %v4342_v14 = vpack.c.bf16 %v323_v4, %v319_v3  ;;  %v329_v16 = vand.u32 4294901760, %v229_v12  ;;  %v333_v17 = vand.u32 4294901760, %v232_v13  ;;  %v236_v18 = vld [vmem:[#allocation7 + $0x68] sm:$0xff]  ;;  %v4348_v21 = vsub.f32 %v226_v5, %v325_v9  ;;  %v235_v23 = vld [vmem:[#allocation7 + $0x60] sm:$0xff]  ;;  %v238_v24 = vld [vmem:[#allocation7 + $0x78] sm:$0xff]  ;;  %s5598_s28 = sld [smem:[#allocation2 + $0x14]] }
  0x85   : > { %v4344_v15 = vsub.f32 %v223_v2, %v321_v6  ;;  %v4346_v20 = vpack.c.bf16 %v325_v9, %v321_v6  ;;  %v4350_v22 = vpack.c.bf16 %v331_v11, %v327_v10  ;;  %v4353_v25 = vsub.f32 %v230_v7, %v327_v10  ;;  %v242_v36 = vld [vmem:[#allocation7 + $0x98] sm:$0xff]  ;;  %v245_v40 = vld [vmem:[#allocation7 + $0xb0] sm:$0xff]  ;;  %v244_v54 = vld [vmem:[#allocation7 + $0xa8] sm:$0xff]  ;;  %s5600_s7 = sld [smem:[#allocation2 + $0x15]]  ;;  %s5602_s8 = sld [smem:[#allocation2 + $0x16]] }
  0x86   : > { %6264 = vst [vmem:[#allocation17_spill] sm:$0xff] %v4342_v14  ;;  %6267 = vst [vmem:[#allocation20_spill] sm:$0xff] %v4348_v21  ;;  %3288 = vmatprep.subr.bf16.mxu1 %v4342_v14  ;;  %v4355_v26 = vsub.f32 %v233_v8, %v331_v11  ;;  %v4357_v27 = vpack.c.bf16 %v333_v17, %v329_v16  ;;  %v335_v28 = vand.u32 4294901760, %v236_v18  ;;  %v339_v29 = vand.u32 4294901760, %v239_v19  ;;  %v241_v53 = vld [vmem:[#allocation7 + $0x90] sm:$0xff]  ;;  %v247_v9 = vld [vmem:[#allocation7 + $0xc0] sm:$0xff] }
  0x87   : > { %6265 = vst [vmem:[#allocation18_spill] sm:$0xff] %v4344_v15  ;;  %6266 = vst [vmem:[#allocation19_spill] sm:$0xff] %v4346_v20  ;;  %3290 = vmatpush1.bf16.msra.mxu1 %v4346_v20  ;;  %v4360_v30 = vsub.f32 %v224_v0, %v319_v3  ;;  %v4362_v31 = vsub.f32 %v227_v1, %v323_v4  ;;  %v337_v32 = vand.u32 4294901760, %v235_v23  ;;  %v341_v33 = vand.u32 4294901760, %v238_v24  ;;  %v248_v3 = vld [vmem:[#allocation7 + $0xc8] sm:$0xff]  ;;  %v251_v4 = vld [vmem:[#allocation7 + $0xe0] sm:$0xff] }
  0x88   : > { %6268 = vst [vmem:[#allocation21_spill] sm:$0xff] %v4350_v22  ;;  %6269 = vst [vmem:[#allocation22_spill] sm:$0xff] %v4353_v25  ;;  %3292 = vmatprep.subr.bf16.mxu1 %v4350_v22  ;;  %v5946_v34 = vand.u32 4294901760, %v4344_v15  ;;  %v5944_v35 = vand.u32 4294901760, %v4348_v21  ;;  %v4367_v37 = vsub.f32 %v229_v12, %v329_v16  ;;  %v4369_v38 = vpack.c.bf16 %v339_v29, %v335_v28  ;;  %s5604_s27 = sld [smem:[#allocation2 + $0x17]]  ;;  %s5606_s17 = sld [smem:[#allocation2 + $0x6]] }
  0x89   : > { %6270 = vst [vmem:[#allocation23_spill] sm:$0xff] %v4355_v26  ;;  %6271 = vst [vmem:[#allocation24_spill] sm:$0xff] %v4357_v27  ;;  %v5949_v39 = vand.u32 4294901760, %v4360_v30  ;;  %v4372_v41 = vsub.f32 %v232_v13, %v333_v17  ;;  %v4374_v42 = vsub.f32 %v236_v18, %v335_v28  ;;  %v5948_v43 = vand.u32 4294901760, %v4362_v31  ;;  %s5608_s19 = sld [smem:[#allocation2 + $0x9]]  ;;  %s5610_s20 = sld [smem:[#allocation2 + $0x7]] }
  0x8a   : > { %6272 = vst [vmem:[#allocation25_spill] sm:$0xff] %v4360_v30  ;;  %6273 = vst [vmem:[#allocation26_spill] sm:$0xff] %v4362_v31  ;;  %v4377_v44 = vpack.c.bf16 %v341_v33, %v337_v32  ;;  %v489_v46 = vsub.f32 %v4344_v15, %v5946_v34  ;;  %v501_v47 = vsub.f32 %v4348_v21, %v5944_v35  ;;  %v343_v48 = vand.u32 4294901760, %v242_v36  ;;  %v269_v35 = vld [vmem:[#allocation7 + $0x170] sm:$0xff]  ;;  %s5612_s22 = sld [smem:[#allocation2 + $0xa]]  ;;  %s5614_s29 = sld [smem:[#allocation2 + $0xb]] }
  0x8b   : > { %6274 = vst [vmem:[#allocation27_spill] sm:$0xff] %v4367_v37  ;;  %6275 = vst [vmem:[#allocation28_spill] sm:$0xff] %v4369_v38  ;;  %3294 = vmatpush1.bf16.msra.mxu1 %v4357_v27  ;;  %v483_v45 = vsub.f32 %v4360_v30, %v5949_v39  ;;  %v495_v49 = vsub.f32 %v4362_v31, %v5948_v43  ;;  %v347_v50 = vand.u32 4294901760, %v245_v40  ;;  %v5943_v51 = vand.u32 4294901760, %v4353_v25  ;;  %v287_v27 = vld [vmem:[#allocation7 + $0x200] sm:$0xff]  ;;  %s5616_s4 = sld [smem:[#allocation2 + $0xc]] }
  0x8c   : > { %6276 = vst [vmem:[#allocation29_spill] sm:$0xff] %v4372_v41  ;;  %6277 = vst [vmem:[#allocation30_spill] sm:$0xff] %v4374_v42  ;;  %3296 = vmatprep.subr.bf16.mxu1 %v4369_v38  ;;  %v5941_v52 = vand.u32 4294901760, %v4355_v26  ;;  %v4395_v55 = vsub.f32 %v239_v19, %v339_v29  ;;  %v490_v57 = vand.u32 4294901760, %v489_v46  ;;  %v502_v58 = vand.u32 4294901760, %v501_v47  ;;  %s5618_s5 = sld [smem:[#allocation2 + $0xd]] }
  0x8d   : > { %6278 = vst [vmem:[#allocation31_spill] sm:$0xff] %v4377_v44  ;;  %v484_v56 = vand.u32 4294901760, %v483_v45  ;;  %v496_v59 = vand.u32 4294901760, %v495_v49  ;;  %v4397_v60 = vsub.f32 %v235_v23, %v337_v32  ;;  %v4399_v61 = vpack.c.bf16 %v347_v50, %v343_v48  ;;  %v250_v23 = vld [vmem:[#allocation7 + $0xd8] sm:$0xff]  ;;  %s5620_s6 = sld [smem:[#allocation2 + $0xe]]  ;;  %s5622_s30 = sld [smem:[#allocation2 + $0xf]] }
  0x8e   : > { %6279 = vst [vmem:[#allocation32_spill] sm:$0xff] %v4395_v55  ;;  %v507_v62 = vsub.f32 %v4353_v25, %v5943_v51  ;;  %v3353_v63 = vpack.c.bf16 %v502_v58, %v490_v57  ;;  %v519_v0 = vsub.f32 %v4355_v26, %v5941_v52  ;;  %v345_v1 = vand.u32 4294901760, %v241_v53  ;;  %v254_v57 = vld [vmem:[#allocation7 + $0xf8] sm:$0xff]  ;;  %v257_v58 = vld [vmem:[#allocation7 + $0x110] sm:$0xff]  ;;  %s5624_s10 = sld [smem:[#allocation2 + $0x10]]  ;;  %s5631_s1 = sld [smem:[#allocation2 + $0x12]] }
  0x8f   : > { %6280 = vst [vmem:[#allocation33_spill] sm:$0xff] %v4397_v60  ;;  %6281 = vst [vmem:[#allocation34_spill] sm:$0xff] %v4399_v61  ;;  %3298 = vmatpush1.bf16.msra.mxu1 %v4377_v44  ;;  %v349_v2 = vand.u32 4294901760, %v244_v54  ;;  %v3351_v5 = vpack.c.bf16 %v496_v59, %v484_v56  ;;  %v5939_v7 = vand.u32 4294901760, %v4367_v37  ;;  %v5938_v8 = vand.u32 4294901760, %v4372_v41  ;;  %v266_v51 = vld [vmem:[#allocation7 + $0x158] sm:$0xff] }
  0x90   : > { %3300 = vmatprep.subr.bf16.mxu1 %v4399_v61  ;;  %v508_v6 = vand.u32 4294901760, %v507_v62  ;;  %v4411_v10 = vsub.f32 %v238_v24, %v341_v33  ;;  %v4413_v11 = vsub.f32 %v242_v36, %v343_v48  ;;  %v520_v12 = vand.u32 4294901760, %v519_v0  ;;  %v253_v62 = vld [vmem:[#allocation7 + $0xf0] sm:$0xff]  ;;  %s5629_s0 = sld [smem:[#allocation2 + $0x18]]  ;;  %s5633_s2 = sld [smem:[#allocation2 + $0x19]] }
  0x91   : > { %v4415_v13 = vpack.c.bf16 %v349_v2, %v345_v1  ;;  %3352 = vmatprep.subr.bf16.mxu0 %v3351_v5  ;;  %v513_v16 = vsub.f32 %v4367_v37, %v5939_v7  ;;  %v525_v17 = vsub.f32 %v4372_v41, %v5938_v8  ;;  %v351_v18 = vand.u32 4294901760, %v248_v3  ;;  %s5635_s21 = sld [smem:[#allocation2 + $0x1a]]  ;;  %s5637_s14 = sld [smem:[#allocation2 + $0x1b]] }
  0x92   : > { %6282 = vst [vmem:[#allocation35_spill] sm:$0xff] %v4411_v10  ;;  %6283 = vst [vmem:[#allocation36_spill] sm:$0xff] %v4413_v11  ;;  %v355_v19 = vand.u32 4294901760, %v251_v4  ;;  %3354 = vmatpush1.bf16.msra.mxu0 %v3353_v63  ;;  %v3355_v24 = vpack.c.bf16 %v520_v12, %v508_v6  ;;  %v5936_v28 = vand.u32 4294901760, %v4374_v42  ;;  %v5934_v29 = vand.u32 4294901760, %v4395_v55  ;;  %s5639_s13 = sld [smem:[#allocation2 + $0x1c]] }
  0x93   : > { %6284 = vst [vmem:[#allocation37_spill] sm:$0xff] %v4415_v13  ;;  %3302 = vmatpush1.bf16.msra.mxu1 %v4415_v13  ;;  %v353_v32 = vand.u32 4294901760, %v247_v9  ;;  %v4426_v33 = vsub.f32 %v245_v40, %v347_v50  ;;  %v514_v36 = vand.u32 4294901760, %v513_v16  ;;  %v526_v45 = vand.u32 4294901760, %v525_v17  ;;  %v256_v16 = vld [vmem:[#allocation7 + $0x108] sm:$0xff]  ;;  %v281_v13 = vld [vmem:[#allocation7 + $0x1d0] sm:$0xff] }
  0x94   : > { %v4428_v46 = vpack.c.bf16 %v355_v19, %v351_v18  ;;  %3356 = vmatprep.subr.bf16.mxu0 %v3355_v24  ;;  %v4430_v47 = vsub.f32 %v241_v53, %v345_v1  ;;  %v531_v48 = vsub.f32 %v4374_v42, %v5936_v28  ;;  %v543_v49 = vsub.f32 %v4395_v55, %v5934_v29  ;;  %v263_v29 = vld [vmem:[#allocation7 + $0x140] sm:$0xff]  ;;  %p6662_p9 = scmp.ne.s32.totalorder %s6247_s24, 0 }
  0x95   : > { %6285 = vst [vmem:[#allocation38_spill] sm:$0xff] %v4426_v33  ;;  %v357_v56 = vand.u32 4294901760, %v250_v23  ;;  %v4438_v40 = vsub.f32 %v244_v54, %v349_v2  ;;  %v3357_v50 = vpack.c.bf16 %v526_v45, %v514_v36  ;;  %v5933_v59 = vand.u32 4294901760, %v4397_v60 }
  0x96   : > { %6286 = vst [vmem:[#allocation39_spill] sm:$0xff] %v4428_v46  ;;  %6287 = vst [vmem:[#allocation40_spill] sm:$0xff] %v4430_v47  ;;  %3304 = vmatprep.subr.bf16.mxu1 %v4428_v46  ;;  %v5932_v53 = vand.u32 4294901760, %v4411_v10  ;;  %v4443_v63 = vsub.f32 %v248_v3, %v351_v18  ;;  %v532_v0 = vand.u32 4294901760, %v531_v48  ;;  %v544_v1 = vand.u32 4294901760, %v543_v49 }
  0x97   : > { %6288 = vst [vmem:[#allocation41_spill] sm:$0xff] %v4438_v40  ;;  %v4445_v5 = vpack.c.bf16 %v357_v56, %v353_v32  ;;  %3358 = vmatpush1.bf16.msra.mxu0 %v3357_v50  ;;  %v537_v54 = vsub.f32 %v4397_v60, %v5933_v59  ;;  %v359_v6 = vand.u32 4294901760, %v254_v57  ;;  %v363_v12 = vand.u32 4294901760, %v257_v58  ;;  %v260_v59 = vld [vmem:[#allocation7 + $0x128] sm:$0xff] }
  0x98   : > { %6289 = vst [vmem:[#allocation42_spill] sm:$0xff] %v4443_v63  ;;  %v549_v2 = vsub.f32 %v4411_v10, %v5932_v53  ;;  %v3359_v17 = vpack.c.bf16 %v544_v1, %v532_v0  ;;  %v5935_v3 = vand.u32 4294901760, %v4413_v11  ;;  %v5937_v18 = vand.u32 4294901760, %v4426_v33 }
  0x99   : > { %6290 = vst [vmem:[#allocation43_spill] sm:$0xff] %v4445_v5  ;;  %3306 = vmatpush1.bf16.msra.mxu1 %v4445_v5  ;;  %v361_v24 = vand.u32 4294901760, %v253_v62  ;;  %v4456_v36 = vsub.f32 %v251_v4, %v355_v19  ;;  %v538_v45 = vand.u32 4294901760, %v537_v54  ;;  %v4458_v49 = vpack.c.bf16 %v363_v12, %v359_v6 }
  0x9a   : > { %v550_v48 = vand.u32 4294901760, %v549_v2  ;;  %3360 = vmatprep.subr.bf16.mxu0 %v3359_v17  ;;  %v4460_v50 = vsub.f32 %v247_v9, %v353_v32  ;;  %v555_v0 = vsub.f32 %v4413_v11, %v5935_v3  ;;  %v567_v1 = vsub.f32 %v4426_v33, %v5937_v18  ;;  %v259_v32 = vld [vmem:[#allocation7 + $0x120] sm:$0xff]  ;;  %v262_v18 = vld [vmem:[#allocation7 + $0x138] sm:$0xff] }
  0x9b   : > { %6291 = vst [vmem:[#allocation44_spill] sm:$0xff] %v4456_v36  ;;  %6292 = vst [vmem:[#allocation45_spill] sm:$0xff] %v4458_v49  ;;  %v365_v53 = vand.u32 4294901760, %v256_v16  ;;  %v4468_v4 = vsub.f32 %v250_v23, %v357_v56  ;;  %3308 = vmatprep.subr.bf16.mxu1 %v4458_v49  ;;  %v5940_v54 = vand.u32 4294901760, %v4430_v47  ;;  %v5942_v9 = vand.u32 4294901760, %v4438_v40 }
  0x9c   : > { %6293 = vst [vmem:[#allocation46_spill] sm:$0xff] %v4460_v50  ;;  %v3361_v19 = vpack.c.bf16 %v550_v48, %v538_v45  ;;  %v4473_v2 = vsub.f32 %v254_v57, %v359_v6  ;;  %v556_v17 = vand.u32 4294901760, %v555_v0  ;;  %v568_v3 = vand.u32 4294901760, %v567_v1 }
  0x9d   : > { %6294 = vst [vmem:[#allocation47_spill] sm:$0xff] %v4468_v4  ;;  %v4475_v28 = vpack.c.bf16 %v365_v53, %v361_v24  ;;  %v561_v23 = vsub.f32 %v4430_v47, %v5940_v54  ;;  %v573_v56 = vsub.f32 %v4438_v40, %v5942_v9  ;;  %v367_v45 = vand.u32 4294901760, %v260_v59 }
  0x9e   : > { %6295 = vst [vmem:[#allocation48_spill] sm:$0xff] %v4473_v2  ;;  %3362 = vmatpush1.bf16.msra.mxu0 %v3361_v19  ;;  %v371_v48 = vand.u32 4294901760, %v263_v29  ;;  %v3363_v8 = vpack.c.bf16 %v568_v3, %v556_v17  ;;  %v5945_v57 = vand.u32 4294901760, %v4443_v63  ;;  %v5947_v6 = vand.u32 4294901760, %v4456_v36 }
  0x9f   : > { %6296 = vst [vmem:[#allocation49_spill] sm:$0xff] %v4475_v28  ;;  %3310 = vmatpush1.bf16.msra.mxu1 %v4475_v28  ;;  %v369_v0 = vand.u32 4294901760, %v259_v32  ;;  %v4486_v1 = vsub.f32 %v257_v58, %v363_v12  ;;  %v562_v19 = vand.u32 4294901760, %v561_v23  ;;  %v574_v7 = vand.u32 4294901760, %v573_v56  ;;  %v275_v28 = vld [vmem:[#allocation7 + $0x1a0] sm:$0xff] }
  0xa0   : > { %v4488_v54 = vpack.c.bf16 %v371_v48, %v367_v45  ;;  %3364 = vmatprep.subr.bf16.mxu0 %v3363_v8  ;;  %v4490_v52 = vsub.f32 %v253_v62, %v361_v24  ;;  %v579_v3 = vsub.f32 %v4443_v63, %v5945_v57  ;;  %v591_v17 = vsub.f32 %v4456_v36, %v5947_v6  ;;  %v265_v24 = vld [vmem:[#allocation7 + $0x150] sm:$0xff]  ;;  %v268_v6 = vld [vmem:[#allocation7 + $0x168] sm:$0xff] }
  0xa1   : > { %6297 = vst [vmem:[#allocation50_spill] sm:$0xff] %v4486_v1  ;;  %v373_v9 = vand.u32 4294901760, %v262_v18  ;;  %v4498_v58 = vsub.f32 %v256_v16, %v365_v53  ;;  %v3365_v12 = vpack.c.bf16 %v574_v7, %v562_v19  ;;  %v5950_v8 = vand.u32 4294901760, %v4460_v50 }
  0xa2   : > { %6298 = vst [vmem:[#allocation51_spill] sm:$0xff] %v4488_v54  ;;  %6299 = vst [vmem:[#allocation52_spill] sm:$0xff] %v4490_v52  ;;  %3312 = vmatprep.subr.bf16.mxu1 %v4488_v54  ;;  %v5953_v62 = vand.u32 4294901760, %v4468_v4  ;;  %v4503_v23 = vsub.f32 %v260_v59, %v367_v45  ;;  %v580_v56 = vand.u32 4294901760, %v579_v3  ;;  %v592_v57 = vand.u32 4294901760, %v591_v17 }
  0xa3   : > { %6300 = vst [vmem:[#allocation53_spill] sm:$0xff] %v4498_v58  ;;  %v4505_v34 = vpack.c.bf16 %v373_v9, %v369_v0  ;;  %3366 = vmatpush1.bf16.msra.mxu0 %v3365_v12  ;;  %v585_v53 = vsub.f32 %v4460_v50, %v5950_v8  ;;  %v375_v16 = vand.u32 4294901760, %v266_v51  ;;  %v379_v19 = vand.u32 4294901760, %v269_v35 }
  0xa4   : > { %6301 = vst [vmem:[#allocation54_spill] sm:$0xff] %v4503_v23  ;;  %v597_v7 = vsub.f32 %v4468_v4, %v5953_v62  ;;  %v3367_v43 = vpack.c.bf16 %v592_v57, %v580_v56  ;;  %v5958_v59 = vand.u32 4294901760, %v4473_v2  ;;  %v5961_v45 = vand.u32 4294901760, %v4486_v1 }
  0xa5   : > { %6302 = vst [vmem:[#allocation55_spill] sm:$0xff] %v4505_v34  ;;  %3314 = vmatpush1.bf16.msra.mxu1 %v4505_v34  ;;  %v377_v3 = vand.u32 4294901760, %v265_v24  ;;  %v4516_v17 = vsub.f32 %v263_v29, %v371_v48  ;;  %v586_v12 = vand.u32 4294901760, %v585_v53  ;;  %v4518_v8 = vpack.c.bf16 %v379_v19, %v375_v16  ;;  %v272_v34 = vld [vmem:[#allocation7 + $0x188] sm:$0xff] }
  0xa6   : > { %v598_v39 = vand.u32 4294901760, %v597_v7  ;;  %3368 = vmatprep.subr.bf16.mxu0 %v3367_v43  ;;  %v4520_v54 = vsub.f32 %v259_v32, %v369_v0  ;;  %v603_v57 = vsub.f32 %v4473_v2, %v5958_v59  ;;  %v615_v56 = vsub.f32 %v4486_v1, %v5961_v45  ;;  %v271_v0 = vld [vmem:[#allocation7 + $0x180] sm:$0xff]  ;;  %v274_v45 = vld [vmem:[#allocation7 + $0x198] sm:$0xff] }
  0xa7   : > { %6303 = vst [vmem:[#allocation56_spill] sm:$0xff] %v4516_v17  ;;  %6304 = vst [vmem:[#allocation57_spill] sm:$0xff] %v4518_v8  ;;  %v381_v62 = vand.u32 4294901760, %v268_v6  ;;  %v4528_v29 = vsub.f32 %v262_v18, %v373_v9  ;;  %3316 = vmatprep.subr.bf16.mxu1 %v4518_v8  ;;  %v5966_v43 = vand.u32 4294901760, %v4490_v52  ;;  %v5969_v32 = vand.u32 4294901760, %v4498_v58 }
  0xa8   : > { %6305 = vst [vmem:[#allocation58_spill] sm:$0xff] %v4520_v54  ;;  %v3369_v48 = vpack.c.bf16 %v598_v39, %v586_v12  ;;  %v4533_v53 = vsub.f32 %v266_v51, %v375_v16  ;;  %v604_v7 = vand.u32 4294901760, %v603_v57  ;;  %v616_v59 = vand.u32 4294901760, %v615_v56 }
  0xa9   : > { %6306 = vst [vmem:[#allocation59_spill] sm:$0xff] %v4528_v29  ;;  %v4535_v49 = vpack.c.bf16 %v381_v62, %v377_v3  ;;  %v609_v18 = vsub.f32 %v4490_v52, %v5966_v43  ;;  %v621_v39 = vsub.f32 %v4498_v58, %v5969_v32  ;;  %v383_v9 = vand.u32 4294901760, %v272_v34 }
  0xaa   : > { %6307 = vst [vmem:[#allocation60_spill] sm:$0xff] %v4533_v53  ;;  %3370 = vmatpush1.bf16.msra.mxu0 %v3369_v48  ;;  %v387_v12 = vand.u32 4294901760, %v275_v28  ;;  %v3371_v8 = vpack.c.bf16 %v616_v59, %v604_v7  ;;  %v5974_v51 = vand.u32 4294901760, %v4503_v23  ;;  %v5977_v16 = vand.u32 4294901760, %v4516_v17 }
  0xab   : > { %6308 = vst [vmem:[#allocation61_spill] sm:$0xff] %v4535_v49  ;;  %3318 = vmatpush1.bf16.msra.mxu1 %v4535_v49  ;;  %v385_v57 = vand.u32 4294901760, %v271_v0  ;;  %v4546_v56 = vsub.f32 %v269_v35, %v379_v19  ;;  %v610_v48 = vand.u32 4294901760, %v609_v18  ;;  %v622_v5 = vand.u32 4294901760, %v621_v39  ;;  %v278_v49 = vld [vmem:[#allocation7 + $0x1b8] sm:$0xff] }
  0xac   : > { %v4548_v43 = vpack.c.bf16 %v387_v12, %v383_v9  ;;  %3372 = vmatprep.subr.bf16.mxu0 %v3371_v8  ;;  %v4550_v46 = vsub.f32 %v265_v24, %v377_v3  ;;  %v627_v59 = vsub.f32 %v4503_v23, %v5974_v51  ;;  %v639_v7 = vsub.f32 %v4516_v17, %v5977_v16  ;;  %v277_v3 = vld [vmem:[#allocation7 + $0x1b0] sm:$0xff]  ;;  %v280_v16 = vld [vmem:[#allocation7 + $0x1c8] sm:$0xff] }
  0xad   : > { %6309 = vst [vmem:[#allocation62_spill] sm:$0xff] %v4546_v56  ;;  %v389_v32 = vand.u32 4294901760, %v274_v45  ;;  %v4558_v35 = vsub.f32 %v268_v6, %v381_v62  ;;  %v3373_v19 = vpack.c.bf16 %v622_v5, %v610_v48  ;;  %v5982_v8 = vand.u32 4294901760, %v4520_v54 }
  0xae   : > { %6310 = vst [vmem:[#allocation63_spill] sm:$0xff] %v4548_v43  ;;  %6311 = vst [vmem:[#allocation64_spill] sm:$0xff] %v4550_v46  ;;  %3320 = vmatprep.subr.bf16.mxu1 %v4548_v43  ;;  %v5985_v24 = vand.u32 4294901760, %v4528_v29  ;;  %v4563_v18 = vsub.f32 %v272_v34, %v383_v9  ;;  %v628_v39 = vand.u32 4294901760, %v627_v59  ;;  %v640_v51 = vand.u32 4294901760, %v639_v7 }
  0xaf   : > { %6312 = vst [vmem:[#allocation65_spill] sm:$0xff] %v4558_v35  ;;  %v4565_v61 = vpack.c.bf16 %v389_v32, %v385_v57  ;;  %3374 = vmatpush1.bf16.msra.mxu0 %v3373_v19  ;;  %v633_v6 = vsub.f32 %v4520_v54, %v5982_v8  ;;  %v391_v62 = vand.u32 4294901760, %v278_v49  ;;  %v395_v48 = vand.u32 4294901760, %v281_v13 }
  0xb0   : > { %6313 = vst [vmem:[#allocation66_spill] sm:$0xff] %v4563_v18  ;;  %v645_v5 = vsub.f32 %v4528_v29, %v5985_v24  ;;  %v3375_v43 = vpack.c.bf16 %v640_v51, %v628_v39  ;;  %v5990_v34 = vand.u32 4294901760, %v4533_v53  ;;  %v5993_v9 = vand.u32 4294901760, %v4546_v56  ;;  %v294_v29 = vld [vmem:[#allocation7 + $0x238] sm:$0xff] }
  0xb1   : > { %6314 = vst [vmem:[#allocation67_spill] sm:$0xff] %v4565_v61  ;;  %3322 = vmatpush1.bf16.msra.mxu1 %v4565_v61  ;;  %v393_v59 = vand.u32 4294901760, %v277_v3  ;;  %v4576_v7 = vsub.f32 %v275_v28, %v387_v12  ;;  %v634_v19 = vand.u32 4294901760, %v633_v6  ;;  %v4578_v8 = vpack.c.bf16 %v395_v48, %v391_v62  ;;  %v284_v61 = vld [vmem:[#allocation7 + $0x1e8] sm:$0xff] }
  0xb2   : > { %v646_v44 = vand.u32 4294901760, %v645_v5  ;;  %3376 = vmatprep.subr.bf16.mxu0 %v3375_v43  ;;  %v4580_v38 = vsub.f32 %v271_v0, %v385_v57  ;;  %v651_v51 = vsub.f32 %v4533_v53, %v5990_v34  ;;  %v663_v39 = vsub.f32 %v4546_v56, %v5993_v9  ;;  %v283_v57 = vld [vmem:[#allocation7 + $0x1e0] sm:$0xff]  ;;  %v286_v9 = vld [vmem:[#allocation7 + $0x1f8] sm:$0xff] }
  0xb3   : > { %6315 = vst [vmem:[#allocation68_spill] sm:$0xff] %v4576_v7  ;;  %6316 = vst [vmem:[#allocation69_spill] sm:$0xff] %v4578_v8  ;;  %v397_v24 = vand.u32 4294901760, %v280_v16  ;;  %v4588_v28 = vsub.f32 %v274_v45, %v389_v32  ;;  %3324 = vmatprep.subr.bf16.mxu1 %v4578_v8  ;;  %v5998_v43 = vand.u32 4294901760, %v4550_v46  ;;  %v6001_v0 = vand.u32 4294901760, %v4558_v35 }
  0xb4   : > { %6317 = vst [vmem:[#allocation70_spill] sm:$0xff] %v4580_v38  ;;  %v3377_v12 = vpack.c.bf16 %v646_v44, %v634_v19  ;;  %v4593_v6 = vsub.f32 %v278_v49, %v391_v62  ;;  %v652_v5 = vand.u32 4294901760, %v651_v51  ;;  %v664_v34 = vand.u32 4294901760, %v663_v39 }
  0xb5   : > { %6318 = vst [vmem:[#allocation71_spill] sm:$0xff] %v4588_v28  ;;  %v4595_v22 = vpack.c.bf16 %v397_v24, %v393_v59  ;;  %v657_v45 = vsub.f32 %v4550_v46, %v5998_v43  ;;  %v669_v44 = vsub.f32 %v4558_v35, %v6001_v0  ;;  %v399_v32 = vand.u32 4294901760, %v284_v61  ;;  %v293_v35 = vld [vmem:[#allocation7 + $0x230] sm:$0xff]  ;;  %v288_v46 = vld [vmem:[#allocation7 + $0x208] sm:$0xff] }
  0xb6   : > { %6319 = vst [vmem:[#allocation72_spill] sm:$0xff] %v4593_v6  ;;  %3378 = vmatpush1.bf16.msra.mxu0 %v3377_v12  ;;  %v403_v19 = vand.u32 4294901760, %v287_v27  ;;  %v3379_v8 = vpack.c.bf16 %v664_v34, %v652_v5  ;;  %v6006_v49 = vand.u32 4294901760, %v4563_v18  ;;  %v6009_v62 = vand.u32 4294901760, %v4576_v7 }
  0xb7   : > { %6320 = vst [vmem:[#allocation73_spill] sm:$0xff] %v4595_v22  ;;  %3326 = vmatpush1.bf16.msra.mxu1 %v4595_v22  ;;  %v401_v51 = vand.u32 4294901760, %v283_v57  ;;  %v4606_v39 = vsub.f32 %v281_v13, %v395_v48  ;;  %v658_v12 = vand.u32 4294901760, %v657_v45  ;;  %v670_v20 = vand.u32 4294901760, %v669_v44  ;;  %v290_v22 = vld [vmem:[#allocation7 + $0x218] sm:$0xff] }
  0xb8   : > { %v4608_v43 = vpack.c.bf16 %v403_v19, %v399_v32  ;;  %3380 = vmatprep.subr.bf16.mxu0 %v3379_v8  ;;  %v4610_v14 = vsub.f32 %v277_v3, %v393_v59  ;;  %v675_v34 = vsub.f32 %v4563_v18, %v6006_v49  ;;  %v687_v5 = vsub.f32 %v4576_v7, %v6009_v62  ;;  %v289_v59 = vld [vmem:[#allocation7 + $0x210] sm:$0xff]  ;;  %v292_v62 = vld [vmem:[#allocation7 + $0x228] sm:$0xff] }
  0xb9   : > { %6321 = vst [vmem:[#allocation74_spill] sm:$0xff] %v4606_v39  ;;  %v405_v0 = vand.u32 4294901760, %v286_v9  ;;  %v4618_v13 = vsub.f32 %v280_v16, %v397_v24  ;;  %v3381_v48 = vpack.c.bf16 %v670_v20, %v658_v12  ;;  %v6014_v8 = vand.u32 4294901760, %v4580_v38 }
  0xba   : > { %6322 = vst [vmem:[#allocation75_spill] sm:$0xff] %v4608_v43  ;;  %6323 = vst [vmem:[#allocation76_spill] sm:$0xff] %v4610_v14  ;;  %3328 = vmatprep.subr.bf16.mxu1 %v4608_v43  ;;  %v6017_v3 = vand.u32 4294901760, %v4588_v28  ;;  %v4623_v45 = vsub.f32 %v284_v61, %v399_v32  ;;  %v676_v44 = vand.u32 4294901760, %v675_v34  ;;  %v688_v49 = vand.u32 4294901760, %v687_v5 }
  0xbb   : > { %6324 = vst [vmem:[#allocation77_spill] sm:$0xff] %v4618_v13  ;;  %v4625_v18 = vpack.c.bf16 %v405_v0, %v401_v51  ;;  %3382 = vmatpush1.bf16.msra.mxu0 %v3381_v48  ;;  %v681_v16 = vsub.f32 %v4580_v38, %v6014_v8  ;;  %v407_v24 = vand.u32 4294901760, %v290_v22  ;;  %v411_v12 = vand.u32 4294901760, %v293_v35 }
  0xbc   : > { %6325 = vst [vmem:[#allocation78_spill] sm:$0xff] %v4623_v45  ;;  %v693_v20 = vsub.f32 %v4588_v28, %v6017_v3  ;;  %v3383_v43 = vpack.c.bf16 %v688_v49, %v676_v44  ;;  %v6022_v61 = vand.u32 4294901760, %v4593_v6  ;;  %v6025_v32 = vand.u32 4294901760, %v4606_v39  ;;  %v299_v28 = vld [vmem:[#allocation7 + $0x260] sm:$0xff] }
  0xbd   : > { %6326 = vst [vmem:[#allocation79_spill] sm:$0xff] %v4625_v18  ;;  %3330 = vmatpush1.bf16.msra.mxu1 %v4625_v18  ;;  %v409_v34 = vand.u32 4294901760, %v289_v59  ;;  %v4636_v5 = vsub.f32 %v287_v27, %v403_v19  ;;  %v682_v48 = vand.u32 4294901760, %v681_v16  ;;  %v4638_v8 = vpack.c.bf16 %v411_v12, %v407_v24  ;;  %v296_v18 = vld [vmem:[#allocation7 + $0x248] sm:$0xff] }
  0xbe   : > { %v694_v7 = vand.u32 4294901760, %v693_v20  ;;  %3384 = vmatprep.subr.bf16.mxu0 %v3383_v43  ;;  %v4640_v38 = vsub.f32 %v283_v57, %v401_v51  ;;  %v699_v49 = vsub.f32 %v4593_v6, %v6022_v61  ;;  %v711_v44 = vsub.f32 %v4606_v39, %v6025_v32  ;;  %v295_v51 = vld [vmem:[#allocation7 + $0x240] sm:$0xff]  ;;  %v298_v32 = vld [vmem:[#allocation7 + $0x258] sm:$0xff] }
  0xbf   : > { %6327 = vst [vmem:[#allocation80_spill] sm:$0xff] %v4636_v5  ;;  %6328 = vst [vmem:[#allocation81_spill] sm:$0xff] %v4638_v8  ;;  %v413_v3 = vand.u32 4294901760, %v292_v62  ;;  %v4648_v27 = vsub.f32 %v286_v9, %v405_v0  ;;  %3332 = vmatprep.subr.bf16.mxu1 %v4638_v8  ;;  %v6030_v43 = vand.u32 4294901760, %v4610_v14  ;;  %v6033_v57 = vand.u32 4294901760, %v4618_v13 }
  0xc0   : > { %6329 = vst [vmem:[#allocation82_spill] sm:$0xff] %v4640_v38  ;;  %v3385_v19 = vpack.c.bf16 %v694_v7, %v682_v48  ;;  %v4653_v16 = vsub.f32 %v290_v22, %v407_v24  ;;  %v700_v20 = vand.u32 4294901760, %v699_v49  ;;  %v712_v61 = vand.u32 4294901760, %v711_v44 }
  0xc1   : > { %6330 = vst [vmem:[#allocation83_spill] sm:$0xff] %v4648_v27  ;;  %v4655_v6 = vpack.c.bf16 %v413_v3, %v409_v34  ;;  %v705_v9 = vsub.f32 %v4610_v14, %v6030_v43  ;;  %v717_v7 = vsub.f32 %v4618_v13, %v6033_v57  ;;  %v415_v0 = vand.u32 4294901760, %v296_v18  ;;  %v305_v13 = vld [vmem:[#allocation7 + $0x290] sm:$0xff] }
  0xc2   : > { %6331 = vst [vmem:[#allocation84_spill] sm:$0xff] %v4653_v16  ;;  %3386 = vmatpush1.bf16.msra.mxu0 %v3385_v19  ;;  %v419_v48 = vand.u32 4294901760, %v299_v28  ;;  %v3387_v8 = vpack.c.bf16 %v712_v61, %v700_v20  ;;  %v6038_v22 = vand.u32 4294901760, %v4623_v45  ;;  %v6041_v24 = vand.u32 4294901760, %v4636_v5 }
  0xc3   : > { %6332 = vst [vmem:[#allocation85_spill] sm:$0xff] %v4655_v6  ;;  %3334 = vmatpush1.bf16.msra.mxu1 %v4655_v6  ;;  %v417_v49 = vand.u32 4294901760, %v295_v51  ;;  %v4666_v44 = vsub.f32 %v293_v35, %v411_v12  ;;  %v706_v19 = vand.u32 4294901760, %v705_v9  ;;  %v718_v39 = vand.u32 4294901760, %v717_v7  ;;  %v302_v6 = vld [vmem:[#allocation7 + $0x278] sm:$0xff] }
  0xc4   : > { %v4668_v43 = vpack.c.bf16 %v419_v48, %v415_v0  ;;  %3388 = vmatprep.subr.bf16.mxu0 %v3387_v8  ;;  %v4670_v14 = vsub.f32 %v289_v59, %v409_v34  ;;  %v723_v61 = vsub.f32 %v4623_v45, %v6038_v22  ;;  %v735_v20 = vsub.f32 %v4636_v5, %v6041_v24  ;;  %v301_v34 = vld [vmem:[#allocation7 + $0x270] sm:$0xff]  ;;  %v304_v24 = vld [vmem:[#allocation7 + $0x288] sm:$0xff] }
  0xc5   : > { %6333 = vst [vmem:[#allocation86_spill] sm:$0xff] %v4666_v44  ;;  %v421_v57 = vand.u32 4294901760, %v298_v32  ;;  %v4678_v35 = vsub.f32 %v292_v62, %v413_v3  ;;  %v3389_v12 = vpack.c.bf16 %v718_v39, %v706_v19  ;;  %v6046_v8 = vand.u32 4294901760, %v4640_v38 }
  0xc6   : > { %6334 = vst [vmem:[#allocation87_spill] sm:$0xff] %v4668_v43  ;;  %6335 = vst [vmem:[#allocation88_spill] sm:$0xff] %v4670_v14  ;;  %3336 = vmatprep.subr.bf16.mxu1 %v4668_v43  ;;  %v6049_v59 = vand.u32 4294901760, %v4648_v27  ;;  %v4683_v9 = vsub.f32 %v296_v18, %v415_v0  ;;  %v724_v7 = vand.u32 4294901760, %v723_v61  ;;  %v736_v22 = vand.u32 4294901760, %v735_v20 }
  0xc7   : > { %6336 = vst [vmem:[#allocation89_spill] sm:$0xff] %v4678_v35  ;;  %v4685_v45 = vpack.c.bf16 %v421_v57, %v417_v49  ;;  %3390 = vmatpush1.bf16.msra.mxu0 %v3389_v12  ;;  %v729_v62 = vsub.f32 %v4640_v38, %v6046_v8  ;;  %v423_v3 = vand.u32 4294901760, %v302_v6  ;;  %v427_v19 = vand.u32 4294901760, %v305_v13 }
  0xc8   : > { %6337 = vst [vmem:[#allocation90_spill] sm:$0xff] %v4683_v9  ;;  %v741_v39 = vsub.f32 %v4648_v27, %v6049_v59  ;;  %v3391_v43 = vpack.c.bf16 %v736_v22, %v724_v7  ;;  %v6054_v18 = vand.u32 4294901760, %v4653_v16  ;;  %v6057_v0 = vand.u32 4294901760, %v4666_v44  ;;  %v311_v27 = vld [vmem:[#allocation7 + $0x2c0] sm:$0xff] }
  0xc9   : > { %6338 = vst [vmem:[#allocation91_spill] sm:$0xff] %v4685_v45  ;;  %3338 = vmatpush1.bf16.msra.mxu1 %v4685_v45  ;;  %v425_v61 = vand.u32 4294901760, %v301_v34  ;;  %v4696_v20 = vsub.f32 %v299_v28, %v419_v48  ;;  %v730_v12 = vand.u32 4294901760, %v729_v62  ;;  %v4698_v8 = vpack.c.bf16 %v427_v19, %v423_v3  ;;  %v308_v45 = vld [vmem:[#allocation7 + $0x2a8] sm:$0xff] }
  0xca   : > { %v742_v5 = vand.u32 4294901760, %v741_v39  ;;  %3392 = vmatprep.subr.bf16.mxu0 %v3391_v43  ;;  %v4700_v38 = vsub.f32 %v295_v51, %v417_v49  ;;  %v747_v22 = vsub.f32 %v4653_v16, %v6054_v18  ;;  %v759_v7 = vsub.f32 %v4666_v44, %v6057_v0  ;;  %v307_v49 = vld [vmem:[#allocation7 + $0x2a0] sm:$0xff]  ;;  %v310_v0 = vld [vmem:[#allocation7 + $0x2b8] sm:$0xff] }
  0xcb   : > { %6339 = vst [vmem:[#allocation92_spill] sm:$0xff] %v4696_v20  ;;  %6340 = vst [vmem:[#allocation93_spill] sm:$0xff] %v4698_v8  ;;  %v429_v59 = vand.u32 4294901760, %v304_v24  ;;  %v4708_v28 = vsub.f32 %v298_v32, %v421_v57  ;;  %3340 = vmatprep.subr.bf16.mxu1 %v4698_v8  ;;  %v6062_v43 = vand.u32 4294901760, %v4670_v14  ;;  %v6065_v51 = vand.u32 4294901760, %v4678_v35 }
  0xcc   : > { %6341 = vst [vmem:[#allocation94_spill] sm:$0xff] %v4700_v38  ;;  %v3393_v48 = vpack.c.bf16 %v742_v5, %v730_v12  ;;  %v4713_v62 = vsub.f32 %v302_v6, %v423_v3  ;;  %v748_v39 = vand.u32 4294901760, %v747_v22  ;;  %v760_v18 = vand.u32 4294901760, %v759_v7 }
  0xcd   : > { %6342 = vst [vmem:[#allocation95_spill] sm:$0xff] %v4708_v28  ;;  %v4715_v16 = vpack.c.bf16 %v429_v59, %v425_v61  ;;  %v753_v32 = vsub.f32 %v4670_v14, %v6062_v43  ;;  %v765_v5 = vsub.f32 %v4678_v35, %v6065_v51  ;;  %v431_v57 = vand.u32 4294901760, %v308_v45  ;;  %v317_v35 = vld [vmem:[#allocation7 + $0x2f0] sm:$0xff] }
  0xce   : > { %6343 = vst [vmem:[#allocation96_spill] sm:$0xff] %v4713_v62  ;;  %3394 = vmatpush1.bf16.msra.mxu0 %v3393_v48  ;;  %v435_v12 = vand.u32 4294901760, %v311_v27  ;;  %v3395_v8 = vpack.c.bf16 %v760_v18, %v748_v39  ;;  %v6070_v6 = vand.u32 4294901760, %v4683_v9  ;;  %v6073_v3 = vand.u32 4294901760, %v4696_v20 }
  0xcf   : > { %6344 = vst [vmem:[#allocation97_spill] sm:$0xff] %v4715_v16  ;;  %3342 = vmatpush1.bf16.msra.mxu1 %v4715_v16  ;;  %v433_v22 = vand.u32 4294901760, %v307_v49  ;;  %v4726_v7 = vsub.f32 %v305_v13, %v427_v19  ;;  %v754_v48 = vand.u32 4294901760, %v753_v32  ;;  %v766_v44 = vand.u32 4294901760, %v765_v5  ;;  %v314_v16 = vld [vmem:[#allocation7 + $0x2d8] sm:$0xff] }
  0xd0   : > { %v4728_v43 = vpack.c.bf16 %v435_v12, %v431_v57  ;;  %3396 = vmatprep.subr.bf16.mxu0 %v3395_v8  ;;  %v4730_v14 = vsub.f32 %v301_v34, %v425_v61  ;;  %v771_v18 = vsub.f32 %v4683_v9, %v6070_v6  ;;  %v783_v39 = vsub.f32 %v4696_v20, %v6073_v3  ;;  %v313_v61 = vld [vmem:[#allocation7 + $0x2d0] sm:$0xff]  ;;  %v4753_v3 = vld [vmem:[#allocation7 + $0x2e8] sm:$0xff] }
  0xd1   : > { %6345 = vst [vmem:[#allocation98_spill] sm:$0xff] %v4726_v7  ;;  %v437_v51 = vand.u32 4294901760, %v310_v0  ;;  %v4738_v13 = vsub.f32 %v304_v24, %v429_v59  ;;  %v3397_v19 = vpack.c.bf16 %v766_v44, %v754_v48  ;;  %v6074_v8 = vand.u32 4294901760, %v4700_v38 }
  0xd2   : > { %6346 = vst [vmem:[#allocation99_spill] sm:$0xff] %v4728_v43  ;;  %6347 = vst [vmem:[#allocation100_spill] sm:$0xff] %v4730_v14  ;;  %3344 = vmatprep.subr.bf16.mxu1 %v4728_v43  ;;  %v6079_v34 = vand.u32 4294901760, %v4708_v28  ;;  %v4743_v32 = vsub.f32 %v308_v45, %v431_v57  ;;  %v772_v5 = vand.u32 4294901760, %v771_v18  ;;  %v784_v6 = vand.u32 4294901760, %v783_v39 }
  0xd3   : > { %6348 = vst [vmem:[#allocation101_spill] sm:$0xff] %v4738_v13  ;;  %v4745_v9 = vpack.c.bf16 %v437_v51, %v433_v22  ;;  %3398 = vmatpush1.bf16.msra.mxu0 %v3397_v19  ;;  %v777_v24 = vsub.f32 %v4700_v38, %v6074_v8  ;;  %v439_v59 = vand.u32 4294901760, %v314_v16  ;;  %v443_v48 = vand.u32 4294901760, %v317_v35 }
  0xd4   : > { %6349 = vst [vmem:[#allocation102_spill] sm:$0xff] %v4743_v32  ;;  %v789_v44 = vsub.f32 %v4708_v28, %v6079_v34  ;;  %v3399_v45 = vpack.c.bf16 %v784_v6, %v772_v5  ;;  %v6084_v57 = vand.u32 4294901760, %v4713_v62  ;;  %v6085_v18 = vand.u32 4294901760, %v4726_v7  ;;  %v220_v28 = vld [vmem:[%s4332_s11 + $0x8] sm:$0xff] }
  0xd5   : > { %6350 = vst [vmem:[#allocation103_spill] sm:$0xff] %v4745_v9  ;;  %3346 = vmatpush1.bf16.msra.mxu1 %v4745_v9  ;;  %v441_v39 = vand.u32 4294901760, %v313_v61  ;;  %v4758_v19 = vsub.f32 %v311_v27, %v435_v12  ;;  %v778_v8 = vand.u32 4294901760, %v777_v24  ;;  %v4760_v38 = vpack.c.bf16 %v443_v48, %v439_v59 }
  0xd6   : > { %v790_v43 = vand.u32 4294901760, %v789_v44  ;;  %3400 = vmatprep.subr.bf16.mxu0 %v3399_v45  ;;  %v4762_v34 = vsub.f32 %v307_v49, %v433_v22  ;;  %v795_v6 = vsub.f32 %v4713_v62, %v6084_v57  ;;  %v807_v5 = vsub.f32 %v4726_v7, %v6085_v18  ;;  %v273_v22 = vld [vmem:[#allocation7 + $0x190] sm:$0xff]  ;;  %v4777_v44 = vld [vmem:[#allocation7 + $0x1a8] sm:$0xff] }
  0xd7   : > { %6351 = vst [vmem:[#allocation104_spill] sm:$0xff] %v4758_v19  ;;  %6352 = vst [vmem:[#allocation105_spill] sm:$0xff] %v4760_v38  ;;  %v445_v9 = vand.u32 4294901760, %v4753_v3  ;;  %v4772_v27 = vsub.f32 %v310_v0, %v437_v51  ;;  %3348 = vmatprep.subr.bf16.mxu1 %v4760_v38  ;;  %v6092_v24 = vand.u32 4294901760, %v4730_v14  ;;  %v6093_v49 = vand.u32 4294901760, %v4738_v13 }
  0xd8   : > { %6353 = vst [vmem:[#allocation106_spill] sm:$0xff] %v4762_v34  ;;  %v3401_v12 = vpack.c.bf16 %v790_v43, %v778_v8  ;;  %v4779_v45 = vsub.f32 %v314_v16, %v439_v59  ;;  %v796_v57 = vand.u32 4294901760, %v795_v6  ;;  %v808_v18 = vand.u32 4294901760, %v807_v5  ;;  %v219_v5 = vld [vmem:[%s4332_s11] sm:$0xff] }
  0xd9   : > { %6354 = vst [vmem:[#allocation107_spill] sm:$0xff] %v4772_v27  ;;  %v4781_v7 = vpack.c.bf16 %v445_v9, %v441_v39  ;;  %v801_v0 = vsub.f32 %v4730_v14, %v6092_v24  ;;  %v813_v43 = vsub.f32 %v4738_v13, %v6093_v49  ;;  %v4789_v51 = vand.u32 4294901760, %v220_v28  ;;  %v225_v13 = vld [vmem:[#allocation7 + $0x10] sm:$0xff] }
  0xda   : > { %6355 = vst [vmem:[#allocation108_spill] sm:$0xff] %v4779_v45  ;;  %3402 = vmatpush1.bf16.msra.mxu0 %v3401_v12  ;;  %v6100_v8 = vand.u32 4294901760, %v4743_v32  ;;  %v3403_v38 = vpack.c.bf16 %v808_v18, %v796_v57  ;;  %v6105_v16 = vand.u32 4294901760, %v4758_v19  ;;  %v1714_v59 = vand.u32 4294901760, %v273_v22 }
  0xdb   : > { %6356 = vst [vmem:[#allocation109_spill] sm:$0xff] %v4781_v7  ;;  %6357 = vst [vmem:[#allocation110_spill] sm:$0xff] %v4789_v51  ;;  %3350 = vmatpush1.bf16.msra.mxu1 %v4781_v7  ;;  %v1717_v6 = vand.u32 4294901760, %v4777_v44  ;;  %v802_v12 = vand.u32 4294901760, %v801_v0  ;;  %v814_v62 = vand.u32 4294901760, %v813_v43  ;;  %v4797_v24 = vsub.f32 %v220_v28, %v4789_v51  ;;  %865 = vmatprep.mubr.f32.mxu0 %v4789_v51  ;;  %v228_v28 = vld [vmem:[#allocation7 + $0x28] sm:$0xff] }
  0xdc   : > { %v819_v49 = vsub.f32 %v4743_v32, %v6100_v8  ;;  %v4803_v57 = vsub.f32 %v317_v35, %v443_v48  ;;  %3404 = vmatprep.subr.bf16.mxu0 %v3403_v38  ;;  %v4805_v18 = vsub.f32 %v313_v61, %v441_v39  ;;  %v831_v0 = vsub.f32 %v4758_v19, %v6105_v16 }
  0xdd   : > { %v4810_v43 = vpack.c.bf16 %v1717_v6, %v1714_v59  ;;  %v3405_v7 = vpack.c.bf16 %v814_v62, %v802_v12  ;;  %v4813_v14 = vand.u32 4294901760, %v4797_v24  ;;  %v4815_v32 = vand.u32 4294901760, %v219_v5 }
  0xde   : > { %6358 = vst [vmem:[#allocation111_spill] sm:$0xff] %v4803_v57  ;;  %6359 = vst [vmem:[#allocation112_spill] sm:$0xff] %v4805_v18  ;;  %v820_v8 = vand.u32 4294901760, %v819_v49  ;;  %v832_v20 = vand.u32 4294901760, %v831_v0  ;;  %v6112_v38 = vand.u32 4294901760, %v4762_v34  ;;  %v6113_v35 = vand.u32 4294901760, %v4772_v27 }
  0xdf   : > { %6360 = vst [vmem:[#allocation113_spill] sm:$0xff] %v4810_v43  ;;  %6361 = vst [vmem:[#allocation114_spill] sm:$0xff] %v4813_v14  ;;  %3672 = vmatprep.subr.bf16.mxu1 %v4810_v43  ;;  %v1666_v61 = vand.u32 4294901760, %v225_v13  ;;  %3406 = vmatpush1.bf16.msra.mxu0 %v3405_v7  ;;  %v450_v48 = vsub.f32 %v4797_v24, %v4813_v14  ;;  %v4823_v62 = vsub.f32 %v219_v5, %v4815_v32  ;;  %v279_v43 = vld [vmem:[#allocation7 + $0x1c0] sm:$0xff]  ;;  %v282_v14 = vld [vmem:[#allocation7 + $0x1d8] sm:$0xff] }
  0xe0   : > { %6362 = vst [vmem:[#allocation115_spill] sm:$0xff] %v4815_v32  ;;  %v1669_v39 = vand.u32 4294901760, %v228_v28  ;;  %v4827_v12 = vsub.f32 %v4753_v3, %v445_v9  ;;  %v3407_v0 = vpack.c.bf16 %v832_v20, %v820_v8  ;;  %v825_v16 = vsub.f32 %v4762_v34, %v6112_v38  ;;  %v231_v34 = vld [vmem:[#allocation7 + $0x40] sm:$0xff] }
  0xe1   : > { %6363 = vst [vmem:[#allocation116_spill] sm:$0xff] %v4823_v62  ;;  %v837_v7 = vsub.f32 %v4772_v27, %v6113_v35  ;;  %v4835_v19 = vand.u32 4294901760, %v450_v48  ;;  %v4837_v5 = vsub.f32 %v273_v22, %v1714_v59  ;;  %v4840_v49 = vand.u32 4294901760, %v4823_v62 }
  0xe2   : > { %6364 = vst [vmem:[#allocation117_spill] sm:$0xff] %v4827_v12  ;;  %v4842_v9 = vpack.c.bf16 %v1669_v39, %v1666_v61  ;;  %3408 = vmatprep.subr.bf16.mxu0 %v3407_v0  ;;  %v826_v20 = vand.u32 4294901760, %v825_v16  ;;  %v6368_v8 = vand.u32 4294901760, %v4779_v45  ;;  %v6130_v35 = vand.u32 4294901760, %v4803_v57 }
  0xe3   : > { %6365 = vst [vmem:[#allocation118_spill] sm:$0xff] %v4835_v19  ;;  %6366 = vst [vmem:[#allocation119_spill] sm:$0xff] %v4840_v49  ;;  %v838_v3 = vand.u32 4294901760, %v837_v7  ;;  %452 = vmatprep.mubr.f32.mxu1 %v4835_v19  ;;  %v456_v22 = vsub.f32 %v4823_v62, %v4840_v49  ;;  %v1720_v59 = vand.u32 4294901760, %v279_v43  ;;  %v1723_v48 = vand.u32 4294901760, %v282_v14  ;;  %v291_v19 = vld [vmem:[#allocation7 + $0x220] sm:$0xff] }
  0xe4   : > { %6367 = vst [vmem:[#allocation120_spill] sm:$0xff] %v4842_v9  ;;  %v843_v38 = vsub.f32 %v4779_v45, %v6368_v8  ;;  %v855_v16 = vsub.f32 %v4803_v57, %v6130_v35  ;;  %v6140_v7 = vand.u32 4294901760, %v4827_v12  ;;  %v234_v8 = vld [vmem:[#allocation7 + $0x58] sm:$0xff]  ;;  %v285_v45 = vld [vmem:[#allocation7 + $0x1f0] sm:$0xff]  ;;  %v4857_v56 = vsub.f32 %v4777_v44, %v1717_v6 }
  0xe5   : > { %v3409_v51 = vpack.c.bf16 %v838_v3, %v826_v20  ;;  %v4859_v49 = vand.u32 4294901760, %v456_v22  ;;  %v4861_v62 = vsub.f32 %v225_v13, %v1666_v61  ;;  %v4863_v27 = vpack.c.bf16 %v1723_v48, %v1720_v59  ;;  %v237_v22 = vld [vmem:[#allocation7 + $0x70] sm:$0xff] }
  0xe6   : > { %v844_v0 = vand.u32 4294901760, %v843_v38  ;;  %v856_v38 = vand.u32 4294901760, %v855_v16  ;;  %v6371_v20 = vand.u32 4294901760, %v4805_v18  ;;  %v861_v35 = vsub.f32 %v4827_v12, %v6140_v7 }
  0xe7   : > { %6369 = vst [vmem:[#allocation121_spill] sm:$0xff] %v4859_v49  ;;  %6370 = vst [vmem:[#allocation122_spill] sm:$0xff] %v4863_v27  ;;  %3410 = vmatpush1.bf16.msra.mxu0 %v3409_v51  ;;  %v1672_v57 = vand.u32 4294901760, %v231_v34  ;;  %458 = vmatmul.mubr.f32.vlgmr.msra.gmra.mrb[0].mxu1 %v4859_v49  ;;  %v4872_v44 = vsub.f32 %v228_v28, %v1669_v39  ;;  %v1675_v6 = vand.u32 4294901760, %v234_v8  ;;  %v1726_v13 = vand.u32 4294901760, %v285_v45 }
  0xe8   : > { %v849_v3 = vsub.f32 %v4805_v18, %v6371_v20  ;;  %v1729_v61 = vand.u32 4294901760, %v288_v46  ;;  %3674 = vmatpush3.bf16.msra.mxu1 %v4842_v9  ;;  %v3411_v51 = vpack.c.bf16 %v856_v38, %v844_v0  ;;  %v4875_v16 = vsub.f32 %v279_v43, %v1720_v59  ;;  %v240_v18 = vld [vmem:[#allocation7 + $0x88] sm:$0xff]  ;;  %v243_v9 = vld [vmem:[#allocation7 + $0xa0] sm:$0xff]  ;;  %v246_v0 = vld [vmem:[#allocation7 + $0xb8] sm:$0xff] }
  0xe9   : > { %v862_v20 = vand.u32 4294901760, %v861_v35  ;;  %3676 = vmatprep.subr.bf16.mxu1 %v4863_v27  ;;  %v4878_v7 = vsub.f32 %v282_v14, %v1723_v48  ;;  %v4880_v28 = vpack.c.bf16 %v1675_v6, %v1672_v57  ;;  %v3415_v39 = vpack.c.bf16 %v4362_v31, %v4360_v30  ;;  %v306_v30 = vld [vmem:[#allocation7 + $0x298] sm:$0xff] }
  0xea   : > { %v850_v53 = vand.u32 4294901760, %v849_v3  ;;  %v4884_v12 = vpack.c.bf16 %v1729_v61, %v1726_v13  ;;  %3412 = vmatprep.subr.bf16.mxu0 %v3411_v51  ;;  %v4886_v59 = vsub.f32 %v231_v34, %v1672_v57  ;;  %v4888_v35 = vsub.f32 %v234_v8, %v1675_v6  ;;  %v297_v3 = vld [vmem:[#allocation7 + $0x250] sm:$0xff]  ;;  %v300_v57 = vld [vmem:[#allocation7 + $0x268] sm:$0xff] }
  0xeb   : > { %6372 = vst [vmem:[#allocation123_spill] sm:$0xff] %v4880_v28  ;;  %v1678_v38 = vand.u32 4294901760, %v237_v22  ;;  %v4890_v27 = vsub.f32 %v285_v45, %v1726_v13  ;;  %v1681_v14 = vand.u32 4294901760, %v240_v18  ;;  %v1732_v48 = vand.u32 4294901760, %v291_v19 }
  0xec   : > { %6373 = vst [vmem:[#allocation124_spill] sm:$0xff] %v4884_v12  ;;  %v3413_v43 = vpack.c.bf16 %v862_v20, %v850_v53  ;;  %v1735_v49 = vand.u32 4294901760, %v294_v29  ;;  %3678 = vmatpush3.bf16.msra.mxu1 %v4880_v28  ;;  %v4893_v31 = vsub.f32 %v288_v46, %v1729_v61  ;;  %v3417_v51 = vpack.c.bf16 %v4348_v21, %v4344_v15  ;;  %v249_v20 = vld [vmem:[#allocation7 + $0xd0] sm:$0xff]  ;;  %v252_v46 = vld [vmem:[#allocation7 + $0xe8] sm:$0xff]  ;;  %v303_v15 = vld [vmem:[#allocation7 + $0x280] sm:$0xff] }
  0xed   : > { %v1684_v53 = vand.u32 4294901760, %v243_v9  ;;  %v1687_v34 = vand.u32 4294901760, %v246_v0  ;;  %3680 = vmatprep.subr.bf16.mxu1 %v4884_v12  ;;  %v4898_v8 = vpack.c.bf16 %v1681_v14, %v1678_v38  ;;  %v3419_v45 = vpack.c.bf16 %v4355_v26, %v4353_v25 }
  0xee   : > { %3414 = vmatpush1.bf16.msra.mxu0 %v3413_v43  ;;  %v4902_v6 = vpack.c.bf16 %v1735_v49, %v1732_v48  ;;  %v1738_v13 = vand.u32 4294901760, %v297_v3  ;;  %v4904_v61 = vsub.f32 %v237_v22, %v1678_v38  ;;  %v4906_v43 = vsub.f32 %v240_v18, %v1681_v14  ;;  %v255_v14 = vld [vmem:[#allocation7 + $0x100] sm:$0xff] }
  0xef   : > { %3416 = vmatprep.subr.bf16.mxu0 %v3415_v39  ;;  %6374 = vst [vmem:[#allocation125_spill] sm:$0xff] %v4898_v8  ;;  %v4908_v21 = vsub.f32 %v291_v19, %v1732_v48  ;;  %v3421_v39 = vpack.c.bf16 %v4372_v41, %v4367_v37  ;;  %v4913_v12 = vsub.f32 %v294_v29, %v1735_v49  ;;  %v1741_v28 = vand.u32 4294901760, %v300_v57  ;;  %v312_v41 = vld [vmem:[#allocation7 + $0x2c8] sm:$0xff] }
  0xf0   : > { %6375 = vst [vmem:[#allocation126_spill] sm:$0xff] %v4902_v6  ;;  %v4915_v26 = vpack.c.bf16 %v1687_v34, %v1684_v53  ;;  %v4917_v25 = vsub.f32 %v243_v9, %v1684_v53  ;;  %3682 = vmatpush3.bf16.msra.mxu1 %v4898_v8  ;;  %v4920_v18 = vsub.f32 %v246_v0, %v1687_v34  ;;  %v1690_v22 = vand.u32 4294901760, %v249_v20  ;;  %v309_v53 = vld [vmem:[#allocation7 + $0x2b0] sm:$0xff]  ;;  %v264_v37 = vld [vmem:[#allocation7 + $0x148] sm:$0xff] }
  0xf1   : > { %867 = vmatmul.mubr.f32.vlgmr.msra.gmra.mrb[0].mxu0 %v4815_v32  ;;  %v3423_v19 = vpack.c.bf16 %v4395_v55, %v4374_v42  ;;  %v1693_v38 = vand.u32 4294901760, %v252_v46  ;;  %3684 = vmatprep.subr.bf16.mxu1 %v4902_v6  ;;  %v4925_v29 = vpack.c.bf16 %v1741_v28, %v1738_v13  ;;  %v4927_v49 = vsub.f32 %v297_v3, %v1738_v13  ;;  %v261_v42 = vld [vmem:[#allocation7 + $0x130] sm:$0xff] }
  0xf2   : > { %6376 = vst [vmem:[#allocation127_spill] sm:$0xff] %v4915_v26  ;;  %3418 = vmatpush1.bf16.msra.mxu0 %v3417_v51  ;;  %v1744_v9 = vand.u32 4294901760, %v303_v15  ;;  %v1747_v48 = vand.u32 4294901760, %v306_v30  ;;  %v258_v51 = vld [vmem:[#allocation7 + $0x118] sm:$0xff]  ;;  %v4929_v0 = vsub.f32 %v300_v57, %v1741_v28  ;;  %v3425_v34 = vpack.c.bf16 %v4411_v10, %v4397_v60 }
  0xf3   : > { %3420 = vmatprep.subr.bf16.mxu0 %v3419_v45  ;;  %6377 = vst [vmem:[#allocation128_spill] sm:$0xff] %v4925_v29  ;;  %v4933_v55 = vpack.c.bf16 %v1693_v38, %v1690_v22  ;;  %v3427_v45 = vpack.c.bf16 %v4426_v33, %v4413_v11  ;;  %v4937_v6 = vsub.f32 %v249_v20, %v1690_v22  ;;  %v1696_v28 = vand.u32 4294901760, %v255_v14 }
  0xf4   : > { %v4939_v3 = vsub.f32 %v252_v46, %v1693_v38  ;;  %v3429_v13 = vpack.c.bf16 %v4438_v40, %v4430_v47  ;;  %3686 = vmatpush3.bf16.msra.mxu1 %v4915_v26  ;;  %v4944_v57 = vpack.c.bf16 %v1747_v48, %v1744_v9  ;;  %v1699_v10 = vand.u32 4294901760, %v258_v51  ;;  %v222_v40 = vld [vmem:[%s4332_s11 + $0x18] sm:$0xff]  ;;  %v315_v47 = vld [vmem:[#allocation7 + $0x2e0] sm:$0xff] }
  0xf5   : > { %6378 = vst [vmem:[#allocation129_spill] sm:$0xff] %v4933_v55  ;;  %v1750_v60 = vand.u32 4294901760, %v309_v53  ;;  %v1753_v33 = vand.u32 4294901760, %v312_v41  ;;  %3688 = vmatprep.subr.bf16.mxu1 %v4925_v29  ;;  %v4947_v20 = vsub.f32 %v303_v15, %v1744_v9  ;;  %v4949_v46 = vsub.f32 %v306_v30, %v1747_v48  ;;  %v221_v29 = vld [vmem:[%s4332_s11 + $0x10] sm:$0xff]  ;;  %v267_v15 = vld [vmem:[#allocation7 + $0x160] sm:$0xff]  ;;  %v270_v9 = vld [vmem:[#allocation7 + $0x178] sm:$0xff] }
  0xf6   : > { %3422 = vmatpush1.bf16.msra.mxu0 %v3421_v39  ;;  %6379 = vst [vmem:[#allocation130_spill] sm:$0xff] %v4944_v57  ;;  %v1702_v22 = vand.u32 4294901760, %v261_v42  ;;  %v1705_v38 = vand.u32 4294901760, %v264_v37  ;;  %v318_v39 = vld [vmem:[#allocation7 + $0x2f8] sm:$0xff]  ;;  %v4952_v11 = vpack.c.bf16 %v1699_v10, %v1696_v28  ;;  %v4954_v26 = vsub.f32 %v255_v14, %v1696_v28  ;;  %s5626_s11 = sld [smem:[#allocation2 + $0x11]] }
  0xf7   : > { %3424 = vmatprep.subr.bf16.mxu0 %v3423_v19  ;;  %6380 = vst [vmem:[#allocation131_spill] sm:$0xff] %v4949_v46  ;;  %v3431_v8 = vpack.c.bf16 %v4456_v36, %v4443_v63  ;;  %v3433_v19 = vpack.c.bf16 %v4468_v4, %v4460_v50  ;;  %v4961_v30 = vsub.f32 %v258_v51, %v1699_v10  ;;  %v4972_v28 = vand.u32 4294901760, %v222_v40 }
  0xf8   : > { %6381 = vst [vmem:[#allocation132_spill] sm:$0xff] %v4952_v11  ;;  %v4963_v48 = vpack.c.bf16 %v1753_v33, %v1750_v60  ;;  %v4965_v32 = vsub.f32 %v309_v53, %v1750_v60  ;;  %v4967_v46 = vsub.f32 %v312_v41, %v1753_v33  ;;  %3690 = vmatpush3.bf16.msra.mxu1 %v4933_v55  ;;  %v1756_v36 = vand.u32 4294901760, %v315_v47  ;;  %v6426_v55 = vld [vmem:[#allocation112_spill] sm:$0xff] }
  0xf9   : > { %v4970_v14 = vpack.c.bf16 %v1705_v38, %v1702_v22  ;;  %v1759_v4 = vand.u32 4294901760, %v318_v39  ;;  %3692 = vmatprep.subr.bf16.mxu1 %v4944_v57  ;;  %v4975_v10 = vsub.f32 %v261_v42, %v1702_v22  ;;  %v4977_v51 = vand.u32 4294901760, %v221_v29  ;;  %873 = vmatprep.mubr.f32.mxu0 %v4972_v28  ;;  %v6425_v57 = vld [vmem:[#allocation111_spill] sm:$0xff] }
  0xfa   : > { %6382 = vst [vmem:[#allocation133_spill] sm:$0xff] %v4963_v48  ;;  %3426 = vmatpush1.bf16.msra.mxu0 %v3425_v34  ;;  %v1708_v60 = vand.u32 4294901760, %v267_v15  ;;  %v1711_v53 = vand.u32 4294901760, %v270_v9  ;;  %v4979_v41 = vsub.f32 %v264_v37, %v1705_v38  ;;  %v4982_v33 = vsub.f32 %v222_v40, %v4972_v28 }
  0xfb   : > { %6383 = vst [vmem:[#allocation134_spill] sm:$0xff] %v4970_v14  ;;  %3428 = vmatprep.subr.bf16.mxu0 %v3427_v45  ;;  %v3435_v34 = vpack.c.bf16 %v4486_v1, %v4473_v2  ;;  %v3437_v50 = vpack.c.bf16 %v4498_v58, %v4490_v52  ;;  %v4989_v45 = vpack.c.bf16 %v1759_v4, %v1756_v36  ;;  %v6390_v52 = vand.u32 4294901760, %v4857_v56 }
  0xfc   : > { %v4991_v42 = vsub.f32 %v315_v47, %v1756_v36  ;;  %v4993_v22 = vsub.f32 %v318_v39, %v1759_v4  ;;  %v4996_v37 = vsub.f32 %v221_v29, %v4977_v51  ;;  %875 = vmatmul.mubr.f32.gmra.mrb[2].mxu0 %v4977_v51  ;;  %3694 = vmatpush3.bf16.msra.mxu1 %v4952_v11  ;;  %v5001_v40 = vand.u32 4294901760, %v4982_v33  ;;  %v6424_v11 = vld [vmem:[#allocation108_spill] sm:$0xff] }
  0xfd   : > { %6384 = vst [vmem:[#allocation135_spill] sm:$0xff] %v4989_v45  ;;  %v5003_v38 = vpack.c.bf16 %v1711_v53, %v1708_v60  ;;  %3696 = vmatprep.subr.bf16.mxu1 %v4963_v48  ;;  %v5011_v4 = vsub.f32 %v267_v15, %v1708_v60  ;;  %v6193_v29 = vand.u32 4294901760, %v4861_v62  ;;  %v3439_v58 = vpack.c.bf16 %v4516_v17, %v4503_v23 }
  0xfe   : > { %3430 = vmatpush1.bf16.msra.mxu0 %v3429_v13  ;;  %6385 = vst [vmem:[#allocation136_spill] sm:$0xff] %v5001_v40  ;;  %v5009_v36 = vand.u32 4294901760, %v4996_v37  ;;  %v6194_v13 = vand.u32 4294901760, %v4872_v44  ;;  %v466_v39 = vsub.f32 %v4982_v33, %v5001_v40  ;;  %v6389_v47 = vand.u32 4294901760, %v4837_v5  ;;  %1075 = vmatprep.mubr.f32.mxu0 %v4797_v24 }
  0xff   : > { %6386 = vst [vmem:[#allocation137_spill] sm:$0xff] %v5003_v38  ;;  %3432 = vmatprep.subr.bf16.mxu0 %v3431_v8  ;;  %6388 = vst [vmem:[#allocation139_spill] sm:$0xff] %v5011_v4  ;;  %v1915_v1 = vsub.f32 %v4857_v56, %v6390_v52  ;;  %v1796_v60 = vsub.f32 %v4861_v62, %v6193_v29  ;;  %v6198_v23 = vand.u32 4294901760, %v4875_v16  ;;  %v6197_v63 = vand.u32 4294901760, %v4878_v7 }
 0x100   : > { %6387 = vst [vmem:[#allocation138_spill] sm:$0xff] %v5009_v36  ;;  %v1908_v8 = vsub.f32 %v4837_v5, %v6389_v47  ;;  %v472_v15 = vsub.f32 %v4996_v37, %v5009_v36  ;;  %v1803_v17 = vsub.f32 %v4872_v44, %v6194_v13  ;;  %3698 = vmatpush3.bf16.msra.mxu1 %v4970_v14  ;;  %v467_v47 = vand.u32 4294901760, %v466_v39 }
 0x101   : > { %v1916_v2 = vand.u32 4294901760, %v1915_v1  ;;  %3700 = vmatprep.subr.bf16.mxu1 %v4989_v45  ;;  %v1797_v40 = vand.u32 4294901760, %v1796_v60  ;;  %v1922_v13 = vsub.f32 %v4875_v16, %v6198_v23  ;;  %v5041_v48 = vsub.f32 %v270_v9, %v1711_v53  ;;  %v6393_v23 = vld [vmem:[#allocation60_spill] sm:$0xff] }
 0x102   : > { %3434 = vmatpush1.bf16.msra.mxu0 %v3433_v19  ;;  %v1909_v52 = vand.u32 4294901760, %v1908_v8  ;;  %v473_v36 = vand.u32 4294901760, %v472_v15  ;;  %v1804_v29 = vand.u32 4294901760, %v1803_v17  ;;  %468 = vmatprep.mubr.f32.mxu1 %v467_v47  ;;  %v1929_v1 = vsub.f32 %v4878_v7, %v6197_v63  ;;  %v6392_v63 = vld [vmem:[#allocation118_spill] sm:$0xff] }
 0x103   : > { %3436 = vmatprep.subr.bf16.mxu0 %v3435_v34  ;;  %v6199_v39 = vand.u32 4294901760, %v4886_v59  ;;  %v6391_v34 = vld [vmem:[#allocation59_spill] sm:$0xff]  ;;  %v1923_v17 = vand.u32 4294901760, %v1922_v13  ;;  %v6201_v60 = vand.u32 4294901760, %v4888_v35  ;;  %v6205_v53 = vand.u32 4294901760, %v4890_v27 }
 0x104   : > { %v3703_v19 = vpack.c.bf16 %v1916_v2, %v1909_v52  ;;  %474 = vmatmul.mubr.f32.gmra.mrb[2].mxu1 %v473_v36  ;;  %v3441_v8 = vpack.c.bf16 %v6391_v34, %v4520_v54  ;;  %v3705_v15 = vpack.c.bf16 %v1804_v29, %v1797_v40  ;;  %v1930_v9 = vand.u32 4294901760, %v1929_v1  ;;  %v6394_v40 = vld [vmem:[#allocation62_spill] sm:$0xff]  ;;  %v6397_v54 = vld [vmem:[#allocation65_spill] sm:$0xff] }
 0x105   : > { %3702 = vmatpush3.bf16.msra.mxu1 %v5003_v38  ;;  %v1810_v2 = vsub.f32 %v4886_v59, %v6199_v39  ;;  %v6204_v52 = vand.u32 4294901760, %v4893_v31  ;;  %1766 = vmatprep.mubr.f32.mxu1 %v6392_v63  ;;  %v3443_v29 = vpack.c.bf16 %v6394_v40, %v6393_v23  ;;  %v6208_v13 = vand.u32 4294901760, %v4904_v61  ;;  %v6395_v40 = vld [vmem:[#allocation121_spill] sm:$0xff]  ;;  %v6396_v23 = vld [vmem:[#allocation64_spill] sm:$0xff] }
 0x106   : > { %3438 = vmatpush1.bf16.msra.mxu0 %v3437_v50  ;;  %v1817_v50 = vsub.f32 %v4888_v35, %v6201_v60  ;;  %v6214_v1 = vand.u32 4294901760, %v4906_v43  ;;  %3704 = vmatprep.subr.bf16.mxu1 %v3703_v19  ;;  %v3707_v39 = vpack.c.bf16 %v1930_v9, %v1923_v17  ;;  %v3445_v60 = vpack.c.bf16 %v6397_v54, %v6396_v23  ;;  %v6399_v54 = vld [vmem:[#allocation68_spill] sm:$0xff] }
 0x107   : > { %3440 = vmatprep.subr.bf16.mxu0 %v3439_v58  ;;  %v1811_v34 = vand.u32 4294901760, %v1810_v2  ;;  %v1936_v58 = vsub.f32 %v4890_v27, %v6205_v53  ;;  %v1943_v63 = vsub.f32 %v4893_v31, %v6204_v52  ;;  %v1824_v19 = vsub.f32 %v4904_v61, %v6208_v13 }
 0x108   : > { %1772 = vmatmul.mubr.f32.vlgmr.msra.gmra.mrb[4].mxu1 %v6395_v40  ;;  %v1818_v38 = vand.u32 4294901760, %v1817_v50  ;;  %v1831_v17 = vsub.f32 %v4906_v43, %v6214_v1  ;;  %v6212_v52 = vand.u32 4294901760, %v4908_v21  ;;  %v6211_v40 = vand.u32 4294901760, %v4913_v12  ;;  %v6398_v50 = vld [vmem:[#allocation66_spill] sm:$0xff]  ;;  %v6406_v1 = vld [vmem:[#allocation77_spill] sm:$0xff] }
 0x109   : > { %3706 = vmatpush3.bf16.msra.mxu1 %v3705_v15  ;;  %v1937_v9 = vand.u32 4294901760, %v1936_v58  ;;  %v1944_v2 = vand.u32 4294901760, %v1943_v63  ;;  %v3447_v23 = vpack.c.bf16 %v6399_v54, %v6398_v50  ;;  %v1825_v45 = vand.u32 4294901760, %v1824_v19  ;;  %1781 = vmatprep.mubr.f32.mxu1 %v467_v47  ;;  %v6402_v47 = vld [vmem:[#allocation72_spill] sm:$0xff]  ;;  %v6410_v54 = vld [vmem:[#allocation82_spill] sm:$0xff] }
 0x10a   : > { %3442 = vmatpush1.bf16.msra.mxu0 %v3441_v8  ;;  %3708 = vmatprep.subr.bf16.mxu1 %v3707_v39  ;;  %v3709_v53 = vpack.c.bf16 %v1818_v38, %v1811_v34  ;;  %v1832_v13 = vand.u32 4294901760, %v1831_v17  ;;  %v1950_v8 = vsub.f32 %v4908_v21, %v6212_v52  ;;  %v1957_v15 = vsub.f32 %v4913_v12, %v6211_v40  ;;  %v6401_v39 = vld [vmem:[#allocation71_spill] sm:$0xff]  ;;  %v6403_v52 = vld [vmem:[#allocation74_spill] sm:$0xff] }
 0x10b   : > { %3444 = vmatprep.subr.bf16.mxu0 %v3443_v29  ;;  %v3711_v14 = vpack.c.bf16 %v1944_v2, %v1937_v9  ;;  %v6213_v58 = vand.u32 4294901760, %v4917_v25  ;;  %v6400_v29 = vld [vmem:[#allocation70_spill] sm:$0xff]  ;;  %v6215_v63 = vand.u32 4294901760, %v4920_v18  ;;  %v6216_v19 = vand.u32 4294901760, %v4927_v49 }
 0x10c   : > { %v3449_v38 = vpack.c.bf16 %v6401_v39, %v6400_v29  ;;  %v3713_v34 = vpack.c.bf16 %v1832_v13, %v1825_v45  ;;  %1787 = vmatmul.mubr.f32.gmra.mrb[6].mxu1 %v473_v36  ;;  %v1951_v17 = vand.u32 4294901760, %v1950_v8  ;;  %v1958_v9 = vand.u32 4294901760, %v1957_v15  ;;  %v6404_v15 = vld [vmem:[#allocation110_spill] sm:$0xff] }
 0x10d   : > { %3710 = vmatpush3.bf16.msra.mxu1 %v3709_v53  ;;  %v1838_v2 = vsub.f32 %v4917_v25, %v6213_v58  ;;  %v6217_v40 = vand.u32 4294901760, %v4929_v0  ;;  %v3451_v45 = vpack.c.bf16 %v6403_v52, %v6402_v47  ;;  %v1845_v13 = vsub.f32 %v4920_v18, %v6215_v63  ;;  %2017 = vmatprep.mubr.f32.mxu1 %v6404_v15  ;;  %v6405_v58 = vld [vmem:[#allocation76_spill] sm:$0xff]  ;;  %v6420_v50 = vld [vmem:[#allocation106_spill] sm:$0xff] }
 0x10e   : > { %3446 = vmatpush1.bf16.msra.mxu0 %v3445_v60  ;;  %3712 = vmatprep.subr.bf16.mxu1 %v3711_v14  ;;  %v1964_v36 = vsub.f32 %v4927_v49, %v6216_v19  ;;  %v6218_v60 = vand.u32 4294901760, %v4937_v6  ;;  %v3715_v53 = vpack.c.bf16 %v1958_v9, %v1951_v17  ;;  %v6219_v14 = vand.u32 4294901760, %v4939_v3 }
 0x10f   : > { %3448 = vmatprep.subr.bf16.mxu0 %v3447_v23  ;;  %v1839_v8 = vand.u32 4294901760, %v1838_v2  ;;  %v1971_v23 = vsub.f32 %v4929_v0, %v6217_v40  ;;  %v3453_v52 = vpack.c.bf16 %v6406_v1, %v6405_v58  ;;  %v1846_v63 = vand.u32 4294901760, %v1845_v13  ;;  %v6407_v40 = vld [vmem:[#allocation131_spill] sm:$0xff]  ;;  %v6408_v13 = vld [vmem:[#allocation78_spill] sm:$0xff] }
 0x110   : > { %v1965_v47 = vand.u32 4294901760, %v1964_v36  ;;  %v1852_v19 = vsub.f32 %v4937_v6, %v6218_v60  ;;  %v1859_v9 = vsub.f32 %v4939_v3, %v6219_v14  ;;  %v6220_v2 = vand.u32 4294901760, %v4947_v20  ;;  %v6409_v36 = vld [vmem:[#allocation80_spill] sm:$0xff] }
 0x111   : > { %3714 = vmatpush3.bf16.msra.mxu1 %v3713_v34  ;;  %v1972_v17 = vand.u32 4294901760, %v1971_v23  ;;  %v6221_v39 = vand.u32 4294901760, %v6407_v40  ;;  %v3717_v1 = vpack.c.bf16 %v1846_v63, %v1839_v8  ;;  %v3455_v58 = vpack.c.bf16 %v6409_v36, %v6408_v13  ;;  %v6413_v36 = vld [vmem:[#allocation86_spill] sm:$0xff] }
 0x112   : > { %3450 = vmatpush1.bf16.msra.mxu0 %v3449_v38  ;;  %3716 = vmatprep.subr.bf16.mxu1 %v3715_v53  ;;  %v1853_v29 = vand.u32 4294901760, %v1852_v19  ;;  %v6222_v60 = vand.u32 4294901760, %v4954_v26  ;;  %v1860_v34 = vand.u32 4294901760, %v1859_v9  ;;  %v1978_v23 = vsub.f32 %v4947_v20, %v6220_v2 }
 0x113   : > { %3452 = vmatprep.subr.bf16.mxu0 %v3451_v45  ;;  %v3719_v38 = vpack.c.bf16 %v1972_v17, %v1965_v47  ;;  %v1985_v14 = vsub.f32 %v6407_v40, %v6221_v39  ;;  %v6411_v45 = vld [vmem:[#allocation83_spill] sm:$0xff]  ;;  %v6223_v19 = vand.u32 4294901760, %v4961_v30  ;;  %v6225_v47 = vand.u32 4294901760, %v4965_v32  ;;  %v6412_v39 = vld [vmem:[#allocation84_spill] sm:$0xff] }
 0x114   : > { %v3457_v53 = vpack.c.bf16 %v6411_v45, %v6410_v54  ;;  %v1866_v63 = vsub.f32 %v4954_v26, %v6222_v60  ;;  %v3721_v8 = vpack.c.bf16 %v1860_v34, %v1853_v29  ;;  %v1979_v17 = vand.u32 4294901760, %v1978_v23  ;;  %v6415_v34 = vld [vmem:[#allocation89_spill] sm:$0xff] }
 0x115   : > { %3718 = vmatpush3.bf16.msra.mxu1 %v3717_v1  ;;  %v1986_v9 = vand.u32 4294901760, %v1985_v14  ;;  %v6224_v2 = vand.u32 4294901760, %v4967_v46  ;;  %v3459_v45 = vpack.c.bf16 %v6413_v36, %v6412_v39  ;;  %v1873_v60 = vsub.f32 %v4961_v30, %v6223_v19 }
 0x116   : > { %3454 = vmatpush1.bf16.msra.mxu0 %v3453_v52  ;;  %3720 = vmatprep.subr.bf16.mxu1 %v3719_v38  ;;  %v1867_v54 = vand.u32 4294901760, %v1866_v63  ;;  %v1992_v52 = vsub.f32 %v4965_v32, %v6225_v47  ;;  %v6227_v14 = vand.u32 4294901760, %v4979_v41  ;;  %v6414_v38 = vld [vmem:[#allocation88_spill] sm:$0xff]  ;;  %v6228_v19 = vand.u32 4294901760, %v4991_v42 }
 0x117   : > { %3456 = vmatprep.subr.bf16.mxu0 %v3455_v58  ;;  %v3723_v1 = vpack.c.bf16 %v1986_v9, %v1979_v17  ;;  %v1999_v29 = vsub.f32 %v4967_v46, %v6224_v2  ;;  %v6226_v58 = vand.u32 4294901760, %v4975_v10  ;;  %v3461_v23 = vpack.c.bf16 %v6415_v34, %v6414_v38 }
 0x118   : > { %v1874_v63 = vand.u32 4294901760, %v1873_v60  ;;  %v1993_v36 = vand.u32 4294901760, %v1992_v52  ;;  %v1887_v9 = vsub.f32 %v4979_v41, %v6227_v14  ;;  %v6229_v2 = vand.u32 4294901760, %v4993_v22  ;;  %v6416_v60 = vld [vmem:[#allocation90_spill] sm:$0xff]  ;;  %v6417_v52 = vld [vmem:[#allocation92_spill] sm:$0xff] }
 0x119   : > { %3722 = vmatpush3.bf16.msra.mxu1 %v3721_v8  ;;  %v2000_v39 = vand.u32 4294901760, %v1999_v29  ;;  %v1880_v17 = vsub.f32 %v4975_v10, %v6226_v58  ;;  %v3463_v34 = vpack.c.bf16 %v6417_v52, %v6416_v60  ;;  %v1893_v8 = vand.u32 4294901760, %v5011_v4 }
 0x11a   : > { %3458 = vmatpush1.bf16.msra.mxu0 %v3457_v53  ;;  %3724 = vmatprep.subr.bf16.mxu1 %v3723_v1  ;;  %v3725_v47 = vpack.c.bf16 %v1874_v63, %v1867_v54  ;;  %v2006_v53 = vsub.f32 %v4991_v42, %v6228_v19  ;;  %v1888_v38 = vand.u32 4294901760, %v1887_v9  ;;  %v2013_v14 = vsub.f32 %v4993_v22, %v6229_v2  ;;  %v6418_v1 = vld [vmem:[#allocation94_spill] sm:$0xff]  ;;  %v6419_v63 = vld [vmem:[#allocation95_spill] sm:$0xff] }
 0x11b   : > { %3460 = vmatprep.subr.bf16.mxu0 %v3459_v45  ;;  %v3727_v29 = vpack.c.bf16 %v2000_v39, %v1993_v36  ;;  %v1881_v58 = vand.u32 4294901760, %v1880_v17  ;;  %v1894_v45 = vsub.f32 %v5011_v4, %v1893_v8  ;;  %v1900_v54 = vand.u32 4294901760, %v5041_v48  ;;  %v6421_v39 = vld [vmem:[#allocation107_spill] sm:$0xff]  ;;  %v6422_v17 = vld [vmem:[#allocation96_spill] sm:$0xff]  ;;  %v6423_v9 = vld [vmem:[#allocation98_spill] sm:$0xff] }
 0x11c   : > { %v2007_v13 = vand.u32 4294901760, %v2006_v53  ;;  %v3465_v52 = vpack.c.bf16 %v6419_v63, %v6418_v1  ;;  %v2014_v60 = vand.u32 4294901760, %v2013_v14  ;;  %v3473_v36 = vpack.c.bf16 %v6421_v39, %v6420_v50  ;;  %v6427_v4 = vld [vmem:[#allocation117_spill] sm:$0xff]  ;;  %v6428_v14 = vld [vmem:[#allocation100_spill] sm:$0xff]  ;;  %v6430_v39 = vld [vmem:[#allocation102_spill] sm:$0xff] }
 0x11d   : > { %3726 = vmatpush3.bf16.msra.mxu1 %v3725_v47  ;;  %v3729_v19 = vpack.c.bf16 %v1888_v38, %v1881_v58  ;;  %v3467_v2 = vpack.c.bf16 %v6423_v9, %v6422_v17  ;;  %v1895_v53 = vand.u32 4294901760, %v1894_v45  ;;  %v1901_v15 = vsub.f32 %v5041_v48, %v1900_v54  ;;  %v6429_v38 = vld [vmem:[#allocation101_spill] sm:$0xff]  ;;  %v6431_v45 = vld [vmem:[#allocation104_spill] sm:$0xff] }
 0x11e   : > { %3462 = vmatpush1.bf16.msra.mxu0 %v3461_v23  ;;  %3728 = vmatprep.subr.bf16.mxu1 %v3727_v29  ;;  %v3475_v23 = vpack.c.bf16 %v6425_v57, %v6424_v11  ;;  %v3731_v47 = vpack.c.bf16 %v2014_v60, %v2007_v13  ;;  %v3477_v63 = vpack.c.bf16 %v6427_v4, %v6426_v55  ;;  %v6432_v13 = vand.u32 4294901760, %v4837_v5 }
 0x11f   : > { %3464 = vmatprep.subr.bf16.mxu0 %v3463_v34  ;;  %v1902_v58 = vand.u32 4294901760, %v1901_v15  ;;  %v3469_v34 = vpack.c.bf16 %v6429_v38, %v6428_v14  ;;  %v3471_v50 = vpack.c.bf16 %v6431_v45, %v6430_v39  ;;  %v3735_v9 = vpack.c.bf16 %v4857_v56, %v4837_v5 }
 0x120   : > { %v6433_v60 = vand.u32 4294901760, %v4857_v56  ;;  %v6434_v15 = vand.u32 4294901760, %v4861_v62  ;;  %v6439_v5 = vand.u32 4294901760, %v4888_v35  ;;  %v3737_v56 = vpack.c.bf16 %v4872_v44, %v4861_v62 }
 0x121   : > { %3730 = vmatpush3.bf16.msra.mxu1 %v3729_v19  ;;  %v3733_v29 = vpack.c.bf16 %v1902_v58, %v1895_v53  ;;  %v6435_v19 = vand.u32 4294901760, %v4872_v44  ;;  %v6437_v53 = vand.u32 4294901760, %v4878_v7  ;;  %v6438_v58 = vand.u32 4294901760, %v4886_v59 }
 0x122   : > { %3466 = vmatpush1.bf16.msra.mxu0 %v3465_v52  ;;  %3732 = vmatprep.subr.bf16.mxu1 %v3731_v47  ;;  %v5194_v4 = vpack.c.bf16 %v6433_v60, %v6432_v13  ;;  %v6440_v13 = vand.u32 4294901760, %v4890_v27  ;;  %v6441_v60 = vand.u32 4294901760, %v4893_v31  ;;  %v6445_v62 = vand.u32 4294901760, %v4913_v12 }
 0x123   : > { %3468 = vmatprep.subr.bf16.mxu0 %v3467_v2  ;;  %v5200_v52 = vpack.c.bf16 %v6435_v19, %v6434_v15  ;;  %v6436_v2 = vand.u32 4294901760, %v4875_v16  ;;  %v5212_v55 = vpack.c.bf16 %v6439_v5, %v6438_v58  ;;  %v3739_v19 = vpack.c.bf16 %v4878_v7, %v4875_v16 }
 0x124   : > { %v5220_v15 = vpack.c.bf16 %v6441_v60, %v6440_v13  ;;  %v6446_v58 = vand.u32 4294901760, %v4917_v25  ;;  %v6448_v7 = vand.u32 4294901760, %v4927_v49  ;;  %v6449_v16 = vand.u32 4294901760, %v4929_v0  ;;  %v6450_v13 = vld [vmem:[#allocation115_spill] sm:$0xff] }
 0x125   : > { %v5206_v47 = vpack.c.bf16 %v6437_v53, %v6436_v2  ;;  %3734 = vmatpush3.bf16.msra.mxu1 %v3733_v29  ;;  %v6442_v2 = vand.u32 4294901760, %v4904_v61  ;;  %v6443_v53 = vand.u32 4294901760, %v4906_v43  ;;  %v6444_v29 = vand.u32 4294901760, %v4908_v21 }
 0x126   : > { %3470 = vmatpush1.bf16.msra.mxu0 %v3469_v34  ;;  %3736 = vmatprep.subr.bf16.mxu1 %v3735_v9  ;;  %v5246_v5 = vpack.c.bf16 %v6449_v16, %v6448_v7  ;;  %v6451_v60 = vand.u32 4294901760, %v4937_v6  ;;  %v6455_v7 = vand.u32 4294901760, %v4954_v26  ;;  %v6456_v16 = vand.u32 4294901760, %v4961_v30 }
 0x127   : > { %3472 = vmatprep.subr.bf16.mxu0 %v3471_v50  ;;  %v5228_v34 = vpack.c.bf16 %v6443_v53, %v6442_v2  ;;  %v5234_v44 = vpack.c.bf16 %v6445_v62, %v6444_v29  ;;  %v6447_v50 = vand.u32 4294901760, %v4920_v18  ;;  %v6452_v2 = vand.u32 4294901760, %v4939_v3 }
 0x128   : > { %2019 = vmatmul.mubr.f32.vlgmr.msra.gmra.mrb[8].mxu1 %v6450_v13  ;;  %v6453_v29 = vand.u32 4294901760, %v4947_v20  ;;  %v6454_v62 = vand.u32 4294901760, %v6407_v40  ;;  %v5267_v57 = vpack.c.bf16 %v6456_v16, %v6455_v7  ;;  %v6463_v7 = vld [vmem:[#allocation17_spill] sm:$0xff]  ;;  %v3747_v16 = vpack.c.bf16 %v4913_v12, %v4908_v21  ;;  %v6467_v21 = vld [vmem:[#allocation24_spill] sm:$0xff] }
 0x129   : > { %v5240_v9 = vpack.c.bf16 %v6447_v50, %v6446_v58  ;;  %v5253_v53 = vpack.c.bf16 %v6452_v2, %v6451_v60  ;;  %3738 = vmatpush3.bf16.msra.mxu1 %v3737_v56  ;;  %v3741_v50 = vpack.c.bf16 %v4888_v35, %v4886_v59  ;;  %v3743_v60 = vpack.c.bf16 %v4893_v31, %v4890_v27  ;;  %v6468_v12 = vld [vmem:[#allocation28_spill] sm:$0xff] }
 0x12a   : > { %v5259_v58 = vpack.c.bf16 %v6454_v62, %v6453_v29  ;;  %3474 = vmatpush1.bf16.msra.mxu0 %v3473_v36  ;;  %3740 = vmatprep.subr.bf16.mxu1 %v3739_v19  ;;  %v6457_v2 = vand.u32 4294901760, %v4965_v32  ;;  %v6458_v29 = vand.u32 4294901760, %v4967_v46  ;;  %v6459_v56 = vand.u32 4294901760, %v4975_v10 }
 0x12b   : > { %3476 = vmatprep.subr.bf16.mxu0 %v3475_v23  ;;  %v6460_v59 = vand.u32 4294901760, %v4979_v41  ;;  %2024 = vmatprep.mubr.f32.mxu1 %v4972_v28  ;;  %v6461_v23 = vand.u32 4294901760, %v4991_v42  ;;  %v6462_v19 = vand.u32 4294901760, %v4993_v22  ;;  %v5290_v31 = vpack.c.bf16 %v1900_v54, %v1893_v8  ;;  %v6466_v54 = vld [vmem:[#allocation21_spill] sm:$0xff] }
 0x12c   : > { %v5275_v36 = vpack.c.bf16 %v6458_v29, %v6457_v2  ;;  %2026 = vmatmul.mubr.f32.gmra.mrb[10].mxu1 %v4977_v51  ;;  %v3745_v27 = vpack.c.bf16 %v4906_v43, %v4904_v61  ;;  %v6464_v2 = vld [vmem:[#allocation116_spill] sm:$0xff]  ;;  %v6465_v29 = vld [vmem:[#allocation19_spill] sm:$0xff]  ;;  %v3749_v8 = vpack.c.bf16 %v4920_v18, %v4917_v25  ;;  %v3751_v61 = vpack.c.bf16 %v4929_v0, %v4927_v49  ;;  %v6469_v43 = vld [vmem:[#allocation114_spill] sm:$0xff] }
 0x12d   : > { %v5281_v35 = vpack.c.bf16 %v6460_v59, %v6459_v56  ;;  %v5288_v62 = vpack.c.bf16 %v6462_v19, %v6461_v23  ;;  %3742 = vmatpush3.bf16.msra.mxu1 %v3741_v50  ;;  %2161 = vmatprep.mubr.f32.mxu1 %v4797_v24  ;;  %v3753_v24 = vpack.c.bf16 %v4939_v3, %v4937_v6  ;;  %v6470_v18 = vld [vmem:[#allocation31_spill] sm:$0xff]  ;;  %v6471_v0 = vld [vmem:[#allocation34_spill] sm:$0xff]  ;;  %v6472_v3 = vld [vmem:[#allocation37_spill] sm:$0xff] }
 0x12e   : > { %3478 = vmatpush1.bf16.msra.mxu0 %v3477_v63  ;;  %3744 = vmatprep.subr.bf16.mxu1 %v3743_v60  ;;  %v3755_v25 = vpack.c.bf16 %v6407_v40, %v4947_v20  ;;  %v3757_v49 = vpack.c.bf16 %v4961_v30, %v4954_v26  ;;  %v3759_v6 = vpack.c.bf16 %v4967_v46, %v4965_v32  ;;  %v6473_v40 = vld [vmem:[#allocation39_spill] sm:$0xff]  ;;  %v6476_v60 = vld [vmem:[#allocation45_spill] sm:$0xff]  ;;  %v6483_v56 = vld [vmem:[#allocation122_spill] sm:$0xff] }
 0x12f   : > { %3480 = vmatprep.subr.bf16.mxu0 %v6463_v7  ;;  %v3761_v20 = vpack.c.bf16 %v4979_v41, %v4975_v10  ;;  %v3763_v63 = vpack.c.bf16 %v4993_v22, %v4991_v42  ;;  %v6474_v50 = vld [vmem:[#allocation43_spill] sm:$0xff]  ;;  %v6477_v32 = vld [vmem:[#allocation49_spill] sm:$0xff]  ;;  %v6481_v42 = vld [vmem:[#allocation120_spill] sm:$0xff] }
 0x130   : > { %v6475_v26 = vld [vmem:[#allocation139_spill] sm:$0xff]  ;;  %v6479_v10 = vld [vmem:[#allocation113_spill] sm:$0xff]  ;;  %v6487_v19 = vld [vmem:[#allocation124_spill] sm:$0xff] }
 0x131   : > { %1078 = vmatmul.mubr.f32.vlgmr.msra.gmra.mrb[0].mxu0 %v6464_v2  ;;  %3746 = vmatpush3.bf16.msra.mxu1 %v3745_v27  ;;  %v3765_v30 = vpack.c.bf16 %v5041_v48, %v6475_v26  ;;  %v6478_v46 = vld [vmem:[#allocation51_spill] sm:$0xff]  ;;  %v6482_v22 = vld [vmem:[#allocation57_spill] sm:$0xff] }
 0x132   : > { %3482 = vmatpush1.bf16.msra.mxu0 %v6465_v29  ;;  %3748 = vmatprep.subr.bf16.mxu1 %v3747_v16  ;;  %v6480_v41 = vld [vmem:[#allocation55_spill] sm:$0xff]  ;;  %v6484_v48 = vld [vmem:[#allocation61_spill] sm:$0xff] }
 0x133   : > { %3484 = vmatprep.subr.bf16.mxu0 %v6466_v54  ;;  %1085 = vmatprep.mubr.f32.mxu0 %v4982_v33  ;;  %v6485_v59 = vld [vmem:[#allocation123_spill] sm:$0xff]  ;;  %v6489_v16 = vld [vmem:[#allocation125_spill] sm:$0xff] }
 0x134   : > { %v6486_v23 = vld [vmem:[#allocation63_spill] sm:$0xff] }
 0x135   : > { %1088 = vmatmul.mubr.f32.gmra.mrb[2].mxu0 %v4996_v37  ;;  %3750 = vmatpush3.bf16.msra.mxu1 %v3749_v8  ;;  %v6488_v27 = vld [vmem:[#allocation67_spill] sm:$0xff]  ;;  %v6491_v8 = vld [vmem:[#allocation126_spill] sm:$0xff] }
 0x136   : > { %3486 = vmatpush1.bf16.msra.mxu0 %v6467_v21  ;;  %3752 = vmatprep.subr.bf16.mxu1 %v3751_v61  ;;  %v6494_v61 = vld [vmem:[#allocation75_spill] sm:$0xff] }
 0x137   : > { %3488 = vmatprep.subr.bf16.mxu0 %v6468_v12  ;;  %1225 = vmatprep.mubr.f32.mxu0 %v6469_v43  ;;  %v6502_v26 = vld [vmem:[#allocation87_spill] sm:$0xff] }
 0x139   : > { %3754 = vmatpush3.bf16.msra.mxu1 %v3753_v24  ;;  %v6495_v24 = vld [vmem:[#allocation128_spill] sm:$0xff] }
 0x13a   : > { %3490 = vmatpush1.bf16.msra.mxu0 %v6470_v18  ;;  %3756 = vmatprep.subr.bf16.mxu1 %v3755_v25  ;;  %v6496_v25 = vld [vmem:[#allocation79_spill] sm:$0xff] }
 0x13b   : > { %3492 = vmatprep.subr.bf16.mxu0 %v6471_v0 }
 0x13d   : > { %3758 = vmatpush3.bf16.msra.mxu1 %v3757_v49  ;;  %v6497_v49 = vld [vmem:[#allocation129_spill] sm:$0xff] }
 0x13e   : > { %3494 = vmatpush1.bf16.msra.mxu0 %v6472_v3  ;;  %3760 = vmatprep.subr.bf16.mxu1 %v3759_v6  ;;  %v6499_v6 = vld [vmem:[#allocation130_spill] sm:$0xff] }
 0x13f   : > { %3496 = vmatprep.subr.bf16.mxu0 %v6473_v40 }
 0x141   : > { %3762 = vmatpush3.bf16.msra.mxu1 %v3761_v20  ;;  %v6500_v20 = vld [vmem:[#allocation85_spill] sm:$0xff] }
 0x142   : > { %3498 = vmatpush1.bf16.msra.mxu0 %v6474_v50  ;;  %3764 = vmatprep.subr.bf16.mxu1 %v3763_v63  ;;  %v6501_v63 = vld [vmem:[#allocation132_spill] sm:$0xff]  ;;  %v6529_v50 = vld [vmem:[#allocation110_spill] sm:$0xff] }
 0x143   : > { %3500 = vmatprep.subr.bf16.mxu0 %v6476_v60 }
 0x145   : > { %3766 = vmatpush3.bf16.msra.mxu1 %v3765_v30  ;;  %v6503_v30 = vld [vmem:[#allocation133_spill] sm:$0xff] }
 0x146   : > { %3502 = vmatpush1.bf16.msra.mxu0 %v6477_v32  ;;  %3768 = vmatprep.subr.bf16.mxu1 %v6479_v10 }
 0x147   : > { %3504 = vmatprep.subr.bf16.mxu0 %v6478_v46  ;;  %v6518_v46 = vld [vmem:[#allocation136_spill] sm:$0xff] }
 0x148   : > { %2164 = vmatmul.mubr.f32.vlgmr.msra.gmra.mrb[12].mxu1 %v6464_v2  ;;  %v6490_v2 = vld [vmem:[#allocation69_spill] sm:$0xff] }
 0x149   : > { %3770 = vmatpush3.bf16.msra.mxu1 %v6481_v42  ;;  %2170 = vmatprep.mubr.f32.mxu1 %v4982_v33  ;;  %v6492_v33 = vld [vmem:[#allocation73_spill] sm:$0xff] }
 0x14a   : > { %3506 = vmatpush1.bf16.msra.mxu0 %v6480_v41  ;;  %3772 = vmatprep.subr.bf16.mxu1 %v6483_v56 }
 0x14b   : > { %3508 = vmatprep.subr.bf16.mxu0 %v6482_v22  ;;  %v6516_v22 = vld [vmem:[#allocation26_spill] sm:$0xff] }
 0x14c   : > { %2173 = vmatmul.mubr.f32.gmra.mrb[14].mxu1 %v4996_v37  ;;  %v6493_v37 = vld [vmem:[#allocation127_spill] sm:$0xff] }
 0x14d   : > { %3774 = vmatpush3.bf16.msra.mxu1 %v6485_v59  ;;  %2277 = vmatprep.mubr.f32.mxu1 %v6469_v43  ;;  %v6498_v43 = vld [vmem:[#allocation81_spill] sm:$0xff] }
 0x14e   : > { %3510 = vmatpush1.bf16.msra.mxu0 %v6484_v48  ;;  %3776 = vmatprep.subr.bf16.mxu1 %v6487_v19 }
 0x14f   : > { %3512 = vmatprep.subr.bf16.mxu0 %v6486_v23  ;;  %v6510_v23 = vld [vmem:[#allocation99_spill] sm:$0xff] }
 0x151   : > { %3778 = vmatpush3.bf16.msra.mxu1 %v6489_v16 }
 0x152   : > { %3514 = vmatpush1.bf16.msra.mxu0 %v6488_v27  ;;  %3780 = vmatprep.subr.bf16.mxu1 %v6491_v8  ;;  %v6508_v27 = vld [vmem:[#allocation97_spill] sm:$0xff] }
 0x153   : > { %3516 = vmatprep.subr.bf16.mxu0 %v6490_v2  ;;  %v6506_v2 = vld [vmem:[#allocation93_spill] sm:$0xff] }
 0x155   : > { %3782 = vmatpush3.bf16.msra.mxu1 %v6493_v37 }
 0x156   : > { %3518 = vmatpush1.bf16.msra.mxu0 %v6492_v33  ;;  %3784 = vmatprep.subr.bf16.mxu1 %v6495_v24  ;;  %v6504_v33 = vld [vmem:[#allocation91_spill] sm:$0xff] }
 0x157   : > { %3520 = vmatprep.subr.bf16.mxu0 %v6494_v61  ;;  %v6505_v61 = vld [vmem:[#allocation134_spill] sm:$0xff] }
 0x159   : > { %3786 = vmatpush3.bf16.msra.mxu1 %v6497_v49 }
 0x15a   : > { %3522 = vmatpush1.bf16.msra.mxu0 %v6496_v25  ;;  %3788 = vmatprep.subr.bf16.mxu1 %v6499_v6  ;;  %v6507_v25 = vld [vmem:[#allocation135_spill] sm:$0xff] }
 0x15b   : > { %3524 = vmatprep.subr.bf16.mxu0 %v6498_v43  ;;  %v6509_v43 = vld [vmem:[#allocation137_spill] sm:$0xff] }
 0x15d   : > { %3790 = vmatpush3.bf16.msra.mxu1 %v6501_v63 }
 0x15e   : > { %3526 = vmatpush1.bf16.msra.mxu0 %v6500_v20  ;;  %3792 = vmatprep.subr.bf16.mxu1 %v6503_v30  ;;  %v6511_v20 = vld [vmem:[#allocation119_spill] sm:$0xff] }
 0x15f   : > { %3528 = vmatprep.subr.bf16.mxu0 %v6502_v26  ;;  %v6512_v26 = vld [vmem:[#allocation103_spill] sm:$0xff] }
 0x161   : > { %3794 = vmatpush3.bf16.msra.mxu1 %v6505_v61 }
 0x162   : > { %3530 = vmatpush1.bf16.msra.mxu0 %v6504_v33  ;;  %3796 = vmatprep.subr.bf16.mxu1 %v6507_v25  ;;  %v6513_v33 = vld [vmem:[#allocation105_spill] sm:$0xff] }
 0x163   : > { %3532 = vmatprep.subr.bf16.mxu0 %v6506_v2  ;;  %v6514_v2 = vld [vmem:[#allocation25_spill] sm:$0xff] }
 0x164   : > { %v6515_v48 = vand.u32 4294901760, %v6514_v2 }
 0x165   : > { %3798 = vmatpush3.bf16.msra.mxu1 %v6509_v43 }
 0x166   : > { %3534 = vmatpush1.bf16.msra.mxu0 %v6508_v27  ;;  %3800 = vmatprep.subr.bf16.mxu1 %v5194_v4  ;;  %v6517_v27 = vand.u32 4294901760, %v6516_v22  ;;  %v6520_v4 = vld [vmem:[#allocation109_spill] sm:$0xff]  ;;  %v6527_v22 = vld [vmem:[#allocation23_spill] sm:$0xff] }
 0x167   : > { %3536 = vmatprep.subr.bf16.mxu0 %v6510_v23  ;;  %v6519_v23 = vld [vmem:[#allocation138_spill] sm:$0xff] }
 0x168   : > { %2281 = vmatmul.mubr.f32.vlgmr.msra.gmra.mrb[16].mxu1 %v6511_v20  ;;  %v3543_v41 = vpack.c.bf16 %v6517_v27, %v6515_v48  ;;  %v6528_v48 = vand.u32 4294901760, %v6527_v22 }
 0x169   : > { %3802 = vmatpush3.bf16.msra.mxu1 %v5200_v52  ;;  %2288 = vmatprep.mubr.f32.mxu1 %v6518_v46  ;;  %v6523_v52 = vld [vmem:[#allocation20_spill] sm:$0xff] }
 0x16a   : > { %3538 = vmatpush1.bf16.msra.mxu0 %v6512_v26  ;;  %3804 = vmatprep.subr.bf16.mxu1 %v5206_v47  ;;  %v6521_v26 = vld [vmem:[#allocation18_spill] sm:$0xff]  ;;  %v6524_v60 = vand.u32 4294901760, %v6523_v52 }
 0x16b   : > { %3540 = vmatprep.subr.bf16.mxu0 %v6513_v33  ;;  %v6522_v32 = vand.u32 4294901760, %v6521_v26  ;;  %v6525_v47 = vld [vmem:[#allocation22_spill] sm:$0xff] }
 0x16c   : > { %2292 = vmatmul.mubr.f32.gmra.mrb[18].mxu1 %v6519_v23  ;;  %v6526_v2 = vand.u32 4294901760, %v6525_v47 }
 0x16d   : > { %3806 = vmatpush3.bf16.msra.mxu1 %v5212_v55  ;;  %v3545_v33 = vpack.c.bf16 %v6524_v60, %v6522_v32  ;;  %2458 = vmatprep.mubr.f32.mxu1 %v6529_v50  ;;  %v6530_v55 = vld [vmem:[#allocation27_spill] sm:$0xff] }
 0x16e   : > { %3542 = vmatpush1.bf16.msra.mxu0 %v6520_v4  ;;  %3808 = vmatprep.subr.bf16.mxu1 %v5220_v15  ;;  %v3547_v27 = vpack.c.bf16 %v6528_v48, %v6526_v2  ;;  %v6531_v26 = vand.u32 4294901760, %v6530_v55  ;;  %v6532_v4 = vld [vmem:[#allocation29_spill] sm:$0xff]  ;;  %v6534_v15 = vld [vmem:[#allocation30_spill] sm:$0xff] }
 0x16f   : > { %3544 = vmatprep.subr.bf16.mxu0 %v3543_v41  ;;  %v6533_v52 = vand.u32 4294901760, %v6532_v4  ;;  %v6535_v32 = vand.u32 4294901760, %v6534_v15  ;;  %v6536_v41 = vld [vmem:[#allocation32_spill] sm:$0xff]  ;;  %v6550_v15 = vld [vmem:[#allocation42_spill] sm:$0xff] }
 0x170   : > { %v6537_v47 = vand.u32 4294901760, %v6536_v41 }
 0x171   : > { %1229 = vmatmul.mubr.f32.vlgmr.msra.gmra.mrb[0].mxu0 %v6511_v20  ;;  %3810 = vmatpush3.bf16.msra.mxu1 %v5228_v34  ;;  %v3549_v60 = vpack.c.bf16 %v6533_v52, %v6531_v26  ;;  %v6538_v34 = vld [vmem:[#allocation33_spill] sm:$0xff]  ;;  %v6540_v20 = vld [vmem:[#allocation35_spill] sm:$0xff] }
 0x172   : > { %3546 = vmatpush1.bf16.msra.mxu0 %v3545_v33  ;;  %3812 = vmatprep.subr.bf16.mxu1 %v5234_v44  ;;  %v3551_v2 = vpack.c.bf16 %v6537_v47, %v6535_v32  ;;  %v6539_v33 = vand.u32 4294901760, %v6538_v34  ;;  %v6541_v4 = vand.u32 4294901760, %v6540_v20  ;;  %v6542_v44 = vld [vmem:[#allocation36_spill] sm:$0xff] }
 0x173   : > { %3548 = vmatprep.subr.bf16.mxu0 %v3547_v27  ;;  %1237 = vmatprep.mubr.f32.mxu0 %v6518_v46  ;;  %v6543_v48 = vand.u32 4294901760, %v6542_v44  ;;  %v6544_v27 = vld [vmem:[#allocation38_spill] sm:$0xff]  ;;  %v6546_v46 = vld [vmem:[#allocation40_spill] sm:$0xff] }
 0x174   : > { %v3553_v22 = vpack.c.bf16 %v6541_v4, %v6539_v33  ;;  %v6545_v55 = vand.u32 4294901760, %v6544_v27  ;;  %v6552_v32 = vld [vmem:[#allocation44_spill] sm:$0xff]  ;;  %v6556_v33 = vld [vmem:[#allocation47_spill] sm:$0xff]  ;;  %v6560_v44 = vld [vmem:[#allocation50_spill] sm:$0xff] }
 0x175   : > { %1241 = vmatmul.mubr.f32.gmra.mrb[2].mxu0 %v6519_v23  ;;  %3814 = vmatpush3.bf16.msra.mxu1 %v5240_v9  ;;  %v6547_v9 = vand.u32 4294901760, %v6546_v46  ;;  %v6548_v23 = vld [vmem:[#allocation41_spill] sm:$0xff]  ;;  %v6553_v41 = vand.u32 4294901760, %v6552_v32  ;;  %v6558_v4 = vld [vmem:[#allocation48_spill] sm:$0xff]  ;;  %v6572_v32 = vld [vmem:[#allocation59_spill] sm:$0xff] }
 0x176   : > { %3550 = vmatpush1.bf16.msra.mxu0 %v3549_v60  ;;  %3816 = vmatprep.subr.bf16.mxu1 %v5246_v5  ;;  %v3555_v26 = vpack.c.bf16 %v6545_v55, %v6543_v48  ;;  %v6549_v52 = vand.u32 4294901760, %v6548_v23  ;;  %v6551_v5 = vand.u32 4294901760, %v6550_v15  ;;  %v6562_v27 = vld [vmem:[#allocation52_spill] sm:$0xff]  ;;  %v6570_v15 = vld [vmem:[#allocation58_spill] sm:$0xff] }
 0x177   : > { %3552 = vmatprep.subr.bf16.mxu0 %v3551_v2  ;;  %1504 = vmatprep.mubr.f32.mxu0 %v6529_v50  ;;  %v6554_v2 = vld [vmem:[#allocation46_spill] sm:$0xff]  ;;  %v6563_v55 = vand.u32 4294901760, %v6562_v27 }
 0x178   : > { %v3557_v60 = vpack.c.bf16 %v6549_v52, %v6547_v9  ;;  %v3559_v47 = vpack.c.bf16 %v6553_v41, %v6551_v5  ;;  %v6555_v34 = vand.u32 4294901760, %v6554_v2  ;;  %v6566_v9 = vld [vmem:[#allocation54_spill] sm:$0xff]  ;;  %v6568_v52 = vld [vmem:[#allocation56_spill] sm:$0xff]  ;;  %v6571_v5 = vand.u32 4294901760, %v6570_v15  ;;  %v6596_v15 = vld [vmem:[#allocation77_spill] sm:$0xff] }
 0x179   : > { %3818 = vmatpush3.bf16.msra.mxu1 %v5253_v53  ;;  %v6557_v53 = vand.u32 4294901760, %v6556_v33  ;;  %v6567_v23 = vand.u32 4294901760, %v6566_v9  ;;  %v6590_v9 = vld [vmem:[#allocation72_spill] sm:$0xff] }
 0x17a   : > { %3554 = vmatpush1.bf16.msra.mxu0 %v3553_v22  ;;  %3820 = vmatprep.subr.bf16.mxu1 %v5259_v58  ;;  %v6559_v22 = vand.u32 4294901760, %v6558_v4  ;;  %v6561_v58 = vand.u32 4294901760, %v6560_v44  ;;  %v6582_v44 = vld [vmem:[#allocation66_spill] sm:$0xff] }
 0x17b   : > { %3556 = vmatprep.subr.bf16.mxu0 %v3555_v26  ;;  %v3561_v20 = vpack.c.bf16 %v6557_v53, %v6555_v34  ;;  %v6564_v26 = vld [vmem:[#allocation53_spill] sm:$0xff]  ;;  %v6576_v34 = vld [vmem:[#allocation62_spill] sm:$0xff]  ;;  %v6578_v53 = vld [vmem:[#allocation64_spill] sm:$0xff] }
 0x17c   : > { %v3563_v48 = vpack.c.bf16 %v6561_v58, %v6559_v22  ;;  %v6584_v58 = vld [vmem:[#allocation68_spill] sm:$0xff] }
 0x17d   : > { %3822 = vmatpush3.bf16.msra.mxu1 %v5267_v57  ;;  %v6565_v57 = vand.u32 4294901760, %v6564_v26  ;;  %v6588_v26 = vld [vmem:[#allocation71_spill] sm:$0xff] }
 0x17e   : > { %3558 = vmatpush1.bf16.msra.mxu0 %v3557_v60  ;;  %3824 = vmatprep.subr.bf16.mxu1 %v5275_v36  ;;  %v6569_v36 = vand.u32 4294901760, %v6568_v52  ;;  %v6592_v52 = vld [vmem:[#allocation74_spill] sm:$0xff] }
 0x17f   : > { %3560 = vmatprep.subr.bf16.mxu0 %v3559_v47  ;;  %v3565_v46 = vpack.c.bf16 %v6565_v57, %v6563_v55  ;;  %v6574_v47 = vld [vmem:[#allocation60_spill] sm:$0xff]  ;;  %v6589_v57 = vand.u32 4294901760, %v6588_v26 }
 0x180   : > { %v3567_v60 = vpack.c.bf16 %v6569_v36, %v6567_v23  ;;  %v6575_v2 = vand.u32 4294901760, %v6574_v47  ;;  %v6591_v23 = vand.u32 4294901760, %v6590_v9  ;;  %v6593_v36 = vand.u32 4294901760, %v6592_v52  ;;  %v6622_v52 = vld [vmem:[#allocation98_spill] sm:$0xff] }
 0x181   : > { %3826 = vmatpush3.bf16.msra.mxu1 %v5281_v35  ;;  %v6573_v35 = vand.u32 4294901760, %v6572_v32 }
 0x182   : > { %3562 = vmatpush1.bf16.msra.mxu0 %v3561_v20  ;;  %3828 = vmatprep.subr.bf16.mxu1 %v5288_v62  ;;  %v6577_v62 = vand.u32 4294901760, %v6576_v34  ;;  %v6580_v20 = vld [vmem:[#allocation65_spill] sm:$0xff]  ;;  %v6602_v34 = vld [vmem:[#allocation82_spill] sm:$0xff] }
 0x183   : > { %3564 = vmatprep.subr.bf16.mxu0 %v3563_v48  ;;  %v3569_v41 = vpack.c.bf16 %v6573_v35, %v6571_v5  ;;  %v6581_v4 = vand.u32 4294901760, %v6580_v20  ;;  %v6585_v48 = vand.u32 4294901760, %v6584_v58  ;;  %v6597_v5 = vand.u32 4294901760, %v6596_v15  ;;  %v6598_v35 = vld [vmem:[#allocation78_spill] sm:$0xff]  ;;  %v6612_v58 = vld [vmem:[#allocation89_spill] sm:$0xff] }
 0x184   : > { %v3571_v33 = vpack.c.bf16 %v6577_v62, %v6575_v2  ;;  %v6603_v62 = vand.u32 4294901760, %v6602_v34  ;;  %v6650_v34 = vld [vmem:[#allocation75_spill] sm:$0xff] }
 0x185   : > { %3830 = vmatpush3.bf16.msra.mxu1 %v5290_v31  ;;  %v6579_v31 = vand.u32 4294901760, %v6578_v53 }
 0x186   : > { %3566 = vmatpush1.bf16.msra.mxu0 %v3565_v46  ;;  %3832 = vmatprep.subr.bf16.mxu1 %v6479_v10  ;;  %v6583_v10 = vand.u32 4294901760, %v6582_v44  ;;  %v6610_v44 = vld [vmem:[#allocation88_spill] sm:$0xff] }
 0x187   : > { %3568 = vmatprep.subr.bf16.mxu0 %v3567_v60  ;;  %v3573_v22 = vpack.c.bf16 %v6581_v4, %v6579_v31  ;;  %v3579_v60 = vpack.c.bf16 %v6593_v36, %v6591_v23  ;;  %v6606_v31 = vld [vmem:[#allocation84_spill] sm:$0xff]  ;;  %v6608_v4 = vld [vmem:[#allocation86_spill] sm:$0xff]  ;;  %v6621_v23 = vand.u32 4294901760, %v6422_v17 }
 0x188   : > { %2460 = vmatmul.mubr.f32.vlgmr.msra.gmra.mrb[20].mxu1 %v6450_v13  ;;  %v3575_v27 = vpack.c.bf16 %v6585_v48, %v6583_v10  ;;  %v6607_v20 = vand.u32 4294901760, %v6606_v31  ;;  %v6611_v10 = vand.u32 4294901760, %v6610_v44  ;;  %v6628_v17 = vld [vmem:[#allocation106_spill] sm:$0xff] }
 0x189   : > { %3834 = vmatpush3.bf16.msra.mxu1 %v6481_v42  ;;  %2465 = vmatprep.mubr.f32.mxu1 %v4972_v28  ;;  %v6586_v42 = vld [vmem:[#allocation70_spill] sm:$0xff]  ;;  %v6629_v15 = vand.u32 4294901760, %v6628_v17 }
 0x18a   : > { %3570 = vmatpush1.bf16.msra.mxu0 %v3569_v41  ;;  %3836 = vmatprep.subr.bf16.mxu1 %v6483_v56  ;;  %v6587_v55 = vand.u32 4294901760, %v6586_v42  ;;  %v6594_v56 = vld [vmem:[#allocation76_spill] sm:$0xff] }
 0x18b   : > { %3572 = vmatprep.subr.bf16.mxu0 %v3571_v33  ;;  %v6600_v41 = vld [vmem:[#allocation80_spill] sm:$0xff]  ;;  %v6604_v33 = vld [vmem:[#allocation83_spill] sm:$0xff] }
 0x18c   : > { %2467 = vmatmul.mubr.f32.gmra.mrb[22].mxu1 %v4977_v51  ;;  %v3577_v46 = vpack.c.bf16 %v6589_v57, %v6587_v55  ;;  %v6601_v47 = vand.u32 4294901760, %v6600_v41  ;;  %v6616_v55 = vld [vmem:[#allocation92_spill] sm:$0xff]  ;;  %v6618_v57 = vand.u32 4294901760, %v6418_v1  ;;  %v6626_v1 = vand.u32 4294901760, %v6430_v39 }
 0x18d   : > { %3838 = vmatpush3.bf16.msra.mxu1 %v6485_v59  ;;  %2569 = vmatprep.mubr.f32.mxu1 %v6529_v50  ;;  %v6595_v59 = vand.u32 4294901760, %v6594_v56  ;;  %v6635_v39 = vld [vmem:[#allocation112_spill] sm:$0xff] }
 0x18e   : > { %3574 = vmatpush1.bf16.msra.mxu0 %v3573_v22  ;;  %3840 = vmatprep.subr.bf16.mxu1 %v6487_v19  ;;  %v6599_v19 = vand.u32 4294901760, %v6598_v35 }
 0x18f   : > { %3576 = vmatprep.subr.bf16.mxu0 %v3575_v27  ;;  %v3581_v32 = vpack.c.bf16 %v6597_v5, %v6595_v59  ;;  %v6614_v27 = vld [vmem:[#allocation90_spill] sm:$0xff]  ;;  %v6630_v5 = vld [vmem:[#allocation107_spill] sm:$0xff] }
 0x190   : > { %v3583_v2 = vpack.c.bf16 %v6601_v47, %v6599_v19  ;;  %v6615_v42 = vand.u32 4294901760, %v6614_v27  ;;  %v6646_v47 = vld [vmem:[#allocation63_spill] sm:$0xff]  ;;  %v6657_v27 = vld [vmem:[#allocation97_spill] sm:$0xff] }
 0x191   : > { %3842 = vmatpush3.bf16.msra.mxu1 %v6489_v16  ;;  %v6605_v16 = vand.u32 4294901760, %v6604_v33 }
 0x192   : > { %3578 = vmatpush1.bf16.msra.mxu0 %v3577_v46  ;;  %3844 = vmatprep.subr.bf16.mxu1 %v6491_v8  ;;  %v6609_v8 = vand.u32 4294901760, %v6608_v4  ;;  %v6619_v46 = vld [vmem:[#allocation95_spill] sm:$0xff]  ;;  %v6653_v4 = vld [vmem:[#allocation85_spill] sm:$0xff] }
 0x193   : > { %3580 = vmatprep.subr.bf16.mxu0 %v3579_v60  ;;  %v3585_v53 = vpack.c.bf16 %v6605_v16, %v6603_v62  ;;  %v6624_v60 = vand.u32 4294901760, %v6428_v14  ;;  %v6632_v14 = vand.u32 4294901760, %v6424_v11  ;;  %v6651_v16 = vld [vmem:[#allocation79_spill] sm:$0xff] }
 0x194   : > { %v3587_v22 = vpack.c.bf16 %v6609_v8, %v6607_v20 }
 0x195   : > { %3846 = vmatpush3.bf16.msra.mxu1 %v6493_v37  ;;  %v6613_v37 = vand.u32 4294901760, %v6612_v58  ;;  %v6655_v58 = vld [vmem:[#allocation91_spill] sm:$0xff] }
 0x196   : > { %3582 = vmatpush1.bf16.msra.mxu0 %v3581_v32  ;;  %3848 = vmatprep.subr.bf16.mxu1 %v6495_v24  ;;  %v6617_v24 = vand.u32 4294901760, %v6616_v55  ;;  %v6659_v55 = vld [vmem:[#allocation103_spill] sm:$0xff] }
 0x197   : > { %3584 = vmatprep.subr.bf16.mxu0 %v3583_v2  ;;  %v3589_v48 = vpack.c.bf16 %v6613_v37, %v6611_v10  ;;  %v6647_v2 = vld [vmem:[#allocation67_spill] sm:$0xff] }
 0x198   : > { %v3591_v26 = vpack.c.bf16 %v6617_v24, %v6615_v42  ;;  %v6658_v42 = vld [vmem:[#allocation99_spill] sm:$0xff]  ;;  %v6660_v24 = vld [vmem:[#allocation105_spill] sm:$0xff] }
 0x199   : > { %3850 = vmatpush3.bf16.msra.mxu1 %v6497_v49  ;;  %v6620_v49 = vand.u32 4294901760, %v6619_v46 }
 0x19a   : > { %3586 = vmatpush1.bf16.msra.mxu0 %v3585_v53  ;;  %3852 = vmatprep.subr.bf16.mxu1 %v6499_v6  ;;  %v6623_v6 = vand.u32 4294901760, %v6622_v52  ;;  %v6652_v53 = vld [vmem:[#allocation81_spill] sm:$0xff] }
 0x19b   : > { %3588 = vmatprep.subr.bf16.mxu0 %v3587_v22  ;;  %v3593_v9 = vpack.c.bf16 %v6620_v49, %v6618_v57  ;;  %v6654_v22 = vld [vmem:[#allocation87_spill] sm:$0xff] }
 0x19c   : > { %v3595_v36 = vpack.c.bf16 %v6623_v6, %v6621_v23 }
 0x19d   : > { %3854 = vmatpush3.bf16.msra.mxu1 %v6501_v63  ;;  %v6625_v63 = vand.u32 4294901760, %v6429_v38  ;;  %v6633_v38 = vld [vmem:[#allocation111_spill] sm:$0xff] }
 0x19e   : > { %3590 = vmatpush1.bf16.msra.mxu0 %v3589_v48  ;;  %3856 = vmatprep.subr.bf16.mxu1 %v6503_v30  ;;  %v6627_v30 = vand.u32 4294901760, %v6431_v45  ;;  %v6634_v35 = vand.u32 4294901760, %v6633_v38  ;;  %v6636_v45 = vand.u32 4294901760, %v6635_v39  ;;  %v6656_v48 = vld [vmem:[#allocation93_spill] sm:$0xff] }
 0x19f   : > { %3592 = vmatprep.subr.bf16.mxu0 %v3591_v26  ;;  %v3597_v56 = vpack.c.bf16 %v6625_v63, %v6624_v60  ;;  %v6661_v26 = vld [vmem:[#allocation109_spill] sm:$0xff] }
 0x1a0   : > { %v3599_v59 = vpack.c.bf16 %v6627_v30, %v6626_v1  ;;  %v3603_v19 = vpack.c.bf16 %v6634_v35, %v6632_v14 }
 0x1a1   : > { %3858 = vmatpush3.bf16.msra.mxu1 %v6505_v61  ;;  %v6631_v61 = vand.u32 4294901760, %v6630_v5 }
 0x1a2   : > { %3594 = vmatpush1.bf16.msra.mxu0 %v3593_v9  ;;  %3860 = vmatprep.subr.bf16.mxu1 %v6507_v25  ;;  %v6637_v25 = vld [vmem:[#allocation117_spill] sm:$0xff] }
 0x1a3   : > { %3596 = vmatprep.subr.bf16.mxu0 %v3595_v36  ;;  %v3601_v32 = vpack.c.bf16 %v6631_v61, %v6629_v15 }
 0x1a5   : > { %3862 = vmatpush3.bf16.msra.mxu1 %v6509_v43  ;;  %v6638_v43 = vand.u32 4294901760, %v6637_v25 }
 0x1a6   : > { %3598 = vmatpush1.bf16.msra.mxu0 %v3597_v56 }
 0x1a7   : > { %3600 = vmatprep.subr.bf16.mxu0 %v3599_v59  ;;  %v3605_v41 = vpack.c.bf16 %v6638_v43, %v6636_v45 }
 0x1a8   : > { %2571 = vmatmul.mubr.f32.vlgmr.msra.gmra.mrb[24].mxu1 %v6450_v13 }
 0x1a9   : > { %2576 = vmatprep.mubr.f32.mxu1 %v4972_v28 }
 0x1aa   : > { %3602 = vmatpush1.bf16.msra.mxu0 %v3601_v32 }
 0x1ab   : > { %3604 = vmatprep.subr.bf16.mxu0 %v3603_v19 }
 0x1ac   : > { %2578 = vmatmul.mubr.f32.gmra.mrb[26].mxu1 %v4977_v51 }
 0x1ae   : > { %3606 = vmatpush1.bf16.msra.mxu0 %v3605_v41 }
 0x1af   : > { %3608 = vmatprep.subr.bf16.mxu0 %v6463_v7 }
 0x1b1   : > { %1506 = vmatmul.mubr.f32.vlgmr.msra.gmra.mrb[0].mxu0 %v6450_v13 }
 0x1b2   : > { %3610 = vmatpush1.bf16.msra.mxu0 %v6465_v29  ;;  %1512 = vmatprep.mubr.f32.mxu0 %v4972_v28  ;;  %v6639_v29 = vld [vmem:[#allocation43_spill] sm:$0xff] }
 0x1b3   : > { %3612 = vmatprep.subr.bf16.mxu0 %v6466_v54  ;;  %v6640_v54 = vld [vmem:[#allocation45_spill] sm:$0xff] }
 0x1b5   : > { %1514 = vmatmul.mubr.f32.gmra.mrb[2].mxu0 %v4977_v51 }
 0x1b6   : > { %3614 = vmatpush1.bf16.msra.mxu0 %v6467_v21  ;;  %1649 = vmatprep.mubr.f32.mxu0 %v6529_v50  ;;  %v6641_v21 = vld [vmem:[#allocation49_spill] sm:$0xff]  ;;  %v6642_v50 = vld [vmem:[#allocation51_spill] sm:$0xff] }
 0x1b7   : > { %3616 = vmatprep.subr.bf16.mxu0 %v6468_v12  ;;  %v6643_v12 = vld [vmem:[#allocation55_spill] sm:$0xff] }
 0x1ba   : > { %3618 = vmatpush1.bf16.msra.mxu0 %v6470_v18  ;;  %v5558_v11 = vpop.f32.mrb[0].mxu1  ;;  %v6644_v18 = vld [vmem:[#allocation57_spill] sm:$0xff] }
 0x1bb   : > { %3620 = vmatprep.subr.bf16.mxu0 %v6471_v0  ;;  %v5560_v7 = vpop.f32.mrb[1].mxu1  ;;  %v6645_v0 = vld [vmem:[#allocation61_spill] sm:$0xff] }
 0x1be   : > { %3622 = vmatpush1.bf16.msra.mxu0 %v6472_v3  ;;  %v6648_v3 = vld [vmem:[#allocation69_spill] sm:$0xff] }
 0x1bf   : > { %3624 = vmatprep.subr.bf16.mxu0 %v6473_v40  ;;  %v6649_v40 = vld [vmem:[#allocation73_spill] sm:$0xff] }
 0x1c2   : > { %3626 = vmatpush1.bf16.msra.mxu0 %v6639_v29 }
 0x1c3   : > { %3628 = vmatprep.subr.bf16.mxu0 %v6640_v54 }
 0x1c6   : > { %3630 = vmatpush1.bf16.msra.mxu0 %v6641_v21 }
 0x1c7   : > { %3632 = vmatprep.subr.bf16.mxu0 %v6642_v50 }
 0x1ca   : > { %3634 = vmatpush1.bf16.msra.mxu0 %v6643_v12 }
 0x1cb   : > { %3636 = vmatprep.subr.bf16.mxu0 %v6644_v18 }
 0x1ce   : > { %3638 = vmatpush1.bf16.msra.mxu0 %v6645_v0 }
 0x1cf   : > { %3640 = vmatprep.subr.bf16.mxu0 %v6646_v47 }
 0x1d2   : > { %3642 = vmatpush1.bf16.msra.mxu0 %v6647_v2 }
 0x1d3   : > { %3644 = vmatprep.subr.bf16.mxu0 %v6648_v3  ;;  %v2596_v3 = vstv %s5594_s23  ;;  %s5713_s23 = sld [smem:[#allocation2 + $0x1d]] }
 0x1d6   : > { %3646 = vmatpush1.bf16.msra.mxu0 %v6649_v40 }
 0x1d7   : > { %3648 = vmatprep.subr.bf16.mxu0 %v6650_v34  ;;  %v5576_v62 = vpop.f32.mrb[2].mxu1  ;;  %v2612_v34 = vstv %s5596_s26  ;;  %s5715_s26 = sld [smem:[#allocation2 + $0x20]] }
 0x1d8   : > { %v5578_v33 = vpop.f32.mrb[3].mxu1 }
 0x1da   : > { %3650 = vmatpush1.bf16.msra.mxu0 %v6651_v16  ;;  %v2640_v16 = vstv %s5598_s28  ;;  %s5721_s28 = sld [smem:[#allocation2 + $0x23]] }
 0x1db   : > { %3652 = vmatprep.subr.bf16.mxu0 %v6652_v53  ;;  %v3091_v31 = vpop.f32.mrb[4].mxu1  ;;  %v2668_v53 = vstv %s5600_s7  ;;  %s5723_s7 = sld [smem:[#allocation2 + $0x26]] }
 0x1dc   : > { %v3092_v20 = vpop.f32.mrb[5].mxu1 }
 0x1dd   : > { %v3093_v8 = vadd.f32 %v3092_v20, %v3091_v31  ;;  %v2696_v31 = vstv %s5602_s8  ;;  %v2724_v20 = vstv %s5604_s27  ;;  %s5732_s8 = sld [smem:[#allocation2 + $0x1e]]  ;;  %s5743_s27 = sld [smem:[#allocation2 + $0x22]] }
 0x1de   : > { %3654 = vmatpush1.bf16.msra.mxu0 %v6653_v4 }
 0x1df   : > { %3656 = vmatprep.subr.bf16.mxu0 %v6654_v22  ;;  %v3094_v44 = vpop.f32.mrb[6].mxu1  ;;  %v2590_v22 = vstv %s5610_s20  ;;  %s5738_s20 = sld [smem:[#allocation2 + $0x27]] }
 0x1e0   : > { %v3095_v10 = vpop.f32.mrb[7].mxu1 }
 0x1e1   : > { %v3096_v37 = vadd.f32 %v3095_v10, %v3094_v44  ;;  %v2602_v44 = vstv %s5608_s19  ;;  %v2630_v10 = vstv %s5612_s22  ;;  %s5736_s19 = sld [smem:[#allocation2 + $0x24]]  ;;  %s5746_s22 = sld [smem:[#allocation2 + $0x25]] }
 0x1e2   : > { %3658 = vmatpush1.bf16.msra.mxu0 %v6655_v58  ;;  %v2658_v58 = vstv %s5614_s29  ;;  %s5750_s29 = sld [smem:[#allocation2 + $0x29]] }
 0x1e3   : > { %3660 = vmatprep.subr.bf16.mxu0 %v6656_v48 }
 0x1e6   : > { %3662 = vmatpush1.bf16.msra.mxu0 %v6657_v27 }
 0x1e7   : > { %3664 = vmatprep.subr.bf16.mxu0 %v6658_v42  ;;  %v2714_v42 = vstv %s5618_s5  ;;  %s5758_s5 = sld [smem:[#allocation2 + $0x28]] }
 0x1ea   : > { %3666 = vmatpush1.bf16.msra.mxu0 %v6659_v55  ;;  %v2606_v55 = vstv %s5620_s6  ;;  %s5766_s6 = sld [smem:[#allocation2 + $0x2b]] }
 0x1eb   : > { %3668 = vmatprep.subr.bf16.mxu0 %v6660_v24  ;;  %v2634_v24 = vstv %s5622_s30  ;;  %s3049_s30 = sld [smem:[#allocation2 + $0x31]] }
 0x1ee   : > { %3670 = vmatpush1.bf16.msra.mxu0 %v6661_v26 }
 0x1f1   : > { %1651 = vmatmul.mubr.f32.vlgmr.msra.gmra.mrb[0].mxu0 %v6450_v13 }
 0x1f2   : > { %1657 = vmatprep.mubr.f32.mxu0 %v4972_v28 }
 0x1f5   : > { %1659 = vmatmul.mubr.f32.gmra.mrb[2].mxu0 %v4977_v51 }
 0x1fb   : > { %v3129_v57 = vpop.f32.mrb[8].mxu1 }
 0x1fc   : > { %v3130_v46 = vpop.f32.mrb[9].mxu1 }
 0x1fd   : > { %v3131_v49 = vadd.f32 %v3130_v46, %v3129_v57  ;;  %v2662_v46 = vstv %s5624_s10  ;;  %s5869_s10 = sld [smem:[#allocation2 + $0x32]] }
 0x1ff   : > { %v2021_v9 = vadd.f32 %v3131_v49, %v3093_v8  ;;  %v3132_v23 = vpop.f32.mrb[10].mxu1  ;;  %v2584_v8 = vstv %s5606_s17  ;;  %v2690_v49 = vstv %s5626_s11  ;;  %s5734_s17 = sld [smem:[#allocation2 + $0x21]]  ;;  %s3005_s11 = sshll.u32 %s4328_s9, 4 }
 0x200   : > { %v3133_v52 = vpop.f32.mrb[11].mxu1 }
 0x201   : > { %v3134_v6 = vadd.f32 %v3133_v52, %v3132_v23 }
 0x203   : > { %v2028_v36 = vadd.f32 %v3134_v6, %v3096_v37  ;;  %v2686_v37 = vstv %s5616_s4  ;;  %v2618_v6 = vstv %s5629_s0  ;;  %s5756_s4 = sld [smem:[#allocation2 + $0x2a]]  ;;  %s5764_s0 = sld [smem:[#allocation2 + $0x2c]] }
 0x21b   : > { %v3167_v60 = vpop.f32.mrb[12].mxu1 }
 0x21c   : > { %v3168_v63 = vpop.f32.mrb[13].mxu1 }
 0x21d   : > { %v3169_v56 = vadd.f32 %v3168_v63, %v3167_v60  ;;  %v2674_v63 = vstv %s5635_s21  ;;  %s5865_s21 = sld [smem:[#allocation2 + $0x30]] }
 0x21f   : > { %v2166_v1 = vadd.f32 %v3169_v56, %v2021_v9  ;;  %v3170_v30 = vpop.f32.mrb[14].mxu1  ;;  %v2718_v9 = vstv %s5631_s1  ;;  %v2702_v56 = vstv %s5637_s14  ;;  %s5741_s1 = sld [smem:[#allocation2 + $0x1f]] }
 0x220   : > { %v3171_v59 = vpop.f32.mrb[15].mxu1  ;;  %s5863_s14 = sld [smem:[#allocation2 + $0x2f]] }
 0x221   : > { %v3172_v17 = vadd.f32 %v3171_v59, %v3170_v30 }
 0x223   : > { %v2175_v13 = vadd.f32 %v3172_v17, %v2028_v36  ;;  %v2646_v36 = vstv %s5633_s2  ;;  %s5773_s2 = sld [smem:[#allocation2 + $0x2d]] }
 0x23b   : > { %v3205_v15 = vpop.f32.mrb[16].mxu1 }
 0x23c   : > { %v3206_v28 = vpop.f32.mrb[17].mxu1 }
 0x23d   : > { %v3207_v5 = vadd.f32 %v3206_v28, %v3205_v15 }
 0x23f   : > { %v2283_v51 = vadd.f32 %v3207_v5, %v2166_v1  ;;  %v3208_v61 = vpop.f32.mrb[18].mxu1  ;;  %v2730_v1 = vstv %s5639_s13  ;;  %s5775_s13 = sld [smem:[#allocation2 + $0x2e]] }
 0x240   : > { %v3209_v32 = vpop.f32.mrb[19].mxu1 }
 0x241   : > { %v3210_v14 = vadd.f32 %v3209_v32, %v3208_v61 }
 0x243   : > { %v2294_v38 = vadd.f32 %v3210_v14, %v2175_v13 }
 0x25b   : > { %v3243_v35 = vpop.f32.mrb[20].mxu1 }
 0x25c   : > { %v3244_v19 = vpop.f32.mrb[21].mxu1 }
 0x25d   : > { %v3245_v39 = vadd.f32 %v3244_v19, %v3243_v35 }
 0x25f   : > { %v2462_v45 = vadd.f32 %v3245_v39, %v2283_v51  ;;  %v3246_v25 = vpop.f32.mrb[22].mxu1 }
 0x260   : > { %v3247_v43 = vpop.f32.mrb[23].mxu1 }
 0x261   : > { %v3248_v41 = vadd.f32 %v3247_v43, %v3246_v25 }
 0x263   : > { %v2469_v29 = vadd.f32 %v3248_v41, %v2294_v38 }
 0x27b   : > { %v3281_v54 = vpop.f32.mrb[24].mxu1 }
 0x27c   : > { %v3282_v21 = vpop.f32.mrb[25].mxu1 }
 0x27d   : > { %v3283_v50 = vadd.f32 %v3282_v21, %v3281_v54 }
 0x27f   : > { %v2573_v12 = vadd.f32 %v3283_v50, %v2462_v45  ;;  %v3284_v18 = vpop.f32.mrb[26].mxu1 }
 0x280   : > { %v3285_v0 = vpop.f32.mrb[27].mxu1 }
 0x281   : > { %v3286_v47 = vadd.f32 %v3285_v0, %v3284_v18  ;;  %v2597_v40 = vadd.f32 %v2596_v3, %v2573_v12 }
 0x283   : > { %v2580_v2 = vadd.f32 %v3286_v47, %v2469_v29  ;;  %v2599_v48 = vmax.f32 %v2597_v40, 0.0 }
 0x285   : > { %v2598_v4 = vadd.f32 %v2596_v3, %v2580_v2  ;;  %v2613_v30 = vmul.f32 %v2612_v34, %v2599_v48  ;;  %v2641_v59 = vmul.f32 %v2640_v16, %v2599_v48  ;;  %v2697_v15 = vmul.f32 %v2696_v31, %v2599_v48 }
 0x287   : > { %v5659_v23 = vmax.f32 %v2598_v4, 0.0 }
 0x289   : > { %v5671_v61 = vmul.f32 %v2612_v34, %v5659_v23  ;;  %v5674_v32 = vmul.f32 %v2640_v16, %v5659_v23  ;;  %v2670_v50 = vmul.f32 %v2668_v53, %v5659_v23  ;;  %v2698_v47 = vmul.f32 %v2696_v31, %v5659_v23 }
 0x2c4   : > { %v1652_v27 = vpop.f32.mrb[0].mxu0 }
 0x2c5   : > { %v3863_v26 = vadd.f32 %v1652_v27, %v5558_v11  ;;  %v1654_v57 = vpop.f32.mrb[1].mxu0  ;;  %v2669_v11 = vmul.f32 %v2668_v53, %v2599_v48 }
 0x2c6   : > { %v3864_v52 = vadd.f32 %v1654_v57, %v5560_v7  ;;  %v2725_v7 = vmul.f32 %v2724_v20, %v2599_v48 }
 0x2c7   : > { %v2585_v60 = vadd.f32 %v3863_v26, %v2584_v8 }
 0x2c8   : > { %v2591_v17 = vadd.f32 %v3864_v52, %v2590_v22  ;;  %v1660_v13 = vpop.f32.mrb[2].mxu0 }
 0x2c9   : > { %v2587_v28 = vmax.f32 %v2585_v60, 0.0  ;;  %v3865_v5 = vadd.f32 %v1660_v13, %v5576_v62  ;;  %v1662_v51 = vpop.f32.mrb[3].mxu0 }
 0x2ca   : > { %v2593_v14 = vmax.f32 %v2591_v17, 0.0  ;;  %v3866_v38 = vadd.f32 %v1662_v51, %v5578_v33 }
 0x2cb   : > { %v2603_v35 = vmul.f32 %v2602_v44, %v2587_v28  ;;  %v2631_v19 = vmul.f32 %v2630_v10, %v2587_v28  ;;  %v2659_v39 = vmul.f32 %v2658_v58, %v2587_v28  ;;  %v2687_v45 = vmul.f32 %v2686_v37, %v2587_v28 }
 0x2cc   : > { %v2715_v25 = vmul.f32 %v2714_v42, %v2587_v28  ;;  %v2607_v62 = vmul.f32 %v2606_v55, %v2593_v14  ;;  %v2635_v43 = vmul.f32 %v2634_v24, %v2593_v14  ;;  %v2663_v41 = vmul.f32 %v2662_v46, %v2593_v14 }
 0x2cd   : > { %v2691_v29 = vmul.f32 %v2690_v49, %v2593_v14  ;;  %v2719_v54 = vmul.f32 %v2718_v9, %v2593_v14  ;;  %v2586_v21 = vadd.f32 %v3865_v5, %v2584_v8  ;;  %v2592_v33 = vadd.f32 %v3866_v38, %v2590_v22 }
 0x2ce   : > { %v2609_v12 = vadd.f32 %v2607_v62, %v2603_v35  ;;  %v2637_v18 = vadd.f32 %v2635_v43, %v2631_v19  ;;  %v2665_v0 = vadd.f32 %v2663_v41, %v2659_v39  ;;  %v2726_v5 = vmul.f32 %v2724_v20, %v5659_v23 }
 0x2cf   : > { %v2693_v2 = vadd.f32 %v2691_v29, %v2687_v45  ;;  %v2721_v3 = vadd.f32 %v2719_v54, %v2715_v25  ;;  %v2588_v40 = vmax.f32 %v2586_v21, 0.0  ;;  %v2594_v53 = vmax.f32 %v2592_v33, 0.0 }
 0x2d0   : > { %v2615_v34 = vadd.f32 %v2613_v30, %v2609_v12  ;;  %v2643_v16 = vadd.f32 %v2641_v59, %v2637_v18  ;;  %v2671_v4 = vadd.f32 %v2669_v11, %v2665_v0  ;;  %v2746_v25 = vstv %s5715_s26  ;;  %s216_s26 = scalar_lea.vmem [#allocation9], %s3005_s11 }
 0x2d1   : > { %v2699_v8 = vadd.f32 %v2697_v15, %v2693_v2  ;;  %v2727_v22 = vadd.f32 %v2725_v7, %v2721_v3  ;;  %v2604_v48 = vmul.f32 %v2602_v44, %v2588_v40  ;;  %v2632_v27 = vmul.f32 %v2630_v10, %v2588_v40 }
 0x2d2   : > { %v2619_v26 = vadd.f32 %v2618_v6, %v2615_v34  ;;  %v2647_v31 = vadd.f32 %v2646_v36, %v2643_v16  ;;  %v2675_v57 = vadd.f32 %v2674_v63, %v2671_v4  ;;  %v2660_v52 = vmul.f32 %v2658_v58, %v2588_v40 }
 0x2d3   : > { %v2703_v60 = vadd.f32 %v2702_v56, %v2699_v8  ;;  %v2731_v30 = vadd.f32 %v2730_v1, %v2727_v22  ;;  %v2688_v59 = vmul.f32 %v2686_v37, %v2588_v40  ;;  %v2716_v44 = vmul.f32 %v2714_v42, %v2588_v40 }
 0x2d4   : > { %v2621_v10 = vmul.f32 0.5, %v2619_v26  ;;  %v2649_v11 = vmul.f32 0.5, %v2647_v31  ;;  %v2677_v17 = vmul.f32 0.5, %v2675_v57  ;;  %v2608_v13 = vmul.f32 %v2606_v55, %v2594_v53 }
 0x2d5   : > { %v2705_v15 = vmul.f32 0.5, %v2703_v60  ;;  %v2733_v7 = vmul.f32 0.5, %v2731_v30  ;;  %v2636_v58 = vmul.f32 %v2634_v24, %v2594_v53  ;;  %v2664_v37 = vmul.f32 %v2662_v46, %v2594_v53 }
 0x2d6   : > { %3956 = vtanh.f32 %v2621_v10  ;;  %v2610_v42 = vadd.f32 %v2608_v13, %v2604_v48  ;;  %v2692_v28 = vmul.f32 %v2690_v49, %v2594_v53  ;;  %v2720_v55 = vmul.f32 %v2718_v9, %v2594_v53 }
 0x2d7   : > { %3958 = vtanh.f32 %v2649_v11  ;;  %v2638_v24 = vadd.f32 %v2636_v58, %v2632_v27  ;;  %v2666_v46 = vadd.f32 %v2664_v37, %v2660_v52  ;;  %v2752_v41 = vstv %s5721_s28  ;;  %s2897_s28 = sshll.u32 %s216_s26, 4  ;;  %s5879_s28 = int_to_ptr.vmem [resolvable:$true] %s2897_s28 }
 0x2d8   : > { %3960 = vtanh.f32 %v2677_v17  ;;  %v2616_v49 = vadd.f32 %v5671_v61, %v2610_v42  ;;  %v2694_v9 = vadd.f32 %v2692_v28, %v2688_v59  ;;  %v2722_v51 = vadd.f32 %v2720_v55, %v2716_v44 }
 0x2d9   : > { %3962 = vtanh.f32 %v2705_v15  ;;  %v2644_v20 = vadd.f32 %v5674_v32, %v2638_v24  ;;  %v2672_v23 = vadd.f32 %v2670_v50, %v2666_v46  ;;  %v2782_v29 = vstv %s5732_s8 }
 0x2da   : > { %3964 = vtanh.f32 %v2733_v7  ;;  %v2620_v14 = vadd.f32 %v2618_v6, %v2616_v49  ;;  %v2700_v61 = vadd.f32 %v2698_v47, %v2694_v9  ;;  %v2728_v38 = vadd.f32 %v2726_v5, %v2722_v51 }
 0x2db   : > { %v2648_v35 = vadd.f32 %v2646_v36, %v2644_v20  ;;  %v2676_v19 = vadd.f32 %v2674_v63, %v2672_v23  ;;  %v2742_v36 = vstv %s5713_s23  ;;  %v2786_v54 = vstv %s5734_s17  ;;  %s3058_s23 = sshll.u32 %s4186_s16, 8  ;;  %s4059_s16 = scalar_lea.vmem %s5879_s28, 256 }
 0x2dc   : > { %v2622_v32 = vmul.f32 0.5, %v2620_v14  ;;  %v2704_v39 = vadd.f32 %v2702_v56, %v2700_v61  ;;  %v2732_v6 = vadd.f32 %v2730_v1, %v2728_v38  ;;  %v2758_v56 = vstv %s5723_s7  ;;  %s5877_s17 = scalar_lea.hbm %s5926_s3, %s3058_s23  ;;  %p4060_p8 = scmp.ne.s32.totalorder %s5879_s28, %s4059_s16 }
 0x2dd   : > { %v2650_v63 = vmul.f32 0.5, %v2648_v35  ;;  %v2678_v45 = vmul.f32 0.5, %v2676_v19  ;;  %v2792_v21 = vstv %s5736_s19  ;;  %v2798_v33 = vstv %s5738_s20  ;;  %s2884_s19 = scalar_lea.sflag [#allocation4], %s4328_s9  ;;  %s4142_s20 = smov [#allocation9]  }
 0x2de   : > { %3966 = vtanh.f32 %v2622_v32  ;;  %v2706_v62 = vmul.f32 0.5, %v2704_v39  ;;  %v2734_v43 = vmul.f32 0.5, %v2732_v6  ;;  %v2822_v18 = vstv %s5741_s1  ;;  %p4061_p4 = pnand %p4060_p8, %p6662_p9  ;;  %s4063_s1 = sshll.u32 %s4142_s20, 4  ;;  %s4064_s1 = int_to_ptr.vmem [resolvable:$false] %s4063_s1 }
 0x2df   : > { %3968 = vtanh.f32 %v2650_v63  ;;  %v2826_v0 = vstv %s5743_s27  ;;  %v2832_v3 = vstv %s5746_s22  ;;  %v2764_v40 = vstv %s5750_s29  ;;  %s4065_s27 = scalar_lea.vmem %s4064_s1, 512  ;;  %p4066_p11 = scmp.lt.s32.totalorder %s5879_s28, %s4064_s1 }
 0x2e0   : > { %v3957_v1 = vpop.eup %3956  ;;  %3970 = vtanh.f32 %v2678_v45  ;;  %v2804_v53 = vstv %s5756_s4  ;;  %v2838_v8 = vstv %s5758_s5  ;;  %v2770_v26 = vstv %s5764_s0  ;;  %p4062_p10 = pneg %p4061_p4  ;;  %p4067_p13 = scmp.lt.s32.totalorder %s4065_s27, %s4059_s16 }
 0x2e1   : > { %v3959_v50 = vpop.eup %3958  ;;  %v2625_v12 = vmul.f32 0.5, %v3957_v1  ;;  %3972 = vtanh.f32 %v2706_v62  ;;  %v2844_v31 = vstv %s5766_s6  ;;  %v2810_v15 = vstv %s5773_s2 }
 0x2e2   : > { %v3961_v47 = vpop.eup %3960  ;;  %v2653_v2 = vmul.f32 0.5, %v3959_v50  ;;  %3974 = vtanh.f32 %v2734_v43  ;;  %v2850_v7 = vstv %s5775_s13  ;;  %p4068_p3 = por %p4067_p13, %p4066_p11 }
 0x2e3   : > { %v3963_v34 = vpop.eup %3962  ;;  %v2627_v16 = vadd.f32 0.5, %v2625_v12  ;;  %v2681_v4 = vmul.f32 0.5, %v3961_v47 }
 0x2e4   : > { %v3965_v22 = vpop.eup %3964  ;;  %v2655_v48 = vadd.f32 0.5, %v2653_v2  ;;  %v2709_v27 = vmul.f32 0.5, %v3963_v34  ;;  %p4069_p7 = pnand %p4068_p3, %p4062_p10 }
 0x2e5   : > { %v2683_v57 = vadd.f32 0.5, %v2681_v4  ;;  %v2737_v52 = vmul.f32 0.5, %v3965_v22  ;;  %v2743_v60 = vmul.f32 %v2742_v36, %v2627_v16  ;;  %v2783_v30 = vmul.f32 %v2782_v29, %v2627_v16 }
 0x2e6   : > { %v2711_v59 = vadd.f32 0.5, %v2709_v27  ;;  %v2747_v44 = vmul.f32 %v2746_v25, %v2655_v48  ;;  %v2787_v10 = vmul.f32 %v2786_v54, %v2655_v48  ;;  %v2823_v11 = vmul.f32 %v2822_v18, %v2627_v16 }
 0x2e7   : > { %v5796_v17 = vadd.f32 0.5, %v2737_v52  ;;  %v2827_v13 = vmul.f32 %v2826_v0, %v2655_v48  ;;  %v2753_v42 = vmul.f32 %v2752_v41, %v2683_v57  ;;  %v2793_v55 = vmul.f32 %v2792_v21, %v2683_v57 }
 0x2e8   : > { %v3967_v58 = vpop.eup %3966  ;;  %v2749_v37 = vadd.f32 %v2747_v44, %v2743_v60  ;;  %v2789_v28 = vadd.f32 %v2787_v10, %v2783_v30  ;;  %v2759_v24 = vmul.f32 %v2758_v56, %v2711_v59  ;;  %v2799_v46 = vmul.f32 %v2798_v33, %v2711_v59 }
 0x2e9   : > { %v3969_v5 = vpop.eup %3968  ;;  %v2833_v49 = vmul.f32 %v2832_v3, %v2683_v57  ;;  %v2626_v9 = vmul.f32 0.5, %v3967_v58  ;;  %v2829_v61 = vadd.f32 %v2827_v13, %v2823_v11  ;;  %v2765_v32 = vmul.f32 %v2764_v40, %v5796_v17 }
 0x2ea   : > { %v3971_v51 = vpop.eup %3970  ;;  %v2654_v20 = vmul.f32 0.5, %v3969_v5  ;;  %v2755_v23 = vadd.f32 %v2753_v42, %v2749_v37  ;;  %v2795_v14 = vadd.f32 %v2793_v55, %v2789_v28  ;;  %v2805_v39 = vmul.f32 %v2804_v53, %v5796_v17 }
 0x2eb   : > { %v3973_v38 = vpop.eup %3972  ;;  %v2628_v35 = vadd.f32 0.5, %v2626_v9  ;;  %v2682_v19 = vmul.f32 0.5, %v3971_v51  ;;  %v2839_v57 = vmul.f32 %v2838_v8, %v2711_v59  ;;  %v2835_v11 = vadd.f32 %v2833_v49, %v2829_v61 }
 0x2ec   : > { %v3975_v6 = vpop.eup %3974  ;;  %v2656_v63 = vadd.f32 0.5, %v2654_v20  ;;  %v2710_v45 = vmul.f32 0.5, %v3973_v38  ;;  %v2761_v62 = vadd.f32 %v2759_v24, %v2755_v23  ;;  %v2801_v43 = vadd.f32 %v2799_v46, %v2795_v14 }
 0x2ed   : > { %v2684_v1 = vadd.f32 0.5, %v2682_v19  ;;  %v2738_v50 = vmul.f32 0.5, %v3975_v6  ;;  %v2744_v12 = vmul.f32 %v2742_v36, %v2628_v35  ;;  %v2784_v47 = vmul.f32 %v2782_v29, %v2628_v35 }
 0x2ee   : > { %v2712_v2 = vadd.f32 0.5, %v2710_v45  ;;  %v2748_v34 = vmul.f32 %v2746_v25, %v2656_v63  ;;  %v2788_v16 = vmul.f32 %v2786_v54, %v2656_v63  ;;  %v2824_v4 = vmul.f32 %v2822_v18, %v2628_v35 }
 0x2ef   : > { %v2740_v22 = vadd.f32 0.5, %v2738_v50  ;;  %v2754_v48 = vmul.f32 %v2752_v41, %v2684_v1  ;;  %v2828_v27 = vmul.f32 %v2826_v0, %v2656_v63  ;;  %v2794_v25 = vmul.f32 %v2792_v21, %v2684_v1 }
 0x2f0   : > { %v2750_v36 = vadd.f32 %v2748_v34, %v2744_v12  ;;  %v2760_v52 = vmul.f32 %v2758_v56, %v2712_v2  ;;  %v2790_v29 = vadd.f32 %v2788_v16, %v2784_v47  ;;  %v2800_v54 = vmul.f32 %v2798_v33, %v2712_v2 }
 0x2f1   : > { %v2834_v18 = vmul.f32 %v2832_v3, %v2684_v1  ;;  %v2766_v60 = vmul.f32 %v2764_v40, %v2740_v22  ;;  %v2767_v41 = vadd.f32 %v2765_v32, %v2761_v62  ;;  %v2807_v59 = vadd.f32 %v2805_v39, %v2801_v43 }
 0x2f2   : > { %v2756_v0 = vadd.f32 %v2754_v48, %v2750_v36  ;;  %v2796_v30 = vadd.f32 %v2794_v25, %v2790_v29  ;;  %v2830_v44 = vadd.f32 %v2828_v27, %v2824_v4  ;;  %v2806_v56 = vmul.f32 %v2804_v53, %v2740_v22 }
 0x2f3   : > { %v2771_v10 = vadd.f32 %v2770_v26, %v2767_v41  ;;  %v2840_v21 = vmul.f32 %v2838_v8, %v2712_v2  ;;  %v2811_v40 = vadd.f32 %v2810_v15, %v2807_v59  ;;  %v2841_v37 = vadd.f32 %v2839_v57, %v2835_v11 }
 0x2f4   : > { %v2762_v33 = vadd.f32 %v2760_v52, %v2756_v0  ;;  %v2802_v3 = vadd.f32 %v2800_v54, %v2796_v30  ;;  %v2836_v13 = vadd.f32 %v2834_v18, %v2830_v44  ;;  %v2845_v42 = vmul.f32 %v2844_v31, %v5796_v17 }
 0x2f5   : > { %v2773_v58 = vmul.f32 0.5, %v2771_v10  ;;  %v2846_v28 = vmul.f32 %v2844_v31, %v2740_v22  ;;  %v2813_v5 = vmul.f32 0.5, %v2811_v40  ;;  %v2862_v35 = vstv %s5863_s14 }
 0x2f6   : > { %v2768_v53 = vadd.f32 %v2766_v60, %v2762_v33  ;;  %v2808_v55 = vadd.f32 %v2806_v56, %v2802_v3  ;;  %v2842_v24 = vadd.f32 %v2840_v21, %v2836_v13  ;;  %v2847_v8 = vadd.f32 %v2845_v42, %v2841_v37 }
 0x2f7   : > { %3976 = vtanh.f32 %v2773_v58  ;;  %v2866_v19 = vstv %s5865_s21  ;;  %v2872_v4 = vstv %s3049_s30  ;;  %v2878_v25 = vstv %s5869_s10 }
 0x2f8   : > { %v2772_v46 = vadd.f32 %v2770_v26, %v2768_v53  ;;  %v2812_v49 = vadd.f32 %v2810_v15, %v2808_v55  ;;  %3978 = vtanh.f32 %v2813_v5  ;;  %v2848_v9 = vadd.f32 %v2846_v28, %v2842_v24 }
 0x2f9   : > { %v2851_v51 = vadd.f32 %v2850_v7, %v2847_v8 }
 0x2fa   : > { %v2774_v20 = vmul.f32 0.5, %v2772_v46  ;;  %v2814_v23 = vmul.f32 0.5, %v2812_v49  ;;  %v2852_v17 = vadd.f32 %v2850_v7, %v2848_v9 }
 0x2fb   : > { %v2853_v14 = vmul.f32 0.5, %v2851_v51 }
 0x2fc   : > { %3980 = vtanh.f32 %v2774_v20  ;;  %v2854_v31 = vmul.f32 0.5, %v2852_v17 }
 0x2fd   : > { %3982 = vtanh.f32 %v2814_v23 }
 0x2fe   : > { %3984 = vtanh.f32 %v2853_v14 }
 0x2ff   : > { %3986 = vtanh.f32 %v2854_v31 }
 0x301   : > { %v3977_v26 = vpop.eup %3976 }
 0x302   : > { %v3979_v15 = vpop.eup %3978  ;;  %v2777_v61 = vmul.f32 0.5, %v3977_v26 }
 0x303   : > { %v2817_v38 = vmul.f32 0.5, %v3979_v15 }
 0x304   : > { %v2779_v7 = vadd.f32 0.5, %v2777_v61 }
 0x305   : > { %v2819_v32 = vadd.f32 0.5, %v2817_v38 }
 0x306   : > { %v3981_v39 = vpop.eup %3980  ;;  %v2863_v6 = vmul.f32 %v2862_v35, %v2779_v7 }
 0x307   : > { %v3983_v63 = vpop.eup %3982  ;;  %v2778_v45 = vmul.f32 0.5, %v3981_v39  ;;  %v2867_v62 = vmul.f32 %v2866_v19, %v2819_v32 }
 0x308   : > { %v3985_v43 = vpop.eup %3984  ;;  %v2818_v1 = vmul.f32 0.5, %v3983_v63 }
 0x309   : > { %v3987_v50 = vpop.eup %3986  ;;  %v2780_v12 = vadd.f32 0.5, %v2778_v45  ;;  %v2857_v47 = vmul.f32 0.5, %v3985_v43  ;;  %v2869_v2 = vadd.f32 %v2867_v62, %v2863_v6 }
 0x30a   : > { %v2820_v34 = vadd.f32 0.5, %v2818_v1  ;;  %v2858_v16 = vmul.f32 0.5, %v3987_v50 }
 0x30b   : > { %v2859_v22 = vadd.f32 0.5, %v2857_v47  ;;  %v2864_v48 = vmul.f32 %v2862_v35, %v2780_v12 }
 0x30c   : > { %v2860_v27 = vadd.f32 0.5, %v2858_v16  ;;  %v2868_v57 = vmul.f32 %v2866_v19, %v2820_v34 }
 0x30d   : > { %v2873_v36 = vmul.f32 %v2872_v4, %v2859_v22 }
 0x30e   : > { %v2870_v52 = vadd.f32 %v2868_v57, %v2864_v48  ;;  %v2874_v29 = vmul.f32 %v2872_v4, %v2860_v27 }
 0x30f   : > { %v2875_v54 = vadd.f32 %v2873_v36, %v2869_v2 }
 0x310   : > { %v2876_v18 = vadd.f32 %v2874_v29, %v2870_v52 }
 0x311   : > { %v2879_v60 = vadd.f32 %v2878_v25, %v2875_v54 }
 0x312   : > { %v2880_v41 = vadd.f32 %v2878_v25, %v2876_v18 }
 0x313   : > { %2881 = vst [vmem:[%s216_s26] sm:$0xff] %v2879_v60 }
 0x314   : > { %2882 = vst [vmem:[%s216_s26 + $0x8] sm:$0xff] %v2880_v41 }
 0x315   : > { %4072 = shalt.err (!%p4069_p7)
}
 0x316   : > { %s4073_s22 = scalar_lea.hbm %s5877_s17, 256  ;;  %s4077_s5 = scalar_lea.hbm %s5926_s3, 512 }
 0x317   : > { %p4074_p12 = scmp.ne.s32.totalorder %s5877_s17, %s4073_s22  ;;  %p4078_p5 = scmp.lt.u32.totalorder %s5877_s17, %s5926_s3 }
 0x318   : > { %p4079_p0 = scmp.lt.u32.totalorder %s4077_s5, %s4073_s22  ;;  %p4081_p8 = scmp.lt.u32.totalorder %s4073_s22, %s5877_s17 }
 0x319   : > { %p4075_p1 = pnand %p4074_p12, %p6662_p9 }
 0x31a   : > { %p4080_p6 = por %p4079_p0, %p4078_p5 }
 0x31b   : > { %p4076_p2 = pneg %p4075_p1 }
 0x31c   : > { %p4082_p4 = por %p4081_p8, %p4080_p6 }
 0x31e   : > { %p4083_p10 = pnand %p4082_p4, %p4076_p2 }
 0x320   : > { %4086 = shalt.err (!%p4083_p10)
}
 0x321   : > { %s4143_s2 = smov 128   ;;  %s4144_s13 = smov 8  }
 0x322   : > { %3893 = dma.vmem_to_hbm [thread:$0]  (%p6662_p9), %s5879_s28, 256, %s5877_s17, %s2884_s19, %s4143_s2, %s4143_s2, %s4144_s13  }
 0x323 PF: > { %s2912_s14 = sand.u32 1, %s4121_s12   ;;  %p6663_p11 = scmp.ne.s32.totalorder %s6248_s25, 0 }
 0x324   : > { %p6664_p13 = scmp.ge.s32.totalorder %s4133_s15, 2  ;;  %s2913_s21 = scalar_lea.sflag [#allocation4], %s2912_s14 }
 0x326   : > { %p3907_p3 = pnand %p6664_p13, %p6663_p11 }
 0x328   : > { %4116 = dma.done.wait (!%p3907_p3), %s2913_s21, 256  }
 0x329   : > { %4118 = vsyncadd (!%p3907_p3), %s2913_s21, 4294967040  ;;  %s6665_s12 = sld [smem:[#allocation14_spill]]  ;;  %s6666_s13 = sld [smem:[#allocation15_spill]] }
 0x32a   : > { %s6667_s14 = sld [smem:[#allocation16_spill]]  ;;  %p18_p7 = scmp.ge.s32.totalorder %s4190_s18, 4  }
 0x32b   : > { %s6668_s15 = smov %s4190_s18 }
 0x32c   :  { %20 = sbr.rel (!%p18_p7) target bundleno = 11 (0xb), region = 86 }
 0x333   :  { %2918 = vsyncpa [#allocation3], 1 }
 0x334   :  { %2920 = vsyncpa [#allocation3 + $0x1], 1 }
 0x335   :  { %2921 = vsyncpa [#allocation8], 1 }
 0x336   :  { %2922 = vsyncpa [#allocation4], 1 }
 0x337   :  { %2924 = vsyncpa [#allocation4 + $0x1], 1 }
 0x338   :  { %2925 = vsyncpa [#allocation5], 1 }
 0x339   :  { %2927 = vsyncpa [#allocation5 + $0x1], 1 }

</bundles_post_ra>
